<compile_context>
chip_gen: v6e
topology: v6e:2x2x1
jax: 0.10.0
libtpu: 0.0.40
codegen_flags: <defaults>
</compile_context>

<pallas_src>
import jax
import jax.numpy as jnp
from jax.experimental import pallas as pl
from jax.experimental.pallas import tpu as pltpu

# ---- problem sizes (small, consistent with the module) ----
N, C, H, W = 2, 8, 7, 7        # batch, d_model, spatial (must be 7x7)
NC = 4                         # num_classes
RED = 2                        # CBAM reduction rate
KS = 3                         # CBAM spatial kernel size
HW = H * W

F32 = jnp.float32
VMEM = pltpu.MemorySpace.VMEM
SMEM = pltpu.MemorySpace.SMEM


# --------------------------- single fused kernel -----------------------------
def head_kernel(x_ref,                       # (N, HW, 2C)   pixel rows, VMEM
                w1_ref, b1_ref,              # (2C, C), (1, C)   fusion conv1
                w2_ref, b2_ref,              # (C, C),  (1, C)   fusion conv2
                wca1_ref, wca2_ref,          # CBAM channel MLP (no bias)
                wsp_ref,                     # (2*KS*KS,) SMEM   CBAM 3x3 conv
                wf12_ref, bf12_ref,          # (C, 4C), (1, 4C)  ffd fc1|fc2
                wf3_ref, bf3_ref,            # (2C, C), (1, C)   ffd fc3
                wfc_ref, bfc_ref,            # (C, NC), (1, NC)  classifier fc
                out_ref):                    # (N, NC)
    w1 = w1_ref[...]
    b1 = b1_ref[...]
    w2 = w2_ref[...]
    b2 = b2_ref[...]

    # ---------- Fusion (merged 1x1 convs) + CBAM pooled stats, per batch -----
    fused = []                               # list of (HW, C)
    stats = []                               # [avg_0, max_0, avg_1, max_1, ...]
    for n in range(N):
        xc = x_ref[n]                        # (HW, 2C)  = [x1 | x2] channels
        x1 = xc[:, :C]
        x2 = xc[:, C:]
        h = jnp.maximum(
            jnp.dot(xc, w1, preferred_element_type=F32) + b1, 0.0)   # ReLU
        attn = jnp.tanh(
            jnp.dot(h, w2, preferred_element_type=F32) + b2)         # Tanh gate
        fn = x1 * attn + x2 * (1.0 - attn)   # (HW, C)
        fused.append(fn)
        stats.append(jnp.mean(fn, axis=0, keepdims=True))            # (1, C)
        stats.append(jnp.max(fn, axis=0, keepdims=True))             # (1, C)

    # ---------- CBAM channel MLP: one matmul pair for all 2N pooled rows -----
    st = jnp.concatenate(stats, axis=0)                              # (2N, C)
    hid = jnp.maximum(
        jnp.dot(st, wca1_ref[...], preferred_element_type=F32), 0.0)
    mlp = jnp.dot(hid, wca2_ref[...], preferred_element_type=F32)    # (2N, C)

    # column-validity masks for the 3x3 conv in flat-HW layout
    col = jax.lax.broadcasted_iota(jnp.int32, (HW, 1), 0) % W
    mask_dx = [(col >= 1).astype(F32),
               jnp.ones((HW, 1), F32),
               (col <= W - 2).astype(F32)]
    zpad = jnp.zeros((W + 1, 1), F32)        # zero pad == out-of-range rows

    # ---------- CBAM spatial attention + 7x7 max-pool, per batch -------------
    pooled = []
    for n in range(N):
        ca = jax.nn.sigmoid(mlp[2 * n:2 * n + 1, :]
                            + mlp[2 * n + 1:2 * n + 2, :])           # (1, C)
        y = fused[n] * ca                                            # (HW, C)
        avg_map = jnp.mean(y, axis=-1, keepdims=True)                # (HW, 1)
        max_map = jnp.max(y, axis=-1, keepdims=True)                 # (HW, 1)
        # zero-padded flat maps; shift s = (dy-1)*W + (dx-1) in [-(W+1), W+1]
        avg_p = jnp.concatenate([zpad, avg_map, zpad], axis=0)       # (HW+2W+2,1)
        max_p = jnp.concatenate([zpad, max_map, zpad], axis=0)
        acc = jnp.zeros((HW, 1), F32)
        for dy in range(KS):
            for dx in range(KS):
                start = (W + 1) + (dy - 1) * W + (dx - 1)
                w_a = wsp_ref[dy * KS + dx]
                w_m = wsp_ref[KS * KS + dy * KS + dx]
                tap = (w_a * avg_p[start:start + HW, :]
                       + w_m * max_p[start:start + HW, :])
                acc = acc + mask_dx[dx] * tap
        sa = jax.nn.sigmoid(acc)                                     # (HW, 1)
        z = y * sa                                                   # (HW, C)
        # MaxPool2d((7,7), stride 1) on a 7x7 map == global max over HW
        pooled.append(jnp.max(z, axis=0, keepdims=True))             # (1, C)

    p = jnp.concatenate(pooled, axis=0)                              # (N, C)

    # ---------- Classifier: FeedForward (merged fc1|fc2) + residual + fc -----
    x12 = jnp.dot(p, wf12_ref[...], preferred_element_type=F32) + bf12_ref[...]
    xa = x12[:, :2 * C]
    xb = x12[:, 2 * C:]
    hcl = (xa * jax.nn.sigmoid(xa)) * xb     # SiLU(fc1(p)) * fc2(p)
    # dropout: inference mode -> identity
    f = jnp.dot(hcl, wf3_ref[...], preferred_element_type=F32) + bf3_ref[...]
    r = jnp.maximum(p + f, 0.0)              # residual + ReLU
    out_ref[...] = (jnp.dot(r, wfc_ref[...], preferred_element_type=F32)
                    + bfc_ref[...])


# -------------------------------- wrapper ------------------------------------
def head_forward(x1_nchw, x2_nchw, params):
    # single transpose/reshape of the channel-concatenated stack -> pixel rows
    xcat = jnp.concatenate([x1_nchw, x2_nchw], axis=1)          # (N, 2C, H, W)
    x_rows = jnp.transpose(xcat, (0, 2, 3, 1)).reshape(N, HW, 2 * C)

    return pl.pallas_call(
        head_kernel,
        out_shape=jax.ShapeDtypeStruct((N, NC), F32),
        in_specs=[pl.BlockSpec(memory_space=VMEM)] * 7
                 + [pl.BlockSpec(memory_space=SMEM)]
                 + [pl.BlockSpec(memory_space=VMEM)] * 6,
        out_specs=pl.BlockSpec(memory_space=VMEM),
    )(x_rows,
      params["w1"], params["b1"], params["w2"], params["b2"],
      params["wca1"], params["wca2"], params["wsp"],
      params["wf12"], params["bf12"], params["wf3"], params["bf3"],
      params["wfc"], params["bfc"])


head_forward = jax.jit(head_forward)


def init_params(key):
    ks = jax.random.split(key, 14)
    s = 0.2
    nrm = lambda k, shape: s * jax.random.normal(k, shape, F32)
    return {
        # Fusion: conv1 (2C->C, 1x1) as one merged (2C, C) matmul weight, conv2
        "w1": nrm(ks[0], (2 * C, C)), "b1": nrm(ks[1], (1, C)),
        "w2": nrm(ks[2], (C, C)), "b2": nrm(ks[3], (1, C)),
        # CBAM channel MLP (no bias) and spatial 3x3 conv weights
        # wsp layout: [avg-channel 3x3 (row-major), max-channel 3x3 (row-major)]
        "wca1": nrm(ks[4], (C, C // RED)), "wca2": nrm(ks[5], (C // RED, C)),
        "wsp": nrm(ks[6], (2 * KS * KS,)),
        # Classifier FeedForward (fc1|fc2 merged) + fc3 + final fc
        "wf12": nrm(ks[7], (C, 4 * C)), "bf12": nrm(ks[8], (1, 4 * C)),
        "wf3": nrm(ks[9], (2 * C, C)), "bf3": nrm(ks[10], (1, C)),
        "wfc": nrm(ks[11], (C, NC)), "bfc": nrm(ks[12], (1, NC)),
    }


if __name__ == "__main__":
    key = jax.random.PRNGKey(0)
    kx1, kx2, kp = jax.random.split(key, 3)
    x1 = jax.random.normal(kx1, (N, C, H, W), F32)   # NCHW, like PyTorch
    x2 = jax.random.normal(kx2, (N, C, H, W), F32)
    params = init_params(kp)

    out = head_forward(x1, x2, params)
    out = jax.block_until_ready(out)
    assert out.shape == (N, NC) and out.dtype == F32
    print("KERNEL_OK")
</pallas_src>

<mosaic_0001>
module attributes {stable_mosaic.version = 11 : i64} {
  func.func @head_kernel(%arg0: memref<2x49x16xf32, #tpu.memory_space<vmem>>, %arg1: memref<16x8xf32, #tpu.memory_space<vmem>>, %arg2: memref<1x8xf32, #tpu.memory_space<vmem>>, %arg3: memref<8x8xf32, #tpu.memory_space<vmem>>, %arg4: memref<1x8xf32, #tpu.memory_space<vmem>>, %arg5: memref<8x4xf32, #tpu.memory_space<vmem>>, %arg6: memref<4x8xf32, #tpu.memory_space<vmem>>, %arg7: memref<18xf32, #tpu.memory_space<smem>>, %arg8: memref<8x32xf32, #tpu.memory_space<vmem>>, %arg9: memref<1x32xf32, #tpu.memory_space<vmem>>, %arg10: memref<16x8xf32, #tpu.memory_space<vmem>>, %arg11: memref<1x8xf32, #tpu.memory_space<vmem>>, %arg12: memref<8x4xf32, #tpu.memory_space<vmem>>, %arg13: memref<1x4xf32, #tpu.memory_space<vmem>>, %arg14: memref<2x4xf32, #tpu.memory_space<vmem>>) attributes {dimension_semantics = [], scalar_prefetch = 0 : i64, scratch_operands = 0 : i64, tpu.core_type = #tpu.core_type<tc>} {
    %c0 = arith.constant 0 : index
    %c0_0 = arith.constant 0 : index
    %0 = vector.load %arg1[%c0, %c0_0] : memref<16x8xf32, #tpu.memory_space<vmem>>, vector<16x8xf32>
    %c0_1 = arith.constant 0 : index
    %c0_2 = arith.constant 0 : index
    %1 = vector.load %arg2[%c0_1, %c0_2] : memref<1x8xf32, #tpu.memory_space<vmem>>, vector<1x8xf32>
    %c0_3 = arith.constant 0 : index
    %c0_4 = arith.constant 0 : index
    %2 = vector.load %arg3[%c0_3, %c0_4] : memref<8x8xf32, #tpu.memory_space<vmem>>, vector<8x8xf32>
    %c0_5 = arith.constant 0 : index
    %c0_6 = arith.constant 0 : index
    %3 = vector.load %arg4[%c0_5, %c0_6] : memref<1x8xf32, #tpu.memory_space<vmem>>, vector<1x8xf32>
    %c0_7 = arith.constant 0 : index
    %c0_8 = arith.constant 0 : index
    %c0_9 = arith.constant 0 : index
    %4 = vector.load %arg0[%c0_7, %c0_8, %c0_9] : memref<2x49x16xf32, #tpu.memory_space<vmem>>, vector<1x49x16xf32>
    %5 = vector.shape_cast %4 : vector<1x49x16xf32> to vector<49x16xf32>
    %6 = vector.extract_strided_slice %5 {offsets = [0, 0], sizes = [49, 8], strides = [1, 1]} : vector<49x16xf32> to vector<49x8xf32>
    %7 = vector.extract_strided_slice %5 {offsets = [0, 8], sizes = [49, 8], strides = [1, 1]} : vector<49x16xf32> to vector<49x8xf32>
    %cst = arith.constant dense<0.000000e+00> : vector<49x8xf32>
    %8 = tpu.matmul %5, %0, %cst {dimension_numbers = #tpu.dot_dimension_numbers<[1], [0], [0], [1], [0, 0, 1, 1], [], []>} : vector<49x16xf32>, vector<16x8xf32>, vector<49x8xf32> -> vector<49x8xf32>
    %9 = vector.broadcast %1 : vector<1x8xf32> to vector<49x8xf32>
    %10 = arith.addf %8, %9 : vector<49x8xf32>
    %cst_10 = arith.constant 0.000000e+00 : f32
    %11 = vector.broadcast %cst_10 : f32 to vector<49x8xf32>
    %12 = arith.maximumf %10, %11 : vector<49x8xf32>
    %cst_11 = arith.constant dense<0.000000e+00> : vector<49x8xf32>
    %13 = tpu.matmul %12, %2, %cst_11 {dimension_numbers = #tpu.dot_dimension_numbers<[1], [0], [0], [1], [0, 0, 1, 1], [], []>} : vector<49x8xf32>, vector<8x8xf32>, vector<49x8xf32> -> vector<49x8xf32>
    %14 = vector.broadcast %3 : vector<1x8xf32> to vector<49x8xf32>
    %15 = arith.addf %13, %14 : vector<49x8xf32>
    %16 = math.tanh %15 : vector<49x8xf32>
    %17 = arith.mulf %6, %16 : vector<49x8xf32>
    %cst_12 = arith.constant 1.000000e+00 : f32
    %18 = vector.broadcast %cst_12 : f32 to vector<49x8xf32>
    %19 = arith.subf %18, %16 : vector<49x8xf32>
    %20 = arith.mulf %7, %19 : vector<49x8xf32>
    %21 = arith.addf %17, %20 : vector<49x8xf32>
    %cst_13 = arith.constant dense<0.000000e+00> : vector<8xf32>
    %22 = vector.multi_reduction <add>, %21, %cst_13 [0] : vector<49x8xf32> to vector<8xf32>
    %23 = vector.shape_cast %22 : vector<8xf32> to vector<1x8xf32>
    %cst_14 = arith.constant 4.900000e+01 : f32
    %24 = vector.broadcast %cst_14 : f32 to vector<1x8xf32>
    %25 = arith.divf %23, %24 : vector<1x8xf32>
    %cst_15 = arith.constant dense<0xFF800000> : vector<8xf32>
    %26 = vector.multi_reduction <maximumf>, %21, %cst_15 [0] : vector<49x8xf32> to vector<8xf32>
    %27 = vector.shape_cast %26 : vector<8xf32> to vector<1x8xf32>
    %c1 = arith.constant 1 : index
    %c0_16 = arith.constant 0 : index
    %c0_17 = arith.constant 0 : index
    %28 = vector.load %arg0[%c1, %c0_16, %c0_17] : memref<2x49x16xf32, #tpu.memory_space<vmem>>, vector<1x49x16xf32>
    %29 = vector.shape_cast %28 : vector<1x49x16xf32> to vector<49x16xf32>
    %30 = vector.extract_strided_slice %29 {offsets = [0, 0], sizes = [49, 8], strides = [1, 1]} : vector<49x16xf32> to vector<49x8xf32>
    %31 = vector.extract_strided_slice %29 {offsets = [0, 8], sizes = [49, 8], strides = [1, 1]} : vector<49x16xf32> to vector<49x8xf32>
    %cst_18 = arith.constant dense<0.000000e+00> : vector<49x8xf32>
    %32 = tpu.matmul %29, %0, %cst_18 {dimension_numbers = #tpu.dot_dimension_numbers<[1], [0], [0], [1], [0, 0, 1, 1], [], []>} : vector<49x16xf32>, vector<16x8xf32>, vector<49x8xf32> -> vector<49x8xf32>
    %33 = vector.broadcast %1 : vector<1x8xf32> to vector<49x8xf32>
    %34 = arith.addf %32, %33 : vector<49x8xf32>
    %cst_19 = arith.constant 0.000000e+00 : f32
    %35 = vector.broadcast %cst_19 : f32 to vector<49x8xf32>
    %36 = arith.maximumf %34, %35 : vector<49x8xf32>
    %cst_20 = arith.constant dense<0.000000e+00> : vector<49x8xf32>
    %37 = tpu.matmul %36, %2, %cst_20 {dimension_numbers = #tpu.dot_dimension_numbers<[1], [0], [0], [1], [0, 0, 1, 1], [], []>} : vector<49x8xf32>, vector<8x8xf32>, vector<49x8xf32> -> vector<49x8xf32>
    %38 = vector.broadcast %3 : vector<1x8xf32> to vector<49x8xf32>
    %39 = arith.addf %37, %38 : vector<49x8xf32>
    %40 = math.tanh %39 : vector<49x8xf32>
    %41 = arith.mulf %30, %40 : vector<49x8xf32>
    %cst_21 = arith.constant 1.000000e+00 : f32
    %42 = vector.broadcast %cst_21 : f32 to vector<49x8xf32>
    %43 = arith.subf %42, %40 : vector<49x8xf32>
    %44 = arith.mulf %31, %43 : vector<49x8xf32>
    %45 = arith.addf %41, %44 : vector<49x8xf32>
    %cst_22 = arith.constant dense<0.000000e+00> : vector<8xf32>
    %46 = vector.multi_reduction <add>, %45, %cst_22 [0] : vector<49x8xf32> to vector<8xf32>
    %47 = vector.shape_cast %46 : vector<8xf32> to vector<1x8xf32>
    %cst_23 = arith.constant 4.900000e+01 : f32
    %48 = vector.broadcast %cst_23 : f32 to vector<1x8xf32>
    %49 = arith.divf %47, %48 : vector<1x8xf32>
    %cst_24 = arith.constant dense<0xFF800000> : vector<8xf32>
    %50 = vector.multi_reduction <maximumf>, %45, %cst_24 [0] : vector<49x8xf32> to vector<8xf32>
    %51 = vector.shape_cast %50 : vector<8xf32> to vector<1x8xf32>
    %52 = tpu.concatenate %25, %27, %49, %51 in 0 : vector<1x8xf32>, vector<1x8xf32>, vector<1x8xf32>, vector<1x8xf32> -> vector<4x8xf32>
    %c0_25 = arith.constant 0 : index
    %c0_26 = arith.constant 0 : index
    %53 = vector.load %arg5[%c0_25, %c0_26] : memref<8x4xf32, #tpu.memory_space<vmem>>, vector<8x4xf32>
    %cst_27 = arith.constant dense<0.000000e+00> : vector<4x4xf32>
    %54 = tpu.matmul %52, %53, %cst_27 {dimension_numbers = #tpu.dot_dimension_numbers<[1], [0], [0], [1], [0, 0, 1, 1], [], []>} : vector<4x8xf32>, vector<8x4xf32>, vector<4x4xf32> -> vector<4x4xf32>
    %cst_28 = arith.constant 0.000000e+00 : f32
    %55 = vector.broadcast %cst_28 : f32 to vector<4x4xf32>
    %56 = arith.maximumf %54, %55 : vector<4x4xf32>
    %c0_29 = arith.constant 0 : index
    %c0_30 = arith.constant 0 : index
    %57 = vector.load %arg6[%c0_29, %c0_30] : memref<4x8xf32, #tpu.memory_space<vmem>>, vector<4x8xf32>
    %cst_31 = arith.constant dense<0.000000e+00> : vector<4x8xf32>
    %58 = tpu.matmul %56, %57, %cst_31 {dimension_numbers = #tpu.dot_dimension_numbers<[1], [0], [0], [1], [0, 0, 1, 1], [], []>} : vector<4x4xf32>, vector<4x8xf32>, vector<4x8xf32> -> vector<4x8xf32>
    %59 = tpu.iota {dimensions = array<i32: 0>} : vector<49x1xi32>
    %c7_i32 = arith.constant 7 : i32
    %c0_i32 = arith.constant 0 : i32
    %60 = arith.cmpi eq, %c7_i32, %c0_i32 : i32
    %c1_i32 = arith.constant 1 : i32
    %61 = arith.select %60, %c1_i32, %c7_i32 : i32
    %62 = vector.broadcast %61 : i32 to vector<49x1xi32>
    %63 = arith.remsi %59, %62 : vector<49x1xi32>
    %c0_i32_32 = arith.constant 0 : i32
    %64 = vector.broadcast %c0_i32_32 : i32 to vector<49x1xi32>
    %65 = arith.cmpi ne, %63, %64 : vector<49x1xi32>
    %c0_i32_33 = arith.constant 0 : i32
    %66 = vector.broadcast %c0_i32_33 : i32 to vector<49x1xi32>
    %67 = arith.cmpi slt, %63, %66 : vector<49x1xi32>
    %c0_i32_34 = arith.constant 0 : i32
    %68 = arith.cmpi slt, %61, %c0_i32_34 : i32
    %69 = vector.broadcast %68 : i1 to vector<49x1xi1>
    %70 = vector.broadcast %69 : vector<49x1xi1> to vector<49x1xi1>
    %71 = arith.xori %67, %70 : vector<49x1xi1>
    %72 = arith.andi %71, %65 : vector<49x1xi1>
    %73 = vector.broadcast %61 : i32 to vector<49x1xi32>
    %74 = arith.addi %63, %73 : vector<49x1xi32>
    %75 = arith.select %72, %74, %63 : vector<49x1xi1>, vector<49x1xi32>
    %c1_i32_35 = arith.constant 1 : i32
    %76 = vector.broadcast %c1_i32_35 : i32 to vector<49x1xi32>
    %77 = arith.cmpi sge, %75, %76 : vector<49x1xi32>
    %78 = arith.extui %77 : vector<49x1xi1> to vector<49x1xi32>
    %79 = arith.sitofp %78 : vector<49x1xi32> to vector<49x1xf32>
    %cst_36 = arith.constant 1.000000e+00 : f32
    %80 = vector.broadcast %cst_36 : f32 to vector<49x1xf32>
    %c5_i32 = arith.constant 5 : i32
    %81 = vector.broadcast %c5_i32 : i32 to vector<49x1xi32>
    %82 = arith.cmpi sle, %75, %81 : vector<49x1xi32>
    %83 = arith.extui %82 : vector<49x1xi1> to vector<49x1xi32>
    %84 = arith.sitofp %83 : vector<49x1xi32> to vector<49x1xf32>
    %cst_37 = arith.constant 0.000000e+00 : f32
    %85 = vector.broadcast %cst_37 : f32 to vector<8x1xf32>
    %86 = vector.extract_strided_slice %58 {offsets = [0, 0], sizes = [1, 8], strides = [1, 1]} : vector<4x8xf32> to vector<1x8xf32>
    %87 = vector.extract_strided_slice %58 {offsets = [1, 0], sizes = [1, 8], strides = [1, 1]} : vector<4x8xf32> to vector<1x8xf32>
    %88 = arith.addf %86, %87 : vector<1x8xf32>
    %89 = arith.negf %88 : vector<1x8xf32>
    %90 = math.exp %89 : vector<1x8xf32>
    %cst_38 = arith.constant 1.000000e+00 : f32
    %91 = vector.broadcast %cst_38 : f32 to vector<1x8xf32>
    %92 = arith.addf %91, %90 : vector<1x8xf32>
    %93 = arith.divf %91, %92 : vector<1x8xf32>
    %94 = vector.broadcast %93 : vector<1x8xf32> to vector<49x8xf32>
    %95 = arith.mulf %21, %94 : vector<49x8xf32>
    %cst_39 = arith.constant dense<0.000000e+00> : vector<49xf32>
    %96 = vector.multi_reduction <add>, %95, %cst_39 [1] : vector<49x8xf32> to vector<49xf32>
    %97 = vector.shape_cast %96 : vector<49xf32> to vector<49x1xf32>
    %cst_40 = arith.constant 8.000000e+00 : f32
    %98 = vector.broadcast %cst_40 : f32 to vector<49x1xf32>
    %99 = arith.divf %97, %98 : vector<49x1xf32>
    %cst_41 = arith.constant dense<0xFF800000> : vector<49xf32>
    %100 = vector.multi_reduction <maximumf>, %95, %cst_41 [1] : vector<49x8xf32> to vector<49xf32>
    %101 = vector.shape_cast %100 : vector<49xf32> to vector<49x1xf32>
    %102 = tpu.concatenate %85, %99, %85 in 0 : vector<8x1xf32>, vector<49x1xf32>, vector<8x1xf32> -> vector<65x1xf32>
    %103 = tpu.concatenate %85, %101, %85 in 0 : vector<8x1xf32>, vector<49x1xf32>, vector<8x1xf32> -> vector<65x1xf32>
    %cst_42 = arith.constant 0.000000e+00 : f32
    %104 = vector.broadcast %cst_42 : f32 to vector<49x1xf32>
    %c0_43 = arith.constant 0 : index
    %105 = memref.load %arg7[%c0_43] : memref<18xf32, #tpu.memory_space<smem>>
    %c9 = arith.constant 9 : index
    %106 = memref.load %arg7[%c9] : memref<18xf32, #tpu.memory_space<smem>>
    %107 = vector.extract_strided_slice %102 {offsets = [0, 0], sizes = [49, 1], strides = [1, 1]} : vector<65x1xf32> to vector<49x1xf32>
    %108 = vector.broadcast %105 : f32 to vector<49x1xf32>
    %109 = arith.mulf %108, %107 : vector<49x1xf32>
    %110 = vector.extract_strided_slice %103 {offsets = [0, 0], sizes = [49, 1], strides = [1, 1]} : vector<65x1xf32> to vector<49x1xf32>
    %111 = vector.broadcast %106 : f32 to vector<49x1xf32>
    %112 = arith.mulf %111, %110 : vector<49x1xf32>
    %113 = arith.addf %109, %112 : vector<49x1xf32>
    %114 = arith.mulf %79, %113 : vector<49x1xf32>
    %115 = arith.addf %104, %114 : vector<49x1xf32>
    %c1_44 = arith.constant 1 : index
    %116 = memref.load %arg7[%c1_44] : memref<18xf32, #tpu.memory_space<smem>>
    %c10 = arith.constant 10 : index
    %117 = memref.load %arg7[%c10] : memref<18xf32, #tpu.memory_space<smem>>
    %118 = vector.extract_strided_slice %102 {offsets = [1, 0], sizes = [49, 1], strides = [1, 1]} : vector<65x1xf32> to vector<49x1xf32>
    %119 = vector.broadcast %116 : f32 to vector<49x1xf32>
    %120 = arith.mulf %119, %118 : vector<49x1xf32>
    %121 = vector.extract_strided_slice %103 {offsets = [1, 0], sizes = [49, 1], strides = [1, 1]} : vector<65x1xf32> to vector<49x1xf32>
    %122 = vector.broadcast %117 : f32 to vector<49x1xf32>
    %123 = arith.mulf %122, %121 : vector<49x1xf32>
    %124 = arith.addf %120, %123 : vector<49x1xf32>
    %125 = arith.mulf %80, %124 : vector<49x1xf32>
    %126 = arith.addf %115, %125 : vector<49x1xf32>
    %c2 = arith.constant 2 : index
    %127 = memref.load %arg7[%c2] : memref<18xf32, #tpu.memory_space<smem>>
    %c11 = arith.constant 11 : index
    %128 = memref.load %arg7[%c11] : memref<18xf32, #tpu.memory_space<smem>>
    %129 = vector.extract_strided_slice %102 {offsets = [2, 0], sizes = [49, 1], strides = [1, 1]} : vector<65x1xf32> to vector<49x1xf32>
    %130 = vector.broadcast %127 : f32 to vector<49x1xf32>
    %131 = arith.mulf %130, %129 : vector<49x1xf32>
    %132 = vector.extract_strided_slice %103 {offsets = [2, 0], sizes = [49, 1], strides = [1, 1]} : vector<65x1xf32> to vector<49x1xf32>
    %133 = vector.broadcast %128 : f32 to vector<49x1xf32>
    %134 = arith.mulf %133, %132 : vector<49x1xf32>
    %135 = arith.addf %131, %134 : vector<49x1xf32>
    %136 = arith.mulf %84, %135 : vector<49x1xf32>
    %137 = arith.addf %126, %136 : vector<49x1xf32>
    %c3 = arith.constant 3 : index
    %138 = memref.load %arg7[%c3] : memref<18xf32, #tpu.memory_space<smem>>
    %c12 = arith.constant 12 : index
    %139 = memref.load %arg7[%c12] : memref<18xf32, #tpu.memory_space<smem>>
    %140 = vector.extract_strided_slice %102 {offsets = [7, 0], sizes = [49, 1], strides = [1, 1]} : vector<65x1xf32> to vector<49x1xf32>
    %141 = vector.broadcast %138 : f32 to vector<49x1xf32>
    %142 = arith.mulf %141, %140 : vector<49x1xf32>
    %143 = vector.extract_strided_slice %103 {offsets = [7, 0], sizes = [49, 1], strides = [1, 1]} : vector<65x1xf32> to vector<49x1xf32>
    %144 = vector.broadcast %139 : f32 to vector<49x1xf32>
    %145 = arith.mulf %144, %143 : vector<49x1xf32>
    %146 = arith.addf %142, %145 : vector<49x1xf32>
    %147 = arith.mulf %79, %146 : vector<49x1xf32>
    %148 = arith.addf %137, %147 : vector<49x1xf32>
    %c4 = arith.constant 4 : index
    %149 = memref.load %arg7[%c4] : memref<18xf32, #tpu.memory_space<smem>>
    %c13 = arith.constant 13 : index
    %150 = memref.load %arg7[%c13] : memref<18xf32, #tpu.memory_space<smem>>
    %151 = vector.extract_strided_slice %102 {offsets = [8, 0], sizes = [49, 1], strides = [1, 1]} : vector<65x1xf32> to vector<49x1xf32>
    %152 = vector.broadcast %149 : f32 to vector<49x1xf32>
    %153 = arith.mulf %152, %151 : vector<49x1xf32>
    %154 = vector.extract_strided_slice %103 {offsets = [8, 0], sizes = [49, 1], strides = [1, 1]} : vector<65x1xf32> to vector<49x1xf32>
    %155 = vector.broadcast %150 : f32 to vector<49x1xf32>
    %156 = arith.mulf %155, %154 : vector<49x1xf32>
    %157 = arith.addf %153, %156 : vector<49x1xf32>
    %158 = arith.mulf %80, %157 : vector<49x1xf32>
    %159 = arith.addf %148, %158 : vector<49x1xf32>
    %c5 = arith.constant 5 : index
    %160 = memref.load %arg7[%c5] : memref<18xf32, #tpu.memory_space<smem>>
    %c14 = arith.constant 14 : index
    %161 = memref.load %arg7[%c14] : memref<18xf32, #tpu.memory_space<smem>>
    %162 = vector.extract_strided_slice %102 {offsets = [9, 0], sizes = [49, 1], strides = [1, 1]} : vector<65x1xf32> to vector<49x1xf32>
    %163 = vector.broadcast %160 : f32 to vector<49x1xf32>
    %164 = arith.mulf %163, %162 : vector<49x1xf32>
    %165 = vector.extract_strided_slice %103 {offsets = [9, 0], sizes = [49, 1], strides = [1, 1]} : vector<65x1xf32> to vector<49x1xf32>
    %166 = vector.broadcast %161 : f32 to vector<49x1xf32>
    %167 = arith.mulf %166, %165 : vector<49x1xf32>
    %168 = arith.addf %164, %167 : vector<49x1xf32>
    %169 = arith.mulf %84, %168 : vector<49x1xf32>
    %170 = arith.addf %159, %169 : vector<49x1xf32>
    %c6 = arith.constant 6 : index
    %171 = memref.load %arg7[%c6] : memref<18xf32, #tpu.memory_space<smem>>
    %c15 = arith.constant 15 : index
    %172 = memref.load %arg7[%c15] : memref<18xf32, #tpu.memory_space<smem>>
    %173 = vector.extract_strided_slice %102 {offsets = [14, 0], sizes = [49, 1], strides = [1, 1]} : vector<65x1xf32> to vector<49x1xf32>
    %174 = vector.broadcast %171 : f32 to vector<49x1xf32>
    %175 = arith.mulf %174, %173 : vector<49x1xf32>
    %176 = vector.extract_strided_slice %103 {offsets = [14, 0], sizes = [49, 1], strides = [1, 1]} : vector<65x1xf32> to vector<49x1xf32>
    %177 = vector.broadcast %172 : f32 to vector<49x1xf32>
    %178 = arith.mulf %177, %176 : vector<49x1xf32>
    %179 = arith.addf %175, %178 : vector<49x1xf32>
    %180 = arith.mulf %79, %179 : vector<49x1xf32>
    %181 = arith.addf %170, %180 : vector<49x1xf32>
    %c7 = arith.constant 7 : index
    %182 = memref.load %arg7[%c7] : memref<18xf32, #tpu.memory_space<smem>>
    %c16 = arith.constant 16 : index
    %183 = memref.load %arg7[%c16] : memref<18xf32, #tpu.memory_space<smem>>
    %184 = vector.extract_strided_slice %102 {offsets = [15, 0], sizes = [49, 1], strides = [1, 1]} : vector<65x1xf32> to vector<49x1xf32>
    %185 = vector.broadcast %182 : f32 to vector<49x1xf32>
    %186 = arith.mulf %185, %184 : vector<49x1xf32>
    %187 = vector.extract_strided_slice %103 {offsets = [15, 0], sizes = [49, 1], strides = [1, 1]} : vector<65x1xf32> to vector<49x1xf32>
    %188 = vector.broadcast %183 : f32 to vector<49x1xf32>
    %189 = arith.mulf %188, %187 : vector<49x1xf32>
    %190 = arith.addf %186, %189 : vector<49x1xf32>
    %191 = arith.mulf %80, %190 : vector<49x1xf32>
    %192 = arith.addf %181, %191 : vector<49x1xf32>
    %c8 = arith.constant 8 : index
    %193 = memref.load %arg7[%c8] : memref<18xf32, #tpu.memory_space<smem>>
    %c17 = arith.constant 17 : index
    %194 = memref.load %arg7[%c17] : memref<18xf32, #tpu.memory_space<smem>>
    %195 = vector.extract_strided_slice %102 {offsets = [16, 0], sizes = [49, 1], strides = [1, 1]} : vector<65x1xf32> to vector<49x1xf32>
    %196 = vector.broadcast %193 : f32 to vector<49x1xf32>
    %197 = arith.mulf %196, %195 : vector<49x1xf32>
    %198 = vector.extract_strided_slice %103 {offsets = [16, 0], sizes = [49, 1], strides = [1, 1]} : vector<65x1xf32> to vector<49x1xf32>
    %199 = vector.broadcast %194 : f32 to vector<49x1xf32>
    %200 = arith.mulf %199, %198 : vector<49x1xf32>
    %201 = arith.addf %197, %200 : vector<49x1xf32>
    %202 = arith.mulf %84, %201 : vector<49x1xf32>
    %203 = arith.addf %192, %202 : vector<49x1xf32>
    %204 = arith.negf %203 : vector<49x1xf32>
    %205 = math.exp %204 : vector<49x1xf32>
    %cst_45 = arith.constant 1.000000e+00 : f32
    %206 = vector.broadcast %cst_45 : f32 to vector<49x1xf32>
    %207 = arith.addf %206, %205 : vector<49x1xf32>
    %208 = arith.divf %206, %207 : vector<49x1xf32>
    %209 = vector.broadcast %208 : vector<49x1xf32> to vector<49x8xf32>
    %210 = arith.mulf %95, %209 : vector<49x8xf32>
    %cst_46 = arith.constant dense<0xFF800000> : vector<8xf32>
    %211 = vector.multi_reduction <maximumf>, %210, %cst_46 [0] : vector<49x8xf32> to vector<8xf32>
    %212 = vector.shape_cast %211 : vector<8xf32> to vector<1x8xf32>
    %213 = vector.extract_strided_slice %58 {offsets = [2, 0], sizes = [1, 8], strides = [1, 1]} : vector<4x8xf32> to vector<1x8xf32>
    %214 = vector.extract_strided_slice %58 {offsets = [3, 0], sizes = [1, 8], strides = [1, 1]} : vector<4x8xf32> to vector<1x8xf32>
    %215 = arith.addf %213, %214 : vector<1x8xf32>
    %216 = arith.negf %215 : vector<1x8xf32>
    %217 = math.exp %216 : vector<1x8xf32>
    %cst_47 = arith.constant 1.000000e+00 : f32
    %218 = vector.broadcast %cst_47 : f32 to vector<1x8xf32>
    %219 = arith.addf %218, %217 : vector<1x8xf32>
    %220 = arith.divf %218, %219 : vector<1x8xf32>
    %221 = vector.broadcast %220 : vector<1x8xf32> to vector<49x8xf32>
    %222 = arith.mulf %45, %221 : vector<49x8xf32>
    %cst_48 = arith.constant dense<0.000000e+00> : vector<49xf32>
    %223 = vector.multi_reduction <add>, %222, %cst_48 [1] : vector<49x8xf32> to vector<49xf32>
    %224 = vector.shape_cast %223 : vector<49xf32> to vector<49x1xf32>
    %cst_49 = arith.constant 8.000000e+00 : f32
    %225 = vector.broadcast %cst_49 : f32 to vector<49x1xf32>
    %226 = arith.divf %224, %225 : vector<49x1xf32>
    %cst_50 = arith.constant dense<0xFF800000> : vector<49xf32>
    %227 = vector.multi_reduction <maximumf>, %222, %cst_50 [1] : vector<49x8xf32> to vector<49xf32>
    %228 = vector.shape_cast %227 : vector<49xf32> to vector<49x1xf32>
    %229 = tpu.concatenate %85, %226, %85 in 0 : vector<8x1xf32>, vector<49x1xf32>, vector<8x1xf32> -> vector<65x1xf32>
    %230 = tpu.concatenate %85, %228, %85 in 0 : vector<8x1xf32>, vector<49x1xf32>, vector<8x1xf32> -> vector<65x1xf32>
    %cst_51 = arith.constant 0.000000e+00 : f32
    %231 = vector.broadcast %cst_51 : f32 to vector<49x1xf32>
    %c0_52 = arith.constant 0 : index
    %232 = memref.load %arg7[%c0_52] : memref<18xf32, #tpu.memory_space<smem>>
    %c9_53 = arith.constant 9 : index
    %233 = memref.load %arg7[%c9_53] : memref<18xf32, #tpu.memory_space<smem>>
    %234 = vector.extract_strided_slice %229 {offsets = [0, 0], sizes = [49, 1], strides = [1, 1]} : vector<65x1xf32> to vector<49x1xf32>
    %235 = vector.broadcast %232 : f32 to vector<49x1xf32>
    %236 = arith.mulf %235, %234 : vector<49x1xf32>
    %237 = vector.extract_strided_slice %230 {offsets = [0, 0], sizes = [49, 1], strides = [1, 1]} : vector<65x1xf32> to vector<49x1xf32>
    %238 = vector.broadcast %233 : f32 to vector<49x1xf32>
    %239 = arith.mulf %238, %237 : vector<49x1xf32>
    %240 = arith.addf %236, %239 : vector<49x1xf32>
    %241 = arith.mulf %79, %240 : vector<49x1xf32>
    %242 = arith.addf %231, %241 : vector<49x1xf32>
    %c1_54 = arith.constant 1 : index
    %243 = memref.load %arg7[%c1_54] : memref<18xf32, #tpu.memory_space<smem>>
    %c10_55 = arith.constant 10 : index
    %244 = memref.load %arg7[%c10_55] : memref<18xf32, #tpu.memory_space<smem>>
    %245 = vector.extract_strided_slice %229 {offsets = [1, 0], sizes = [49, 1], strides = [1, 1]} : vector<65x1xf32> to vector<49x1xf32>
    %246 = vector.broadcast %243 : f32 to vector<49x1xf32>
    %247 = arith.mulf %246, %245 : vector<49x1xf32>
    %248 = vector.extract_strided_slice %230 {offsets = [1, 0], sizes = [49, 1], strides = [1, 1]} : vector<65x1xf32> to vector<49x1xf32>
    %249 = vector.broadcast %244 : f32 to vector<49x1xf32>
    %250 = arith.mulf %249, %248 : vector<49x1xf32>
    %251 = arith.addf %247, %250 : vector<49x1xf32>
    %252 = arith.mulf %80, %251 : vector<49x1xf32>
    %253 = arith.addf %242, %252 : vector<49x1xf32>
    %c2_56 = arith.constant 2 : index
    %254 = memref.load %arg7[%c2_56] : memref<18xf32, #tpu.memory_space<smem>>
    %c11_57 = arith.constant 11 : index
    %255 = memref.load %arg7[%c11_57] : memref<18xf32, #tpu.memory_space<smem>>
    %256 = vector.extract_strided_slice %229 {offsets = [2, 0], sizes = [49, 1], strides = [1, 1]} : vector<65x1xf32> to vector<49x1xf32>
    %257 = vector.broadcast %254 : f32 to vector<49x1xf32>
    %258 = arith.mulf %257, %256 : vector<49x1xf32>
    %259 = vector.extract_strided_slice %230 {offsets = [2, 0], sizes = [49, 1], strides = [1, 1]} : vector<65x1xf32> to vector<49x1xf32>
    %260 = vector.broadcast %255 : f32 to vector<49x1xf32>
    %261 = arith.mulf %260, %259 : vector<49x1xf32>
    %262 = arith.addf %258, %261 : vector<49x1xf32>
    %263 = arith.mulf %84, %262 : vector<49x1xf32>
    %264 = arith.addf %253, %263 : vector<49x1xf32>
    %c3_58 = arith.constant 3 : index
    %265 = memref.load %arg7[%c3_58] : memref<18xf32, #tpu.memory_space<smem>>
    %c12_59 = arith.constant 12 : index
    %266 = memref.load %arg7[%c12_59] : memref<18xf32, #tpu.memory_space<smem>>
    %267 = vector.extract_strided_slice %229 {offsets = [7, 0], sizes = [49, 1], strides = [1, 1]} : vector<65x1xf32> to vector<49x1xf32>
    %268 = vector.broadcast %265 : f32 to vector<49x1xf32>
    %269 = arith.mulf %268, %267 : vector<49x1xf32>
    %270 = vector.extract_strided_slice %230 {offsets = [7, 0], sizes = [49, 1], strides = [1, 1]} : vector<65x1xf32> to vector<49x1xf32>
    %271 = vector.broadcast %266 : f32 to vector<49x1xf32>
    %272 = arith.mulf %271, %270 : vector<49x1xf32>
    %273 = arith.addf %269, %272 : vector<49x1xf32>
    %274 = arith.mulf %79, %273 : vector<49x1xf32>
    %275 = arith.addf %264, %274 : vector<49x1xf32>
    %c4_60 = arith.constant 4 : index
    %276 = memref.load %arg7[%c4_60] : memref<18xf32, #tpu.memory_space<smem>>
    %c13_61 = arith.constant 13 : index
    %277 = memref.load %arg7[%c13_61] : memref<18xf32, #tpu.memory_space<smem>>
    %278 = vector.extract_strided_slice %229 {offsets = [8, 0], sizes = [49, 1], strides = [1, 1]} : vector<65x1xf32> to vector<49x1xf32>
    %279 = vector.broadcast %276 : f32 to vector<49x1xf32>
    %280 = arith.mulf %279, %278 : vector<49x1xf32>
    %281 = vector.extract_strided_slice %230 {offsets = [8, 0], sizes = [49, 1], strides = [1, 1]} : vector<65x1xf32> to vector<49x1xf32>
    %282 = vector.broadcast %277 : f32 to vector<49x1xf32>
    %283 = arith.mulf %282, %281 : vector<49x1xf32>
    %284 = arith.addf %280, %283 : vector<49x1xf32>
    %285 = arith.mulf %80, %284 : vector<49x1xf32>
    %286 = arith.addf %275, %285 : vector<49x1xf32>
    %c5_62 = arith.constant 5 : index
    %287 = memref.load %arg7[%c5_62] : memref<18xf32, #tpu.memory_space<smem>>
    %c14_63 = arith.constant 14 : index
    %288 = memref.load %arg7[%c14_63] : memref<18xf32, #tpu.memory_space<smem>>
    %289 = vector.extract_strided_slice %229 {offsets = [9, 0], sizes = [49, 1], strides = [1, 1]} : vector<65x1xf32> to vector<49x1xf32>
    %290 = vector.broadcast %287 : f32 to vector<49x1xf32>
    %291 = arith.mulf %290, %289 : vector<49x1xf32>
    %292 = vector.extract_strided_slice %230 {offsets = [9, 0], sizes = [49, 1], strides = [1, 1]} : vector<65x1xf32> to vector<49x1xf32>
    %293 = vector.broadcast %288 : f32 to vector<49x1xf32>
    %294 = arith.mulf %293, %292 : vector<49x1xf32>
    %295 = arith.addf %291, %294 : vector<49x1xf32>
    %296 = arith.mulf %84, %295 : vector<49x1xf32>
    %297 = arith.addf %286, %296 : vector<49x1xf32>
    %c6_64 = arith.constant 6 : index
    %298 = memref.load %arg7[%c6_64] : memref<18xf32, #tpu.memory_space<smem>>
    %c15_65 = arith.constant 15 : index
    %299 = memref.load %arg7[%c15_65] : memref<18xf32, #tpu.memory_space<smem>>
    %300 = vector.extract_strided_slice %229 {offsets = [14, 0], sizes = [49, 1], strides = [1, 1]} : vector<65x1xf32> to vector<49x1xf32>
    %301 = vector.broadcast %298 : f32 to vector<49x1xf32>
    %302 = arith.mulf %301, %300 : vector<49x1xf32>
    %303 = vector.extract_strided_slice %230 {offsets = [14, 0], sizes = [49, 1], strides = [1, 1]} : vector<65x1xf32> to vector<49x1xf32>
    %304 = vector.broadcast %299 : f32 to vector<49x1xf32>
    %305 = arith.mulf %304, %303 : vector<49x1xf32>
    %306 = arith.addf %302, %305 : vector<49x1xf32>
    %307 = arith.mulf %79, %306 : vector<49x1xf32>
    %308 = arith.addf %297, %307 : vector<49x1xf32>
    %c7_66 = arith.constant 7 : index
    %309 = memref.load %arg7[%c7_66] : memref<18xf32, #tpu.memory_space<smem>>
    %c16_67 = arith.constant 16 : index
    %310 = memref.load %arg7[%c16_67] : memref<18xf32, #tpu.memory_space<smem>>
    %311 = vector.extract_strided_slice %229 {offsets = [15, 0], sizes = [49, 1], strides = [1, 1]} : vector<65x1xf32> to vector<49x1xf32>
    %312 = vector.broadcast %309 : f32 to vector<49x1xf32>
    %313 = arith.mulf %312, %311 : vector<49x1xf32>
    %314 = vector.extract_strided_slice %230 {offsets = [15, 0], sizes = [49, 1], strides = [1, 1]} : vector<65x1xf32> to vector<49x1xf32>
    %315 = vector.broadcast %310 : f32 to vector<49x1xf32>
    %316 = arith.mulf %315, %314 : vector<49x1xf32>
    %317 = arith.addf %313, %316 : vector<49x1xf32>
    %318 = arith.mulf %80, %317 : vector<49x1xf32>
    %319 = arith.addf %308, %318 : vector<49x1xf32>
    %c8_68 = arith.constant 8 : index
    %320 = memref.load %arg7[%c8_68] : memref<18xf32, #tpu.memory_space<smem>>
    %c17_69 = arith.constant 17 : index
    %321 = memref.load %arg7[%c17_69] : memref<18xf32, #tpu.memory_space<smem>>
    %322 = vector.extract_strided_slice %229 {offsets = [16, 0], sizes = [49, 1], strides = [1, 1]} : vector<65x1xf32> to vector<49x1xf32>
    %323 = vector.broadcast %320 : f32 to vector<49x1xf32>
    %324 = arith.mulf %323, %322 : vector<49x1xf32>
    %325 = vector.extract_strided_slice %230 {offsets = [16, 0], sizes = [49, 1], strides = [1, 1]} : vector<65x1xf32> to vector<49x1xf32>
    %326 = vector.broadcast %321 : f32 to vector<49x1xf32>
    %327 = arith.mulf %326, %325 : vector<49x1xf32>
    %328 = arith.addf %324, %327 : vector<49x1xf32>
    %329 = arith.mulf %84, %328 : vector<49x1xf32>
    %330 = arith.addf %319, %329 : vector<49x1xf32>
    %331 = arith.negf %330 : vector<49x1xf32>
    %332 = math.exp %331 : vector<49x1xf32>
    %cst_70 = arith.constant 1.000000e+00 : f32
    %333 = vector.broadcast %cst_70 : f32 to vector<49x1xf32>
    %334 = arith.addf %333, %332 : vector<49x1xf32>
    %335 = arith.divf %333, %334 : vector<49x1xf32>
    %336 = vector.broadcast %335 : vector<49x1xf32> to vector<49x8xf32>
    %337 = arith.mulf %222, %336 : vector<49x8xf32>
    %cst_71 = arith.constant dense<0xFF800000> : vector<8xf32>
    %338 = vector.multi_reduction <maximumf>, %337, %cst_71 [0] : vector<49x8xf32> to vector<8xf32>
    %339 = vector.shape_cast %338 : vector<8xf32> to vector<1x8xf32>
    %340 = tpu.concatenate %212, %339 in 0 : vector<1x8xf32>, vector<1x8xf32> -> vector<2x8xf32>
    %c0_72 = arith.constant 0 : index
    %c0_73 = arith.constant 0 : index
    %341 = vector.load %arg8[%c0_72, %c0_73] : memref<8x32xf32, #tpu.memory_space<vmem>>, vector<8x32xf32>
    %cst_74 = arith.constant dense<0.000000e+00> : vector<2x32xf32>
    %342 = tpu.matmul %340, %341, %cst_74 {dimension_numbers = #tpu.dot_dimension_numbers<[1], [0], [0], [1], [0, 0, 1, 1], [], []>} : vector<2x8xf32>, vector<8x32xf32>, vector<2x32xf32> -> vector<2x32xf32>
    %c0_75 = arith.constant 0 : index
    %c0_76 = arith.constant 0 : index
    %343 = vector.load %arg9[%c0_75, %c0_76] : memref<1x32xf32, #tpu.memory_space<vmem>>, vector<1x32xf32>
    %344 = vector.broadcast %343 : vector<1x32xf32> to vector<2x32xf32>
    %345 = arith.addf %342, %344 : vector<2x32xf32>
    %346 = vector.extract_strided_slice %345 {offsets = [0, 0], sizes = [2, 16], strides = [1, 1]} : vector<2x32xf32> to vector<2x16xf32>
    %347 = vector.extract_strided_slice %345 {offsets = [0, 16], sizes = [2, 16], strides = [1, 1]} : vector<2x32xf32> to vector<2x16xf32>
    %348 = arith.negf %346 : vector<2x16xf32>
    %349 = math.exp %348 : vector<2x16xf32>
    %cst_77 = arith.constant 1.000000e+00 : f32
    %350 = vector.broadcast %cst_77 : f32 to vector<2x16xf32>
    %351 = arith.addf %350, %349 : vector<2x16xf32>
    %352 = arith.divf %350, %351 : vector<2x16xf32>
    %353 = arith.mulf %346, %352 : vector<2x16xf32>
    %354 = arith.mulf %353, %347 : vector<2x16xf32>
    %c0_78 = arith.constant 0 : index
    %c0_79 = arith.constant 0 : index
    %355 = vector.load %arg10[%c0_78, %c0_79] : memref<16x8xf32, #tpu.memory_space<vmem>>, vector<16x8xf32>
    %cst_80 = arith.constant dense<0.000000e+00> : vector<2x8xf32>
    %356 = tpu.matmul %354, %355, %cst_80 {dimension_numbers = #tpu.dot_dimension_numbers<[1], [0], [0], [1], [0, 0, 1, 1], [], []>} : vector<2x16xf32>, vector<16x8xf32>, vector<2x8xf32> -> vector<2x8xf32>
    %c0_81 = arith.constant 0 : index
    %c0_82 = arith.constant 0 : index
    %357 = vector.load %arg11[%c0_81, %c0_82] : memref<1x8xf32, #tpu.memory_space<vmem>>, vector<1x8xf32>
    %358 = vector.broadcast %357 : vector<1x8xf32> to vector<2x8xf32>
    %359 = arith.addf %356, %358 : vector<2x8xf32>
    %360 = arith.addf %340, %359 : vector<2x8xf32>
    %cst_83 = arith.constant 0.000000e+00 : f32
    %361 = vector.broadcast %cst_83 : f32 to vector<2x8xf32>
    %362 = arith.maximumf %360, %361 : vector<2x8xf32>
    %c0_84 = arith.constant 0 : index
    %c0_85 = arith.constant 0 : index
    %363 = vector.load %arg12[%c0_84, %c0_85] : memref<8x4xf32, #tpu.memory_space<vmem>>, vector<8x4xf32>
    %cst_86 = arith.constant dense<0.000000e+00> : vector<2x4xf32>
    %364 = tpu.matmul %362, %363, %cst_86 {dimension_numbers = #tpu.dot_dimension_numbers<[1], [0], [0], [1], [0, 0, 1, 1], [], []>} : vector<2x8xf32>, vector<8x4xf32>, vector<2x4xf32> -> vector<2x4xf32>
    %c0_87 = arith.constant 0 : index
    %c0_88 = arith.constant 0 : index
    %365 = vector.load %arg13[%c0_87, %c0_88] : memref<1x4xf32, #tpu.memory_space<vmem>>, vector<1x4xf32>
    %366 = vector.broadcast %365 : vector<1x4xf32> to vector<2x4xf32>
    %367 = arith.addf %364, %366 : vector<2x4xf32>
    %c0_89 = arith.constant 0 : index
    %c0_90 = arith.constant 0 : index
    %368 = vector.load %arg14[%c0_89, %c0_90] : memref<2x4xf32, #tpu.memory_space<vmem>>, vector<2x4xf32>
    tpu.vector_store %arg14[%c0_89, %c0_90], %367 {strides = array<i32>} : memref<2x4xf32, #tpu.memory_space<vmem>>, vector<2x4xf32>,
    return
  }
}

</mosaic_0001>

<bundles_post_ra>
// kernel: head_forward.1
= control target key start
LH: loop header
LB: loop body
LE: loop exit
PB: predicated region body
PF: predicated region fallthrough
CT: control target
= control target key end

     0   :  { %19 = vsyncpa [#allocation4], 0  ;;  %s5277_s0 = inlined_call_operand.vmem [shape: f32[2,49,16], index: 0, kind: input, shape index: {}]   ;;  %s5278_s1 = inlined_call_operand.vmem [shape: f32[16,8], index: 1, kind: input, shape index: {}]   ;;  %s5279_s2 = inlined_call_operand.vmem [shape: f32[1,8], index: 2, kind: input, shape index: {}]   ;;  %s5280_s3 = inlined_call_operand.vmem [shape: f32[8,8], index: 3, kind: input, shape index: {}]   ;;  %s5281_s4 = inlined_call_operand.vmem [shape: f32[1,8], index: 4, kind: input, shape index: {}]   ;;  %s5282_s5 = inlined_call_operand.vmem [shape: f32[8,4], index: 5, kind: input, shape index: {}]   ;;  %s5283_s6 = inlined_call_operand.vmem [shape: f32[4,8], index: 6, kind: input, shape index: {}]   ;;  %s5284_s7 = inlined_call_operand.vmem [shape: f32[18], index: 7, kind: input, shape index: {}]   ;;  %s5285_s8 = inlined_call_operand.vmem [shape: f32[8,32], index: 8, kind: input, shape index: {}]   ;;  %s5286_s9 = inlined_call_operand.vmem [shape: f32[1,32], index: 9, kind: input, shape index: {}]   ;;  %s5287_s10 = inlined_call_operand.vmem [shape: f32[16,8], index: 10, kind: input, shape index: {}]   ;;  %s5288_s11 = inlined_call_operand.vmem [shape: f32[1,8], index: 11, kind: input, shape index: {}]   ;;  %s5289_s12 = inlined_call_operand.vmem [shape: f32[8,4], index: 12, kind: input, shape index: {}]   ;;  %s5290_s13 = inlined_call_operand.vmem [shape: f32[1,4], index: 13, kind: input, shape index: {}]   ;;  %s5291_s14 = inlined_call_operand.hbm [shape: f32[2,4], index: 14, kind: output, shape index: {}]  }
   0x1   :  { %20 = vsyncpa [#allocation3], 0  ;;  %s41_s15 = sshll.u32 %s5284_s7, 4  ;;  %s42_s15 = int_to_ptr.vmem [resolvable:$true] %s41_s15 }
   0x2   :  { %s3118_s16 = scalar_lea.vmem %s42_s15, 16  ;;  %p3123_p1 = scmp.lt.s32.totalorder %s42_s15, %s42_s15 }
   0x3   :  { %p3119_p0 = scmp.ne.s32.totalorder %s42_s15, %s3118_s16  ;;  %p3124_p2 = scmp.lt.s32.totalorder %s3118_s16, %s3118_s16 }
   0x5   :  { %p3125_p3 = por %p3124_p2, %p3123_p1 }
   0x7   :  { %p3126_p4 = pnand %p3125_p3, %p3119_p0 }
   0x9   :  { %3129 = shalt.err (!%p3126_p4)
}
   0xa   :  { %s3154_s17 = smov [#allocation2]  }
   0xb   :  { %44 = dma.vmem_to_smem %s42_s15, 16, %s3154_s17, [#allocation4]  }
   0xc   :  { %3150 = dma.done.wait [#allocation4], 16  }
   0xd   :  { %3151 = vsyncadd [#allocation4], 4294967280 }
   0xe   :  { %60 = sfence }
   0xf   :  { %v62_v0 = vld [vmem:[%s5278_s1 + $0x8] sm:$0xff]  ;;  %v5294_v1 = vmov 0.0   ;;  %v61_v2 = vld [vmem:[%s5278_s1] sm:$0xff]  ;;  %vm3156_vm0 = vmmov 0   ;;  %vm79_vm1 = vcmask 130048   ;;  %v3275_v5 = vld [vmem:[%s5277_s0 + $0x10] sm:$0xff] }
  0x10   :  { %2879 = vmatprep.subr.mxu0 %v5294_v1  ;;  %2883 = vmatprep.mubr.msk.f32.mxu0 %vm3156_vm0, %v5294_v1  ;;  %v3252_v3 = vld [vmem:[%s5277_s0] sm:$0xff]  ;;  %v3266_v4 = vld [vmem:[%s5277_s0 + $0x8] sm:$0xff]  ;;  %v3284_v6 = vld [vmem:[%s5277_s0 + $0x18] sm:$0xff]  ;;  %vm214_vm2 = vcmask 64512   ;;  %vm941_vm3 = vcmask 1043456   ;;  %vm438_vm4 = vcmask 57344  }
  0x11   :  { %2880 = vmatpush3.msra.mxu0 %v62_v0  ;;  %2904 = vmatprep.subr.mxu1 %v5294_v1  ;;  %v3293_v7 = vld [vmem:[%s5277_s0 + $0x20] sm:$0xff]  ;;  %v3302_v8 = vld [vmem:[%s5277_s0 + $0x28] sm:$0xff]  ;;  %v3311_v9 = vld [vmem:[%s5277_s0 + $0x30] sm:$0x1]  ;;  %vm855_vm5 = vcmask 1040384   ;;  %vm857_vm6 = vcmask 1041408  }
  0x12   :  { %2881 = vmatprep.subr.mxu0 %v5294_v1  ;;  %2906 = vmatprep.mubr.msk.f32.mxu1 %vm3156_vm0, %v5294_v1  ;;  %v64_v10 = vld [vmem:[%s5280_s3] sm:$0xff]  ;;  %v3360_v40 = vld [vmem:[%s5277_s0 + $0x38] sm:$0xff]  ;;  %v3378_v42 = vld [vmem:[%s5277_s0 + $0x48] sm:$0xff]  ;;  %vm859_vm7 = vcmask 1042432   ;;  %vm937_vm8 = vcmask 31744   ;;  %s2797_s20 = sld [smem:[#allocation2 + $0x1]] }
  0x13   :  { %2882 = vmatpush3.msra.mxu0 %v61_v2  ;;  %2905 = vmatpush3.msra.mxu1 %v64_v10  ;;  %v3325_v11 = vld [vmem:[%s5279_s2] ss:$0 sm:$0xff]  ;;  %v3387_v43 = vld [vmem:[%s5277_s0 + $0x50] sm:$0xff]  ;;  %v3396_v44 = vld [vmem:[%s5277_s0 + $0x58] sm:$0xff]  ;;  %s3802_s2 = sld [smem:[#allocation2 + $0x2]] }
  0x14   :  { %2884 = vmatmul.mubr.msk.f32.vlgmr.msra.gmra.mxu0 %vm79_vm1, %v3252_v3  ;;  %2952 = vmatprep.subr.mxu0 %v5294_v1  ;;  %v3369_v41 = vld [vmem:[%s5277_s0 + $0x40] sm:$0xff]  ;;  %v3414_v46 = vld [vmem:[%s5277_s0 + $0x68] sm:$0x1]  ;;  %s2798_s3 = sld [smem:[#allocation2 + $0xa]] }
  0x15   :  { %2886 = vmatprep.mubr.msk.f32.mxu0 %vm3156_vm0, %v5294_v1  ;;  %2953 = vmatpush3.msra.mxu0 %v64_v10  ;;  %v3405_v45 = vld [vmem:[%s5277_s0 + $0x60] sm:$0xff]  ;;  %s3157_s0 = smov 8   ;;  %s3804_s21 = sld [smem:[#allocation2 + $0x3]] }
  0x16   :  { %2927 = vmatprep.subr.mxu1 %v5294_v1  ;;  %2980 = vmatprep.subr.mxu0 %v5294_v1  ;;  %v3423_v47 = vld [vmem:[%s5281_s4] ss:$0 sm:$0xff]  ;;  %s3158_s4 = smov 120   ;;  %s3806_s22 = sld [smem:[#allocation2 + $0x4]] }
  0x17   :  { %s2800_s1 = sld [smem:[#allocation2 + $0xb]] }
  0x18   :  { %2887 = vmatmul.mubr.msk.f32.gmra.mxu0 %vm79_vm1, %v3266_v4  ;;  %s3808_s23 = sld [smem:[#allocation2 + $0x5]] }
  0x19   :  { %2889 = vmatprep.mubr.msk.f32.mxu0 %vm3156_vm0, %v5294_v1  ;;  %s3810_s24 = sld [smem:[#allocation2 + $0x6]] }
  0x1a   :  { %s3812_s25 = sld [smem:[#allocation2 + $0x7]] }
  0x1b   :  { %s3814_s26 = sld [smem:[#allocation2 + $0xc]] }
  0x1c   :  { %2890 = vmatmul.mubr.msk.f32.gmra.mxu0 %vm79_vm1, %v3275_v5  ;;  %s3818_s27 = sld [smem:[#allocation2 + $0x8]] }
  0x1d   :  { %2892 = vmatprep.mubr.msk.f32.mxu0 %vm3156_vm0, %v5294_v1  ;;  %s3820_s28 = sld [smem:[#allocation2 + $0x9]] }
  0x1e   :  { %s3828_s29 = sld [smem:[#allocation2 + $0xd]] }
  0x1f   :  { %s3833_s30 = sld [smem:[#allocation2 + $0xe]] }
  0x20   :  { %2893 = vmatmul.mubr.msk.f32.gmra.mxu0 %vm79_vm1, %v3284_v6  ;;  %s3835_s15 = sld [smem:[#allocation2 + $0x11]] }
  0x21   :  { %2895 = vmatprep.mubr.msk.f32.mxu0 %vm3156_vm0, %v5294_v1  ;;  %s3853_s16 = sld [smem:[#allocation2 + $0xf]] }
  0x22   :  { %s3864_s17 = sld [smem:[#allocation2 + $0x10]] }
  0x24   :  { %2896 = vmatmul.mubr.msk.f32.gmra.mxu0 %vm79_vm1, %v3293_v7 }
  0x25   :  { %2898 = vmatprep.mubr.msk.f32.mxu0 %vm3156_vm0, %v5294_v1 }
  0x28   :  { %2899 = vmatmul.mubr.msk.f32.gmra.mxu0 %vm79_vm1, %v3302_v8 }
  0x29   :  { %2901 = vmatprep.mubr.msk.f32.mxu0 %vm3156_vm0, %v5294_v1 }
  0x2c   :  { %2902 = vmatmul.mubr.msk.f32.gmra.mxu0 %vm79_vm1, %v3311_v9 }
  0x2d   :  { %2954 = vmatprep.mubr.msk.f32.mxu0 %vm3156_vm0, %v5294_v1 }
  0xd4   :  { %v167_v12 = vpop.f32.mrf.mxu0 }
  0xd5   :  { %v168_v13 = vadd.f32 %v3325_v11, %v167_v12 }
  0xd6   :  { %v2885_v14 = vpop.f32.mrf.mxu0 }
  0xd7   :  { %v201_v15 = vmax.f32 %v168_v13, 0.0 }
  0xd8   :  { %v172_v16 = vpop.f32.mrf.mxu0 }
  0xd9   :  { %v173_v17 = vadd.f32 %v3325_v11, %v172_v16  ;;  %2907 = vmatmul.mubr.msk.f32.vlgmr.msra.gmra.mxu1 %vm214_vm2, %v201_v15 }
  0xda   :  { %2928 = vmatpush3.msra.mxu1 %v62_v0  ;;  %v2888_v18 = vpop.f32.mrf.mxu0  ;;  %2909 = vmatprep.mubr.msk.f32.mxu1 %vm3156_vm0, %v5294_v1 }
  0xdb   :  { %v202_v19 = vmax.f32 %v173_v17, 0.0  ;;  %2929 = vmatprep.subr.mxu1 %v5294_v1 }
  0xdc   :  { %v177_v20 = vpop.f32.mrf.mxu0  ;;  %2930 = vmatpush3.msra.mxu1 %v61_v2 }
  0xdd   :  { %v178_v21 = vadd.f32 %v3325_v11, %v177_v20  ;;  %2910 = vmatmul.mubr.msk.f32.gmra.mxu1 %vm214_vm2, %v202_v19  ;;  %2975 = vmatprep.subr.mxu1 %v5294_v1 }
  0xde   :  { %v2891_v22 = vpop.f32.mrf.mxu0  ;;  %2912 = vmatprep.mubr.msk.f32.mxu1 %vm3156_vm0, %v5294_v1 }
  0xdf   :  { %v203_v23 = vmax.f32 %v178_v21, 0.0 }
  0xe0   :  { %v182_v24 = vpop.f32.mrf.mxu0 }
  0xe1   :  { %v183_v25 = vadd.f32 %v3325_v11, %v182_v24  ;;  %2913 = vmatmul.mubr.msk.f32.gmra.mxu1 %vm214_vm2, %v203_v23 }
  0xe2   :  { %v2894_v26 = vpop.f32.mrf.mxu0  ;;  %2915 = vmatprep.mubr.msk.f32.mxu1 %vm3156_vm0, %v5294_v1 }
  0xe3   :  { %v204_v27 = vmax.f32 %v183_v25, 0.0 }
  0xe4   :  { %v187_v28 = vpop.f32.mrf.mxu0 }
  0xe5   :  { %v188_v29 = vadd.f32 %v3325_v11, %v187_v28  ;;  %2916 = vmatmul.mubr.msk.f32.gmra.mxu1 %vm214_vm2, %v204_v27 }
  0xe6   :  { %v2897_v30 = vpop.f32.mrf.mxu0  ;;  %2918 = vmatprep.mubr.msk.f32.mxu1 %vm3156_vm0, %v5294_v1 }
  0xe7   :  { %v205_v31 = vmax.f32 %v188_v29, 0.0 }
  0xe8   :  { %v192_v32 = vpop.f32.mrf.mxu0 }
  0xe9   :  { %v193_v33 = vadd.f32 %v3325_v11, %v192_v32  ;;  %2919 = vmatmul.mubr.msk.f32.gmra.mxu1 %vm214_vm2, %v205_v31 }
  0xea   :  { %v2900_v34 = vpop.f32.mrf.mxu0  ;;  %2921 = vmatprep.mubr.msk.f32.mxu1 %vm3156_vm0, %v5294_v1 }
  0xeb   :  { %v206_v35 = vmax.f32 %v193_v33, 0.0 }
  0xec   :  { %v197_v36 = vpop.f32.mrf.mxu0 }
  0xed   :  { %v198_v37 = vadd.f32 %v3325_v11, %v197_v36  ;;  %2922 = vmatmul.mubr.msk.f32.gmra.mxu1 %vm214_vm2, %v206_v35 }
  0xee   :  { %v2903_v38 = vpop.f32.mrf.mxu0  ;;  %2924 = vmatprep.mubr.msk.f32.mxu1 %vm3156_vm0, %v5294_v1 }
  0xef   :  { %v207_v39 = vmax.f32 %v198_v37, 0.0 }
  0xf1   :  { %2925 = vmatmul.mubr.msk.f32.gmra.mxu1 %vm214_vm2, %v207_v39 }
  0xf2   :  { %2931 = vmatprep.mubr.msk.f32.mxu1 %vm3156_vm0, %v5294_v1 }
  0xf5   :  { %2932 = vmatmul.mubr.msk.f32.vlgmr.msra.gmra.mxu1 %vm79_vm1, %v3360_v40 }
  0xf6   :  { %2934 = vmatprep.mubr.msk.f32.mxu1 %vm3156_vm0, %v5294_v1 }
  0xf9   :  { %2935 = vmatmul.mubr.msk.f32.gmra.mxu1 %vm79_vm1, %v3369_v41 }
  0xfa   :  { %2937 = vmatprep.mubr.msk.f32.mxu1 %vm3156_vm0, %v5294_v1 }
  0xfd   :  { %2938 = vmatmul.mubr.msk.f32.gmra.mxu1 %vm79_vm1, %v3378_v42 }
  0xfe   :  { %2940 = vmatprep.mubr.msk.f32.mxu1 %vm3156_vm0, %v5294_v1 }
 0x101   :  { %2941 = vmatmul.mubr.msk.f32.gmra.mxu1 %vm79_vm1, %v3387_v43 }
 0x102   :  { %2943 = vmatprep.mubr.msk.f32.mxu1 %vm3156_vm0, %v5294_v1 }
 0x105   :  { %2944 = vmatmul.mubr.msk.f32.gmra.mxu1 %vm79_vm1, %v3396_v44 }
 0x106   :  { %2946 = vmatprep.mubr.msk.f32.mxu1 %vm3156_vm0, %v5294_v1 }
 0x109   :  { %2947 = vmatmul.mubr.msk.f32.gmra.mxu1 %vm79_vm1, %v3405_v45 }
 0x10a   :  { %2949 = vmatprep.mubr.msk.f32.mxu1 %vm3156_vm0, %v5294_v1 }
 0x10d   :  { %2950 = vmatmul.mubr.msk.f32.gmra.mxu1 %vm79_vm1, %v3414_v46 }
 0x10e   :  { %2977 = vmatprep.mubr.msk.f32.mxu1 %vm3156_vm0, %v5294_v1 }
 0x199   :  { %v302_v48 = vpop.f32.mrf.mxu1 }
 0x19a   :  { %v303_v49 = vadd.f32 %v3423_v47, %v302_v48 }
 0x19b   :  { %v2908_v50 = vpop.f32.mrf.mxu1 }
 0x19c   :  { %3026 = vtanh.f32 %v303_v49 }
 0x19d   :  { %v307_v51 = vpop.f32.mrf.mxu1 }
 0x19e   :  { %v308_v52 = vadd.f32 %v3423_v47, %v307_v51 }
 0x19f   :  { %v2911_v53 = vpop.f32.mrf.mxu1 }
 0x1a0   :  { %3028 = vtanh.f32 %v308_v52 }
 0x1a1   :  { %v312_v54 = vpop.f32.mrf.mxu1 }
 0x1a2   :  { %v313_v55 = vadd.f32 %v3423_v47, %v312_v54 }
 0x1a3   :  { %v2914_v56 = vpop.f32.mrf.mxu1 }
 0x1a4   :  { %3030 = vtanh.f32 %v313_v55 }
 0x1a5   :  { %v317_v57 = vpop.f32.mrf.mxu1 }
 0x1a6   :  { %v318_v58 = vadd.f32 %v3423_v47, %v317_v57 }
 0x1a7   :  { %v2917_v59 = vpop.f32.mrf.mxu1 }
 0x1a8   :  { %3032 = vtanh.f32 %v318_v58 }
 0x1a9   :  { %v3429_v60 = vpop.eup %3026  ;;  %v322_v61 = vpop.f32.mrf.mxu1 }
 0x1aa   :  { %v323_v62 = vadd.f32 %v3423_v47, %v322_v61  ;;  %v350_v63 = vsub.f32 1.0, %v3429_v60 }
 0x1ab   :  { %v2920_v0 = vpop.f32.mrf.mxu1 }
 0x1ac   :  { %3034 = vtanh.f32 %v323_v62  ;;  %364 = vrot.lane.b32.xlu0 %v350_v63, %s3157_s0 }
 0x1ad   :  { %v3434_v2 = vpop.eup %3028  ;;  %v327_v10 = vpop.f32.mrf.mxu1 }
 0x1ae   :  { %v328_v12 = vadd.f32 %v3423_v47, %v327_v10  ;;  %v351_v13 = vsub.f32 1.0, %v3434_v2 }
 0x1af   :  { %v2923_v14 = vpop.f32.mrf.mxu1 }
 0x1b0   :  { %3036 = vtanh.f32 %v328_v12  ;;  %366 = vrot.lane.b32.xlu0 %v351_v13, %s3157_s0 }
 0x1b1   :  { %v3439_v15 = vpop.eup %3030  ;;  %v332_v16 = vpop.f32.mrf.mxu1 }
 0x1b2   :  { %v333_v17 = vadd.f32 %v3423_v47, %v332_v16  ;;  %v352_v18 = vsub.f32 1.0, %v3439_v15 }
 0x1b3   :  { %v2926_v19 = vpop.f32.mrf.mxu1 }
 0x1b4   :  { %3038 = vtanh.f32 %v333_v17  ;;  %368 = vrot.lane.b32.xlu0 %v352_v18, %s3157_s0 }
 0x1b5   :  { %v3444_v20 = vpop.eup %3032  ;;  %v563_v21 = vpop.f32.mrf.mxu1 }
 0x1b6   :  { %v564_v22 = vadd.f32 %v3325_v11, %v563_v21  ;;  %v353_v23 = vsub.f32 1.0, %v3444_v20 }
 0x1b7   :  { %v2933_v24 = vpop.f32.mrf.mxu1 }
 0x1b8   :  { %v597_v25 = vmax.f32 %v564_v22, 0.0  ;;  %370 = vrot.lane.b32.xlu0 %v353_v23, %s3157_s0 }
 0x1b9   :  { %v3449_v26 = vpop.eup %3034  ;;  %v568_v27 = vpop.f32.mrf.mxu1 }
 0x1ba   :  { %v569_v28 = vadd.f32 %v3325_v11, %v568_v27  ;;  %2955 = vmatmul.mubr.msk.f32.vlgmr.msra.gmra.mxu0 %vm214_vm2, %v597_v25  ;;  %v354_v29 = vsub.f32 1.0, %v3449_v26 }
 0x1bb   :  { %v2936_v30 = vpop.f32.mrf.mxu1  ;;  %2957 = vmatprep.mubr.msk.f32.mxu0 %vm3156_vm0, %v5294_v1 }
 0x1bc   :  { %v598_v31 = vmax.f32 %v569_v28, 0.0  ;;  %372 = vrot.lane.b32.xlu0 %v354_v29, %s3157_s0 }
 0x1bd   :  { %v3457_v32 = vpop.eup %3036  ;;  %v573_v33 = vpop.f32.mrf.mxu1 }
 0x1be   :  { %v574_v34 = vadd.f32 %v3325_v11, %v573_v33  ;;  %2958 = vmatmul.mubr.msk.f32.gmra.mxu0 %vm214_vm2, %v598_v31  ;;  %v355_v35 = vsub.f32 1.0, %v3457_v32 }
 0x1bf   :  { %v2939_v36 = vpop.f32.mrf.mxu1  ;;  %2960 = vmatprep.mubr.msk.f32.mxu0 %vm3156_vm0, %v5294_v1 }
 0x1c0   :  { %v599_v37 = vmax.f32 %v574_v34, 0.0  ;;  %374 = vrot.lane.b32.xlu0 %v355_v35, %s3157_s0 }
 0x1c1   :  { %v3465_v38 = vpop.eup %3038  ;;  %v578_v39 = vpop.f32.mrf.mxu1 }
 0x1c2   :  { %v579_v48 = vadd.f32 %v3325_v11, %v578_v39  ;;  %2961 = vmatmul.mubr.msk.f32.gmra.mxu0 %vm214_vm2, %v599_v37  ;;  %v356_v49 = vsub.f32 1.0, %v3465_v38 }
 0x1c3   :  { %v2942_v50 = vpop.f32.mrf.mxu1  ;;  %2963 = vmatprep.mubr.msk.f32.mxu0 %vm3156_vm0, %v5294_v1 }
 0x1c4   :  { %v600_v51 = vmax.f32 %v579_v48, 0.0  ;;  %376 = vrot.lane.b32.xlu1 %v356_v49, %s3157_s0 }
 0x1c5   :  { %v583_v52 = vpop.f32.mrf.mxu1 }
 0x1c6   :  { %v584_v53 = vadd.f32 %v3325_v11, %v583_v52  ;;  %2964 = vmatmul.mubr.msk.f32.gmra.mxu0 %vm214_vm2, %v600_v51 }
 0x1c7   :  { %v2945_v54 = vpop.f32.mrf.mxu1  ;;  %2966 = vmatprep.mubr.msk.f32.mxu0 %vm3156_vm0, %v5294_v1 }
 0x1c8   :  { %v601_v55 = vmax.f32 %v584_v53, 0.0 }
 0x1c9   :  { %v588_v56 = vpop.f32.mrf.mxu1 }
 0x1ca   :  { %v589_v57 = vadd.f32 %v3325_v11, %v588_v56  ;;  %2967 = vmatmul.mubr.msk.f32.gmra.mxu0 %vm214_vm2, %v601_v55 }
 0x1cb   :  { %v2948_v58 = vpop.f32.mrf.mxu1  ;;  %2969 = vmatprep.mubr.msk.f32.mxu0 %vm3156_vm0, %v5294_v1 }
 0x1cc   :  { %v602_v59 = vmax.f32 %v589_v57, 0.0 }
 0x1cd   :  { %v593_v61 = vpop.f32.mrf.mxu1 }
 0x1ce   :  { %v594_v62 = vadd.f32 %v3325_v11, %v593_v61  ;;  %2970 = vmatmul.mubr.msk.f32.gmra.mxu0 %vm214_vm2, %v602_v59 }
 0x1cf   :  { %v2951_v63 = vpop.f32.mrf.mxu1  ;;  %2972 = vmatprep.mubr.msk.f32.mxu0 %vm3156_vm0, %v5294_v1 }
 0x1d0   :  { %v603_v0 = vmax.f32 %v594_v62, 0.0 }
 0x1d2   :  { %2973 = vmatmul.mubr.msk.f32.gmra.mxu0 %vm214_vm2, %v603_v0 }
 0x1d3   :  { %2982 = vmatprep.mubr.msk.f32.mxu0 %vm3156_vm0, %v5294_v1 }
 0x21e   :  { %v365_v49 = vpop.permute.xlu0 %364 }
 0x21f   :  { %v385_v59 = vmul.f32 %v365_v49, %v3252_v3 }
 0x222   :  { %v367_v54 = vpop.permute.xlu0 %366 }
 0x223   :  { %v386_v63 = vmul.f32 %v367_v54, %v3266_v4  ;;  %v344_v54 = vmul.f32 %v3434_v2, %v3266_v4  ;;  %v346_v4 = vmul.f32 %v3444_v20, %v3284_v6 }
 0x226   :  { %v369_v57 = vpop.permute.xlu0 %368 }
 0x227   :  { %v387_v0 = vmul.f32 %v369_v57, %v3275_v5 }
 0x22a   :  { %v371_v62 = vpop.permute.xlu0 %370 }
 0x27a   :  { %v691_v10 = vpop.f32.mrf.mxu0 }
 0x27b   :  { %v692_v12 = vadd.f32 %v3423_v47, %v691_v10  ;;  %v377_v10 = vpop.permute.xlu1 %376 }
 0x27c   :  { %v2956_v13 = vpop.f32.mrf.mxu0 }
 0x27d   :  { %3040 = vtanh.f32 %v692_v12  ;;  %v388_v12 = vmul.f32 %v371_v62, %v3284_v6  ;;  %v391_v13 = vmul.f32 %v377_v10, %v3311_v9  ;;  %v347_v10 = vmul.f32 %v3449_v26, %v3293_v7 }
 0x27e   :  { %v696_v14 = vpop.f32.mrf.mxu0  ;;  %v348_v26 = vmul.f32 %v3457_v32, %v3302_v8 }
 0x27f   :  { %v697_v11 = vadd.f32 %v3423_v47, %v696_v14  ;;  %v373_v14 = vpop.permute.xlu0 %372 }
 0x280   :  { %v2959_v16 = vpop.f32.mrf.mxu0 }
 0x281   :  { %3042 = vtanh.f32 %v697_v11  ;;  %v389_v11 = vmul.f32 %v373_v14, %v3293_v7  ;;  %v349_v14 = vmul.f32 %v3465_v38, %v3311_v9 }
 0x282   :  { %v701_v17 = vpop.f32.mrf.mxu0 }
 0x283   :  { %v702_v18 = vadd.f32 %v3423_v47, %v701_v17 }
 0x284   :  { %v2962_v19 = vpop.f32.mrf.mxu0 }
 0x285   :  { %3044 = vtanh.f32 %v702_v18  ;;  %v375_v18 = vpop.permute.xlu0 %374 }
 0x286   :  { %v706_v21 = vpop.f32.mrf.mxu0 }
 0x287   :  { %v707_v22 = vadd.f32 %v3423_v47, %v706_v21  ;;  %v390_v21 = vmul.f32 %v375_v18, %v3302_v8 }
 0x288   :  { %v2965_v23 = vpop.f32.mrf.mxu0 }
 0x289   :  { %3046 = vtanh.f32 %v707_v22 }
 0x28a   :  { %v3492_v24 = vpop.eup %3040  ;;  %v711_v25 = vpop.f32.mrf.mxu0 }
 0x28b   :  { %v712_v27 = vadd.f32 %v3423_v47, %v711_v25  ;;  %v739_v28 = vsub.f32 1.0, %v3492_v24 }
 0x28c   :  { %v2968_v29 = vpop.f32.mrf.mxu0 }
 0x28d   :  { %3048 = vtanh.f32 %v712_v27  ;;  %753 = vrot.lane.b32.xlu1 %v739_v28, %s3157_s0  ;;  %v861_v29 = vld [vmem:[%s5282_s5] sm:$0xff] }
 0x28e   :  { %v3497_v30 = vpop.eup %3042  ;;  %v716_v31 = vpop.f32.mrf.mxu0  ;;  %2976 = vmatpush3.msra.mxu1 %v861_v29 }
 0x28f   :  { %v717_v33 = vadd.f32 %v3423_v47, %v716_v31  ;;  %v740_v34 = vsub.f32 1.0, %v3497_v30  ;;  %2985 = vmatprep.subr.mxu1 %v5294_v1 }
 0x290   :  { %v2971_v35 = vpop.f32.mrf.mxu0 }
 0x291   :  { %3050 = vtanh.f32 %v717_v33  ;;  %755 = vrot.lane.b32.xlu1 %v740_v34, %s3157_s0 }
 0x292   :  { %v3502_v36 = vpop.eup %3044  ;;  %v721_v37 = vpop.f32.mrf.mxu0 }
 0x293   :  { %v722_v39 = vadd.f32 %v3423_v47, %v721_v37  ;;  %v741_v48 = vsub.f32 1.0, %v3502_v36 }
 0x294   :  { %v2974_v50 = vpop.f32.mrf.mxu0 }
 0x295   :  { %3052 = vtanh.f32 %v722_v39  ;;  %757 = vrot.lane.b32.xlu1 %v741_v48, %s3157_s0  ;;  %v936_v48 = vld [vmem:[%s5283_s6] sm:$0xf]  ;;  %s3799_s6 = sld [smem:[#allocation2]] }
 0x296   :  { %v3507_v51 = vpop.eup %3046  ;;  %2981 = vmatpush3.msk.msra.mxu0 %vm941_vm3, %v936_v48 }
 0x297   :  { %v742_v52 = vsub.f32 1.0, %v3507_v51  ;;  %2990 = vmatprep.subr.mxu0 %v5294_v1 }
 0x299   :  { %759 = vrot.lane.b32.xlu1 %v742_v52, %s3157_s0 }
 0x29a   :  { %v3511_v53 = vpop.eup %3048 }
 0x29b   :  { %v743_v55 = vsub.f32 1.0, %v3511_v53 }
 0x29d   :  { %761 = vrot.lane.b32.xlu1 %v743_v55, %s3157_s0  ;;  %v343_v55 = vmul.f32 %v3429_v60, %v3252_v3 }
 0x29e   :  { %v3515_v47 = vpop.eup %3050 }
 0x29f   :  { %v744_v56 = vsub.f32 1.0, %v3515_v47 }
 0x2a1   :  { %763 = vrot.lane.b32.xlu0 %v744_v56, %s3157_s0 }
 0x2a2   :  { %v3519_v58 = vpop.eup %3052 }
 0x2a3   :  { %v745_v61 = vsub.f32 1.0, %v3519_v58 }
 0x2a5   :  { %399 = vrot.lane.b32.xlu0 %v385_v59, %s3158_s4  ;;  %765 = vrot.lane.b32.xlu1 %v745_v61, %s3157_s0  ;;  %v345_v61 = vmul.f32 %v3439_v15, %v3275_v5 }
 0x2a9   :  { %403 = vrot.lane.b32.xlu0 %v387_v0, %s3158_s4  ;;  %401 = vrot.lane.b32.xlu1 %v386_v63, %s3158_s4 }
 0x2ad   :  { %405 = vrot.lane.b32.xlu0 %v388_v12, %s3158_s4  ;;  %411 = vrot.lane.b32.xlu1 %v391_v13, %s3158_s4 }
 0x2b1   :  { %407 = vrot.lane.b32.xlu0 %v389_v11, %s3158_s4 }
 0x2ff   :  { %v754_v16 = vpop.permute.xlu1 %753 }
 0x300   :  { %v774_v17 = vmul.f32 %v3360_v40, %v754_v16 }
 0x302   :  { %788 = vrot.lane.b32.xlu0 %v774_v17, %s3158_s4 }
 0x303   :  { %v756_v19 = vpop.permute.xlu1 %755 }
 0x304   :  { %v775_v22 = vmul.f32 %v3369_v41, %v756_v19 }
 0x306   :  { %409 = vrot.lane.b32.xlu0 %v390_v21, %s3158_s4  ;;  %790 = vrot.lane.b32.xlu1 %v775_v22, %s3158_s4 }
 0x307   :  { %v758_v23 = vpop.permute.xlu1 %757 }
 0x308   :  { %v776_v25 = vmul.f32 %v3378_v42, %v758_v23 }
 0x30a   :  { %792 = vrot.lane.b32.xlu1 %v776_v25, %s3158_s4 }
 0x30b   :  { %v760_v27 = vpop.permute.xlu1 %759 }
 0x30c   :  { %v777_v28 = vmul.f32 %v3387_v43, %v760_v27 }
 0x30e   :  { %794 = vrot.lane.b32.xlu1 %v777_v28, %s3158_s4 }
 0x30f   :  { %v762_v31 = vpop.permute.xlu1 %761 }
 0x310   :  { %v778_v33 = vmul.f32 %v3396_v44, %v762_v31 }
 0x312   :  { %796 = vrot.lane.b32.xlu1 %v778_v33, %s3158_s4 }
 0x313   :  { %v764_v34 = vpop.permute.xlu0 %763 }
 0x314   :  { %v779_v35 = vmul.f32 %v3405_v45, %v764_v34  ;;  %v733_v34 = vmul.f32 %v3497_v30, %v3369_v41  ;;  %v735_v30 = vmul.f32 %v3507_v51, %v3387_v43 }
 0x316   :  { %798 = vrot.lane.b32.xlu0 %v779_v35, %s3158_s4 }
 0x317   :  { %v766_v37 = vpop.permute.xlu1 %765  ;;  %v400_v49 = vpop.permute.xlu0 %399 }
 0x318   :  { %v780_v39 = vmul.f32 %v3414_v46, %v766_v37  ;;  %v3565_v59 = vadd.f32 %v400_v49, %v343_v55  ;;  %v732_v37 = vmul.f32 %v3492_v24, %v3360_v40  ;;  %v736_v40 = vmul.f32 %v3511_v53, %v3396_v44 }
 0x319   :  { %v737_v53 = vmul.f32 %v3515_v47, %v3405_v45 }
 0x31a   :  { %800 = vrot.lane.b32.xlu1 %v780_v39, %s3158_s4  ;;  %v427_v63 = vsel %vm214_vm2, %v3565_v59, 0.0  ;;  %v449_v32 = vsel %vm214_vm2, %v3565_v59, -inf }
 0x31b   :  { %v404_v50 = vpop.permute.xlu0 %403  ;;  %v402_v52 = vpop.permute.xlu1 %401 }
 0x31c   :  { %v3563_v56 = vadd.f32 %v402_v52, %v344_v54  ;;  %v3573_v0 = vadd.f32 %v404_v50, %v345_v61  ;;  %v734_v50 = vmul.f32 %v3502_v36, %v3378_v42 }
 0x31e   :  { %v428_v62 = vsel %vm214_vm2, %v3563_v56, 0.0  ;;  %v430_v5 = vsel %vm214_vm2, %v3573_v0, 0.0  ;;  %v450_v22 = vsel %vm214_vm2, %v3563_v56, -inf  ;;  %v451_v25 = vsel %vm214_vm2, %v3573_v0, -inf }
 0x31f   :  { %v406_v57 = vpop.permute.xlu0 %405  ;;  %v429_v3 = vadd.f32 %v428_v62, %v427_v63  ;;  %v412_v15 = vpop.permute.xlu1 %411 }
 0x320   :  { %v3577_v2 = vadd.f32 %v406_v57, %v346_v4  ;;  %v3589_v20 = vadd.f32 %v412_v15, %v349_v14 }
 0x321   :  { %v431_v13 = vadd.f32 %v430_v5, %v429_v3 }
 0x322   :  { %v432_v6 = vsel %vm214_vm2, %v3577_v2, 0.0  ;;  %v457_v9 = vsel %vm438_vm4, %v3589_v20, -inf  ;;  %v439_v35 = vsel %vm438_vm4, %v3589_v20, 0.0  ;;  %v452_v52 = vsel %vm214_vm2, %v3577_v2, -inf }
 0x323   :  { %v408_v60 = vpop.permute.xlu0 %407  ;;  %v433_v16 = vadd.f32 %v432_v6, %v431_v13  ;;  %v458_v31 = vmax.f32 %v451_v25, %v457_v9 }
 0x324   :  { %v3583_v12 = vadd.f32 %v408_v60, %v347_v10 }
 0x325   :  { %v460_v55 = vmax.f32 %v458_v31, %v452_v52 }
 0x326   :  { %v434_v7 = vsel %vm214_vm2, %v3583_v12, 0.0  ;;  %v453_v21 = vsel %vm214_vm2, %v3583_v12, -inf }
 0x327   :  { %v435_v38 = vadd.f32 %v434_v7, %v433_v16  ;;  %v454_v33 = vmax.f32 %v449_v32, %v453_v21 }
 0x374   :  { %v789_v11 = vpop.permute.xlu0 %788 }
 0x375   :  { %v3623_v57 = vadd.f32 %v789_v11, %v732_v37  ;;  %v738_v11 = vmul.f32 %v3519_v58, %v3414_v46 }
 0x377   :  { %v816_v63 = vsel %vm214_vm2, %v3623_v57, 0.0  ;;  %v836_v46 = vsel %vm214_vm2, %v3623_v57, -inf }
 0x378   :  { %v410_v17 = vpop.permute.xlu0 %409  ;;  %v791_v18 = vpop.permute.xlu1 %790 }
 0x379   :  { %v3595_v19 = vadd.f32 %v410_v17, %v348_v26  ;;  %v3617_v49 = vadd.f32 %v791_v18, %v733_v34 }
 0x37b   :  { %v436_v23 = vsel %vm214_vm2, %v3595_v19, 0.0  ;;  %v455_v8 = vsel %vm214_vm2, %v3595_v19, -inf  ;;  %v817_v42 = vsel %vm214_vm2, %v3617_v49, 0.0  ;;  %v837_v17 = vsel %vm214_vm2, %v3617_v49, -inf }
 0x37c   :  { %v437_v27 = vadd.f32 %v436_v23, %v435_v38  ;;  %v456_v28 = vmax.f32 %v450_v22, %v455_v8  ;;  %v793_v29 = vpop.permute.xlu1 %792  ;;  %v818_v43 = vadd.f32 %v817_v42, %v816_v63 }
 0x37d   :  { %v3625_v41 = vadd.f32 %v793_v29, %v734_v50 }
 0x37e   :  { %v440_v39 = vadd.f32 %v439_v35, %v437_v27  ;;  %v459_v48 = vmax.f32 %v454_v33, %v456_v28 }
 0x37f   :  { %v819_v4 = vsel %vm214_vm2, %v3625_v41, 0.0  ;;  %v838_v58 = vsel %vm214_vm2, %v3625_v41, -inf }
 0x380   :  { %v795_v54 = vpop.permute.xlu1 %794  ;;  %v441_v24 = vrot.slane %v440_v39, 4  ;;  %v461_v61 = vmax.f32 %v459_v48, %v460_v55  ;;  %v820_v10 = vadd.f32 %v819_v4, %v818_v43 }
 0x381   :  { %v3633_v36 = vadd.f32 %v795_v54, %v735_v30 }
 0x382   :  { %v442_v51 = vadd.f32 %v441_v24, %v440_v39  ;;  %v462_v60 = vrot.slane %v461_v61, 4 }
 0x383   :  { %v821_v44 = vsel %vm214_vm2, %v3633_v36, 0.0  ;;  %v839_v29 = vsel %vm214_vm2, %v3633_v36, -inf }
 0x384   :  { %v797_v62 = vpop.permute.xlu1 %796  ;;  %v822_v14 = vadd.f32 %v821_v44, %v820_v10  ;;  %v443_v6 = vrot.slane %v442_v51, 2  ;;  %v463_v7 = vmax.f32 %v461_v61, %v462_v60 }
 0x385   :  { %v3639_v3 = vadd.f32 %v797_v62, %v736_v40 }
 0x386   :  { %v444_v22 = vadd.f32 %v443_v6, %v442_v51  ;;  %v464_v23 = vrot.slane %v463_v7, 2 }
 0x387   :  { %v823_v15 = vsel %vm214_vm2, %v3639_v3, 0.0  ;;  %v840_v18 = vsel %vm214_vm2, %v3639_v3, -inf }
 0x388   :  { %v799_v5 = vpop.permute.xlu0 %798  ;;  %v824_v45 = vadd.f32 %v823_v15, %v822_v14  ;;  %v841_v25 = vmax.f32 %v836_v46, %v840_v18  ;;  %v445_v35 = vrot.slane %v444_v22, 1  ;;  %v465_v37 = vmax.f32 %v463_v7, %v464_v23 }
 0x389   :  { %v3647_v13 = vadd.f32 %v799_v5, %v737_v53 }
 0x38a   :  { %v446_v54 = vadd.f32 %v445_v35, %v444_v22  ;;  %v466_v55 = vrot.slane %v465_v37, 1 }
 0x38b   :  { %v825_v26 = vsel %vm214_vm2, %v3647_v13, 0.0  ;;  %v842_v16 = vsel %vm214_vm2, %v3647_v13, -inf }
 0x38c   :  { %v801_v47 = vpop.permute.xlu1 %800  ;;  %v826_v38 = vadd.f32 %v825_v26, %v824_v45  ;;  %v843_v21 = vmax.f32 %v837_v17, %v842_v16  ;;  %v448_v42 = vmul.f32 0.020408163, %v446_v54  ;;  %v467_v62 = vmax.f32 %v465_v37, %v466_v55 }
 0x38d   :  { %v3659_v9 = vadd.f32 %v801_v47, %v738_v11  ;;  %v1015_v17 = vlaneseq }
 0x38e   :  { %v846_v31 = vmax.f32 %v841_v25, %v843_v21  ;;  %v856_v60 = vsel %vm855_vm5, %v448_v42, %v467_v62 }
 0x38f   :  { %v827_v8 = vsel %vm438_vm4, %v3659_v9, 0.0  ;;  %v844_v32 = vsel %vm438_vm4, %v3659_v9, -inf  ;;  %v3678_v18 = vshrl.u32 %v1015_v17, 7 }
 0x390   :  { %v828_v27 = vadd.f32 %v827_v8, %v826_v38  ;;  %v845_v28 = vmax.f32 %v838_v58, %v844_v32 }
 0x391   :  { %5367 = vst [vmem:[#allocation8_spill] sm:$0xff] %v3678_v18  ;;  %v1210_v46 = vsub.s32 0, %v3678_v18  ;;  %v1870_v38 = vsub.s32 2, %v3678_v18 }
 0x392   :  { %v829_v33 = vrot.slane %v828_v27, 4  ;;  %v847_v34 = vmax.f32 %v845_v28, %v839_v29 }
 0x394   :  { %v830_v39 = vadd.f32 %v829_v33, %v828_v27  ;;  %v848_v48 = vmax.f32 %v846_v31, %v847_v34 }
 0x396   :  { %v831_v50 = vrot.slane %v830_v39, 2  ;;  %v849_v52 = vrot.slane %v848_v48, 4 }
 0x398   :  { %v832_v30 = vadd.f32 %v831_v50, %v830_v39  ;;  %v850_v40 = vmax.f32 %v848_v48, %v849_v52 }
 0x39a   :  { %v833_v24 = vrot.slane %v832_v30, 1  ;;  %v851_v61 = vrot.slane %v850_v40, 2 }
 0x39c   :  { %v834_v63 = vadd.f32 %v833_v24, %v832_v30  ;;  %v852_v4 = vmax.f32 %v850_v40, %v851_v61 }
 0x39e   :  { %v835_v43 = vmul.f32 0.020408163, %v834_v63  ;;  %v853_v51 = vrot.slane %v852_v4, 1 }
 0x3a0   :  { %v854_v44 = vmax.f32 %v852_v4, %v853_v51  ;;  %v858_v53 = vsel %vm857_vm6, %v856_v60, %v835_v43 }
 0x3a2   :  { %v860_v10 = vsel %vm859_vm7, %v858_v53, %v854_v44  ;;  %v5292_v44 = vmov 0   ;;  %v1021_v53 = vadd.s32 40, %v3678_v18 }
 0x3a3   :  { %2978 = vmatmul.mubr.msk.f32.vlgmr.msra.gmra.mxu1 %vm214_vm2, %v860_v10  ;;  %3025 = vset.pattern.permute.xlu0 %v5292_v44  ;;  %v1022_v10 = vadd.s32 48, %v3678_v18 }
 0x3a4   :  { %2987 = vmatprep.mubr.msk.f32.mxu1 %vm3156_vm0, %v5294_v1  ;;  %3024 = vset.pattern.permute.xlu1 %v5292_v44 }
 0x463   :  { %v931_v5 = vpop.f32.mrf.mxu1 }
 0x464   :  { %v935_v15 = vmax.f32 %v931_v5, 0.0 }
 0x465   :  { %v2979_v14 = vpop.f32.mrf.mxu1 }
 0x466   :  { %2983 = vmatmul.mubr.msk.f32.vlgmr.msra.gmra.mxu0 %vm937_vm8, %v935_v15  ;;  %v3785_v5 = vmul.u32.u64.low 2454267026, %v1021_v53  ;;  %v3786_v15 = vmul.u32.u64.high 2454267026, %v1021_v53, %v3785_v5 }
 0x467   :  { %2994 = vmatprep.mubr.msk.f32.mxu0 %vm3156_vm0, %v5294_v1 }
 0x468   :  { %vm1099_vm9 = vc.u32 %v3785_v5, 2454267026 }
 0x526   :  { %v1011_v11 = vpop.f32.mrf.mxu0 }
 0x527   :  { %v1199_v6 = vrot.slane %v1011_v11, 1 }
 0x528   :  { %v2984_v7 = vpop.f32.mrf.mxu0 }
 0x529   :  { %v1201_v26 = vadd.f32 %v1199_v6, %v1011_v11  ;;  %v3791_v6 = vmul.u32.u64.low 2454267026, %v1022_v10  ;;  %v3792_v7 = vmul.u32.u64.high 2454267026, %v1022_v10, %v3791_v6 }
 0x52b   :  { %v2795_v16 = vmul.f32 -1.442695, %v1201_v26  ;;  %vm1113_vm11 = vc.u32 %v3791_v6, 2454267026  ;;  %v1100_v26 = vsel %vm1099_vm9, 1, %v5292_v44 }
 0x52d   :  { %3054 = vpow2.f32 %v2795_v16 }
 0x53a   :  { %v3055_v45 = vpop.eup %3054 }
 0x53b   :  { %v1205_v47 = vadd.f32 1.0, %v3055_v45  ;;  %v1114_v45 = vsel %vm1113_vm11, 1, %v5292_v44 }
 0x53d   :  { %3056 = vrcp.f32 %v1205_v47  ;;  %v1101_v47 = vadd.s32 %v3786_v15, %v1100_v26 }
 0x54a   :  { %v3057_v58 = vpop.eup %3056 }
 0x54b   :  { %v1211_v21 = vrot.slane %v3057_v58, %v1210_v46  ;;  %v1871_v8 = vrot.slane %v3057_v58, %v1870_v38  ;;  %v1115_v46 = vadd.s32 %v3792_v7, %v1114_v45  ;;  %v1102_v58 = vshrl.u32 %v1101_v47, 2 }
 0x54c   :  { %v3896_v7 = vstv %s3828_s29  ;;  %v3903_v45 = vstv %s3833_s30 }
 0x54d   :  { %v3683_v22 = vmul.f32 %v1211_v21, %v3563_v56  ;;  %v3686_v23 = vmul.f32 %v1211_v21, %v3565_v59  ;;  %v3693_v27 = vmul.f32 %v1211_v21, %v3583_v12  ;;  %v3696_v28 = vmul.f32 %v1211_v21, %v3573_v0  ;;  %5393 = vst [vmem:[#allocation30_spill] sm:$0xff] %v3896_v7 }
 0x54e   :  { %v3703_v29 = vmul.f32 %v1871_v8, %v3623_v57  ;;  %v3706_v31 = vmul.f32 %v1211_v21, %v3577_v2  ;;  %v3713_v33 = vmul.f32 %v1871_v8, %v3625_v41  ;;  %v3716_v34 = vmul.f32 %v1211_v21, %v3595_v19  ;;  %5395 = vst [vmem:[#allocation32_spill] sm:$0xff] %v3903_v45 }
 0x54f   :  { %5368 = vst [vmem:[#allocation9_spill] sm:$0xff] %v3683_v22  ;;  %5369 = vst [vmem:[#allocation10_spill] sm:$0xff] %v3686_v23  ;;  %v1222_v32 = vsel %vm214_vm2, %v3683_v22, 0.0  ;;  %v1219_v25 = vsel %vm214_vm2, %v3686_v23, 0.0  ;;  %v1231_v56 = vsel %vm214_vm2, %v3693_v27, 0.0  ;;  %v1225_v59 = vsel %vm214_vm2, %v3696_v28, 0.0 }
 0x550   :  { %5370 = vst [vmem:[#allocation11_spill] sm:$0xff] %v3693_v27  ;;  %5371 = vst [vmem:[#allocation12_spill] sm:$0xff] %v3696_v28  ;;  %1223 = vadd.xlane.f32.xlu1 %v1222_v32  ;;  %1220 = vadd.xlane.f32.xlu0 %v1219_v25  ;;  %v1879_v0 = vsel %vm214_vm2, %v3703_v29, 0.0  ;;  %v1228_v12 = vsel %vm214_vm2, %v3706_v31, 0.0  ;;  %v1885_v2 = vsel %vm214_vm2, %v3713_v33, 0.0  ;;  %v1234_v57 = vsel %vm214_vm2, %v3716_v34, 0.0 }
 0x551   :  { %5372 = vst [vmem:[#allocation13_spill] sm:$0xff] %v3703_v29  ;;  %5373 = vst [vmem:[#allocation14_spill] sm:$0xff] %v3706_v31  ;;  %v3723_v35 = vmul.f32 %v1871_v8, %v3639_v3  ;;  %v3726_v37 = vmul.f32 %v1871_v8, %v3617_v49  ;;  %v3733_v39 = vmul.f32 %v1871_v8, %v3633_v36  ;;  %v1248_v3 = vsel %vm214_vm2, %v3686_v23, -inf }
 0x552   :  { %5374 = vst [vmem:[#allocation15_spill] sm:$0xff] %v3713_v33  ;;  %5375 = vst [vmem:[#allocation16_spill] sm:$0xff] %v3716_v34  ;;  %v3740_v48 = vmul.f32 %v1871_v8, %v3647_v13  ;;  %v1254_v50 = vsel %vm214_vm2, %v3696_v28, -inf  ;;  %v1260_v52 = vsel %vm214_vm2, %v3693_v27, -inf  ;;  %v1251_v54 = vsel %vm214_vm2, %v3683_v22, -inf }
 0x553   :  { %5376 = vst [vmem:[#allocation17_spill] sm:$0xff] %v3723_v35  ;;  %5377 = vst [vmem:[#allocation18_spill] sm:$0xff] %v3726_v37  ;;  %v1891_v19 = vsel %vm214_vm2, %v3723_v35, 0.0  ;;  %v1882_v41 = vsel %vm214_vm2, %v3726_v37, 0.0  ;;  %v1888_v49 = vsel %vm214_vm2, %v3733_v39, 0.0  ;;  %v1907_v13 = vsel %vm214_vm2, %v3703_v29, -inf }
 0x554   :  { %1232 = vadd.xlane.f32.xlu1 %v1231_v56  ;;  %1226 = vadd.xlane.f32.xlu0 %v1225_v59  ;;  %5378 = vst [vmem:[#allocation19_spill] sm:$0xff] %v3733_v39  ;;  %5379 = vst [vmem:[#allocation20_spill] sm:$0xff] %v3740_v48  ;;  %v1894_v36 = vsel %vm214_vm2, %v3740_v48, 0.0  ;;  %v1257_v55 = vsel %vm214_vm2, %v3706_v31, -inf  ;;  %v1913_v30 = vsel %vm214_vm2, %v3713_v33, -inf  ;;  %v1263_v40 = vsel %vm214_vm2, %v3716_v34, -inf }
 0x555   :  { %v1919_v24 = vsel %vm214_vm2, %v3723_v35, -inf  ;;  %v1910_v61 = vsel %vm214_vm2, %v3726_v37, -inf  ;;  %v3763_v42 = vmul.f32 %v1211_v21, %v3589_v20  ;;  %v1916_v63 = vsel %vm214_vm2, %v3733_v39, -inf }
 0x556   :  { %v1922_v43 = vsel %vm214_vm2, %v3740_v48, -inf  ;;  %v3774_v51 = vmul.f32 %v1871_v8, %v3659_v9  ;;  %v1020_v9 = vadd.s32 32, %v3678_v18  ;;  %v1116_v21 = vshrl.u32 %v1115_v46, 2 }
 0x557   :  { %5380 = vst [vmem:[#allocation21_spill] sm:$0xff] %v3763_v42  ;;  %v1237_v62 = vsel %vm438_vm4, %v3763_v42, 0.0  ;;  %v1266_v4 = vsel %vm438_vm4, %v3763_v42, -inf  ;;  %v1103_v8 = vmul.u32 7, %v1102_v58  ;;  %v3816_v59 = vstv %s2798_s3 }
 0x558   :  { %1880 = vadd.xlane.f32.xlu1 %v1879_v0  ;;  %1229 = vadd.xlane.f32.xlu0 %v1228_v12  ;;  %5381 = vst [vmem:[#allocation22_spill] sm:$0xff] %v3774_v51  ;;  %v1897_v20 = vsel %vm438_vm4, %v3774_v51, 0.0  ;;  %v1925_v60 = vsel %vm438_vm4, %v3774_v51, -inf  ;;  %v3788_v14 = vmul.u32.u64.low 2454267026, %v1020_v9  ;;  %v3789_v11 = vmul.u32.u64.high 2454267026, %v1020_v9, %v3788_v14 }
 0x559   :  { %v1117_v25 = vmul.u32 7, %v1116_v21  ;;  %v1104_v56 = vsub.s32 %v1021_v53, %v1103_v8  ;;  %v3822_v12 = vstv %s2797_s20  ;;  %v3881_v53 = vstv %s3810_s24  ;;  %s3160_s20 = smov 112  }
 0x55a   :  { %vm1085_vm10 = vc.u32 %v3788_v14, 2454267026  ;;  %5382 = vst [vmem:[#allocation23_spill] sm:$0xff] %v3822_v12  ;;  %v3908_v58 = vstv %s3835_s15 }
 0x55b   :  { %v1086_v16 = vsel %vm1085_vm10, 1, %v5292_v44  ;;  %vm1126_vm12 = vcmp.ne.s32.totalorder %v1104_v56, 0  ;;  %vm1133_vm13 = vcmp.lt.s32.totalorder %v1104_v56, 0  ;;  %v1743_v21 = vmul.f32 0.0, %v3908_v58 }
 0x55c   :  { %1886 = vadd.xlane.f32.xlu1 %v1885_v2  ;;  %1235 = vadd.xlane.f32.xlu0 %v1234_v57  ;;  %v1087_v17 = vadd.s32 %v3789_v11, %v1086_v16  ;;  %v1118_v2 = vsub.s32 %v1022_v10, %v1117_v25  ;;  %v3825_v57 = vadd.s32 8, %v3678_v18  ;;  %vm3855_vm8 = vmand %vm1133_vm13, %vm1126_vm12  ;;  %v3887_v10 = vstv %s3818_s27 }
 0x55d   :  { %v3892_v11 = vstv %s3820_s28 }
 0x55e   :  { %v1088_v38 = vshrl.u32 %v1087_v17, 2  ;;  %5383 = vst [vmem:[#allocation24_spill] sm:$0xff] %v3825_v57  ;;  %vm1127_vm3 = vcmp.ne.s32.totalorder %v1118_v2, 0  ;;  %vm1134_vm7 = vcmp.lt.s32.totalorder %v1118_v2, 0 }
 0x55f   :  { %vm1141_vm10 = vmand %vm1134_vm7, %vm1127_vm3 }
 0x560   :  { %1892 = vadd.xlane.f32.xlu1 %v1891_v19  ;;  %1883 = vadd.xlane.f32.xlu0 %v1882_v41  ;;  %v1089_v32 = vmul.u32 7, %v1088_v38  ;;  %v1313_v19 = vmul.f32 0.0, %v3822_v12  ;;  %v1321_v41 = vmul.f32 0.0, %v3816_v59  ;;  %v1735_v38 = vmul.f32 0.0, %v3887_v10 }
 0x562   :  { %v1090_v0 = vsub.s32 %v1020_v9, %v1089_v32  ;;  %v3884_v9 = vstv %s3812_s25 }
 0x564   :  { %1249 = vmax.xlane.f32.xlu1 %v1248_v3  ;;  %1889 = vadd.xlane.f32.xlu0 %v1888_v49  ;;  %v3831_v3 = vstv %s2800_s1  ;;  %vm1125_vm14 = vcmp.ne.s32.totalorder %v1090_v0, 0  ;;  %vm1132_vm15 = vcmp.lt.s32.totalorder %v1090_v0, 0  ;;  %s3161_s1 = smov [#allocation5]  }
 0x565   :  { %vm3868_vm9 = vmand %vm1132_vm15, %vm1125_vm14 }
 0x568   :  { %1255 = vmax.xlane.f32.xlu1 %v1254_v50  ;;  %1895 = vadd.xlane.f32.xlu0 %v1894_v36  ;;  %v3838_v49 = vmul.u32.u64.low 2454267026, %v3825_v57  ;;  %v3839_v50 = vmul.u32.u64.high 2454267026, %v3825_v57, %v3838_v49  ;;  %v3842_v36 = vstv %s3799_s6 }
 0x569   :  { %5384 = vst [vmem:[#allocation25_spill] sm:$0xff] %v3842_v36 }
 0x56a   :  { %vm1043_vm11 = vc.u32 %v3838_v49, 2454267026 }
 0x56b   :  { %v1044_v17 = vsel %vm1043_vm11, 1, %v5292_v44 }
 0x56c   :  { %1261 = vmax.xlane.f32.xlu1 %v1260_v52  ;;  %1252 = vmax.xlane.f32.xlu0 %v1251_v54  ;;  %v1147_v52 = vadd.s32 7, %v1104_v56  ;;  %v3845_v54 = vstv %s3802_s2 }
 0x56d   :  { %5385 = vst [vmem:[#allocation26_spill] sm:$0xff] %v3845_v54 }
 0x56e   :  { %v1154_v5 = vsel %vm3855_vm8, %v1147_v52, %v1104_v56  ;;  %v3913_v56 = vadd.s32 %v3839_v50, %v1044_v17  ;;  %vm1342_vm8 = vcmask 1046528  }
 0x56f   :  { %vm1161_vm12 = vcmp.ge.s32.totalorder %v1154_v5, 1  ;;  %vm1182_vm13 = vcmp.le.s32.totalorder %v1154_v5, 5 }
 0x570   :  { %1908 = vmax.xlane.f32.xlu1 %v1907_v13  ;;  %1258 = vmax.xlane.f32.xlu0 %v1257_v55  ;;  %v3848_v13 = vstv %s3804_s21  ;;  %v3851_v55 = vstv %s3806_s22  ;;  %5396 = vst [vmem:[#allocation33_spill] sm:$0xff] %v3913_v56  ;;  %v3933_v50 = vsel %vm1182_vm13, 1.0, %v5294_v1 }
 0x571   :  { %5386 = vst [vmem:[#allocation27_spill] sm:$0xff] %v3848_v13  ;;  %5387 = vst [vmem:[#allocation28_spill] sm:$0xff] %v3851_v55 }
 0x572   :  { %5401 = vst [vmem:[#allocation38_spill] sm:$0xff] %v3933_v50 }
 0x574   :  { %1914 = vmax.xlane.f32.xlu1 %v1913_v30  ;;  %1264 = vmax.xlane.f32.xlu0 %v1263_v40  ;;  %v1146_v40 = vadd.s32 7, %v1090_v0  ;;  %v3929_v30 = vsel %vm1161_vm12, 1.0, %v5294_v1 }
 0x575   :  { %5400 = vst [vmem:[#allocation37_spill] sm:$0xff] %v3929_v30 }
 0x576   :  { %v1153_v26 = vsel %vm3868_vm9, %v1146_v40, %v1090_v0  ;;  %vm1402_vm9 = vcmask 1045504  }
 0x577   :  { %vm1160_vm14 = vcmp.ge.s32.totalorder %v1153_v26, 1  ;;  %vm1181_vm15 = vcmp.le.s32.totalorder %v1153_v26, 5 }
 0x578   :  { %1920 = vmax.xlane.f32.xlu1 %v1919_v24  ;;  %1911 = vmax.xlane.f32.xlu0 %v1910_v61  ;;  %v1373_v24 = vmul.f32 0.0, %v3845_v54  ;;  %v1381_v61 = vmul.f32 0.0, %v3831_v3  ;;  %v3925_v52 = vsel %vm1160_vm14, 1.0, %v5294_v1 }
 0x579   :  { %5399 = vst [vmem:[#allocation36_spill] sm:$0xff] %v3925_v52 }
 0x57a   :  { %v3900_v16 = vadd.f32 %v1381_v61, %v1373_v24  ;;  %v3940_v24 = vsel %vm1181_vm15, 1.0, %v5294_v1 }
 0x57b   :  { %5403 = vst [vmem:[#allocation40_spill] sm:$0xff] %v3940_v24 }
 0x57c   :  { %1238 = vadd.xlane.f32.xlu1 %v1237_v62  ;;  %1917 = vmax.xlane.f32.xlu0 %v1916_v63  ;;  %v3862_v62 = vstv %s3814_s26  ;;  %5394 = vst [vmem:[#allocation31_spill] sm:$0xff] %v3900_v16  ;;  %v3945_v63 = vadd.f32 %v1743_v21, %v1735_v38 }
 0x57d   :  { %v1448_v6 = vmul.f32 0.0, %v3862_v62 }
 0x57e   :  { %5405 = vst [vmem:[#allocation42_spill] sm:$0xff] %v3945_v63 }
 0x580   :  { %1267 = vmax.xlane.f32.xlu1 %v1266_v4  ;;  %1923 = vmax.xlane.f32.xlu0 %v1922_v43  ;;  %v1148_v4 = vadd.s32 7, %v1118_v2  ;;  %v3872_v43 = vadd.f32 %v1321_v41, %v1313_v19  ;;  %v3919_v19 = vstv %s3853_s16  ;;  %v3922_v41 = vstv %s3864_s17 }
 0x581   :  { %5398 = vst [vmem:[#allocation35_spill] sm:$0xff] %v3919_v19 }
 0x582   :  { %5392 = vst [vmem:[#allocation29_spill] sm:$0xff] %v3872_v43  ;;  %v1155_v47 = vsel %vm1141_vm10, %v1148_v4, %v1118_v2 }
 0x583   :  { %vm1162_vm3 = vcmp.ge.s32.totalorder %v1155_v47, 1  ;;  %vm1183_vm7 = vcmp.le.s32.totalorder %v1155_v47, 5 }
 0x584   :  { %1898 = vadd.xlane.f32.xlu0 %v1897_v20  ;;  %v1440_v20 = vmul.f32 0.0, %v3848_v13  ;;  %v3936_v40 = vsel %vm1162_vm3, 1.0, %v5294_v1  ;;  %v3943_v61 = vsel %vm1183_vm7, 1.0, %v5294_v1 }
 0x585   :  { %5402 = vst [vmem:[#allocation39_spill] sm:$0xff] %v3936_v40  ;;  %5404 = vst [vmem:[#allocation41_spill] sm:$0xff] %v3943_v61 }
 0x586   :  { %v3916_v2 = vadd.f32 %v1448_v6, %v1440_v20 }
 0x588   :  { %1926 = vmax.xlane.f32.xlu0 %v1925_v60  ;;  %v3876_v60 = vstv %s3808_s23  ;;  %5397 = vst [vmem:[#allocation34_spill] sm:$0xff] %v3916_v2  ;;  %s2732_s23 = sshll.u32 %s3161_s1, 4  ;;  %s2733_s23 = int_to_ptr.vmem [resolvable:$true] %s2732_s23 }
 0x589   :  { %p3135_p6 = scmp.lt.s32.totalorder %s2733_s23, %s2733_s23 }
 0x5d9   :  { %v1224_v15 = vpop.xlane.xlu1 %1223  ;;  %v1221_v14 = vpop.xlane.xlu0 %1220 }
 0x5da   :  { %v1241_v8 = vmul.f32 0.125, %v1221_v14  ;;  %v1242_v49 = vmul.f32 0.125, %v1224_v15 }
 0x5dc   :  { %v3948_v14 = vmul.f32 %v3842_v36, %v1241_v8  ;;  %v3951_v5 = vmul.f32 %v3822_v12, %v1241_v8  ;;  %v3955_v26 = vmul.f32 %v3845_v54, %v1241_v8  ;;  %v3958_v47 = vmul.f32 %v3848_v13, %v1241_v8 }
 0x5dd   :  { %v1233_v32 = vpop.xlane.xlu1 %1232  ;;  %v1227_v25 = vpop.xlane.xlu0 %1226  ;;  %v3961_v17 = vmul.f32 %v3851_v55, %v1241_v8  ;;  %v3964_v38 = vmul.f32 %v3876_v60, %v1241_v8  ;;  %v3972_v0 = vmul.f32 %v3884_v9, %v1241_v8  ;;  %v3975_v44 = vmul.f32 %v3842_v36, %v1242_v49 }
 0x5de   :  { %v1243_v4 = vmul.f32 0.125, %v1227_v25  ;;  %v3966_v21 = vmul.f32 0.125, %v1233_v32  ;;  %v3969_v25 = vmul.f32 %v3881_v53, %v1241_v8  ;;  %v3978_v1 = vmul.f32 %v3822_v12, %v1242_v49 }
 0x5df   :  { %v3981_v46 = vmul.f32 %v3845_v54, %v1242_v49  ;;  %v3984_v6 = vmul.f32 %v3848_v13, %v1242_v49  ;;  %v3987_v32 = vmul.f32 %v3851_v55, %v1242_v49  ;;  %v4001_v33 = vmul.f32 %v3876_v60, %v1242_v49 }
 0x5e0   :  { %5406 = vst [vmem:[#allocation43_spill] sm:$0xff] %v3966_v21  ;;  %v3992_v8 = vmul.f32 %v3842_v36, %v1243_v4  ;;  %v3995_v48 = vmul.f32 %v3822_v12, %v1243_v4  ;;  %v3998_v51 = vmul.f32 %v3845_v54, %v1243_v4  ;;  %v4004_v29 = vmul.f32 %v3848_v13, %v1243_v4 }
 0x5e1   :  { %v1881_v20 = vpop.xlane.xlu1 %1880  ;;  %v1230_v15 = vpop.xlane.xlu0 %1229  ;;  %5407 = vst [vmem:[#allocation44_spill] sm:$0xff] %v3981_v46  ;;  %5408 = vst [vmem:[#allocation45_spill] sm:$0xff] %v3984_v6  ;;  %v4007_v31 = vmul.f32 %v3851_v55, %v1243_v4  ;;  %v4010_v23 = vmul.f32 %v3876_v60, %v1243_v4  ;;  %v4013_v34 = vmul.f32 %v3881_v53, %v1243_v4 }
 0x5e2   :  { %5409 = vst [vmem:[#allocation46_spill] sm:$0xff] %v3987_v32  ;;  %5411 = vst [vmem:[#allocation48_spill] sm:$0xff] %v4001_v33  ;;  %v1900_v37 = vmul.f32 0.125, %v1881_v20  ;;  %v1244_v42 = vmul.f32 0.125, %v1230_v15  ;;  %v4016_v27 = vmul.f32 %v3884_v9, %v1243_v4  ;;  %v4019_v28 = vmul.f32 %v3887_v10, %v1243_v4 }
 0x5e3   :  { %v4023_v20 = vmul.f32 %v3842_v36, %v3966_v21  ;;  %v4027_v22 = vmul.f32 %v3822_v12, %v3966_v21  ;;  %v4031_v15 = vmul.f32 %v3845_v54, %v3966_v21  ;;  %v4035_v16 = vmul.f32 %v3851_v55, %v3966_v21 }
 0x5e4   :  { %v4041_v4 = vmul.f32 %v3876_v60, %v3966_v21  ;;  %v4045_v2 = vmul.f32 %v3881_v53, %v3966_v21  ;;  %v4049_v57 = vmul.f32 %v3884_v9, %v3966_v21  ;;  %v4053_v50 = vmul.f32 %v3887_v10, %v3966_v21 }
 0x5e5   :  { %v1887_v39 = vpop.xlane.xlu1 %1886  ;;  %v3989_v35 = vpop.xlane.xlu0 %1235  ;;  %v4056_v40 = vmul.f32 %v3881_v53, %v1242_v49  ;;  %v4059_v30 = vmul.f32 %v3884_v9, %v1242_v49  ;;  %v4062_v24 = vmul.f32 %v3887_v10, %v1242_v49  ;;  %v4065_v52 = vmul.f32 %v1900_v37, %v3842_v36 }
 0x5e6   :  { %5410 = vst [vmem:[#allocation47_spill] sm:$0xff] %v3989_v35  ;;  %v4067_v56 = vmul.f32 0.125, %v1887_v39  ;;  %v4073_v21 = vmul.f32 %v1900_v37, %v3845_v54  ;;  %v4076_v35 = vmul.f32 %v1900_v37, %v3848_v13  ;;  %v4079_v61 = vmul.f32 %v1900_v37, %v3851_v55 }
 0x5e7   :  { %5413 = vst [vmem:[#allocation50_spill] sm:$0xff] %v4056_v40  ;;  %5414 = vst [vmem:[#allocation51_spill] sm:$0xff] %v4059_v30  ;;  %v4082_v49 = vmul.f32 %v1900_v37, %v3876_v60  ;;  %v4085_v63 = vmul.f32 %v1900_v37, %v3881_v53  ;;  %v4088_v39 = vmul.f32 %v1900_v37, %v3884_v9 }
 0x5e8   :  { %5415 = vst [vmem:[#allocation52_spill] sm:$0xff] %v4062_v24  ;;  %5416 = vst [vmem:[#allocation53_spill] sm:$0xff] %v4065_v52 }
 0x5e9   :  { %v1893_v18 = vpop.xlane.xlu1 %1892  ;;  %v4037_v43 = vpop.xlane.xlu0 %1883  ;;  %5418 = vst [vmem:[#allocation55_spill] sm:$0xff] %v4073_v21  ;;  %5419 = vst [vmem:[#allocation56_spill] sm:$0xff] %v4076_v35  ;;  %v4094_v21 = vmul.f32 %v3822_v12, %v1244_v42  ;;  %v4097_v35 = vmul.f32 %v3845_v54, %v1244_v42 }
 0x5ea   :  { %5412 = vst [vmem:[#allocation49_spill] sm:$0xff] %v4037_v43  ;;  %v4070_v43 = vmul.f32 %v1900_v37, %v3822_v12  ;;  %5420 = vst [vmem:[#allocation57_spill] sm:$0xff] %v4079_v61  ;;  %v4100_v61 = vmul.f32 %v3848_v13, %v1244_v42 }
 0x5eb   :  { %5421 = vst [vmem:[#allocation58_spill] sm:$0xff] %v4082_v49  ;;  %5422 = vst [vmem:[#allocation59_spill] sm:$0xff] %v4085_v63 }
 0x5ec   :  { %5417 = vst [vmem:[#allocation54_spill] sm:$0xff] %v4070_v43  ;;  %5423 = vst [vmem:[#allocation60_spill] sm:$0xff] %v4088_v39  ;;  %v4091_v43 = vmul.f32 %v3842_v36, %v1244_v42 }
 0x5ed   :  { %v1250_v52 = vpop.xlane.xlu1 %1249  ;;  %5425 = vst [vmem:[#allocation62_spill] sm:$0xff] %v4094_v21  ;;  %5426 = vst [vmem:[#allocation63_spill] sm:$0xff] %v4097_v35  ;;  %v4110_v35 = vpop.xlane.xlu0 %1889 }
 0x5ee   :  { %5424 = vst [vmem:[#allocation61_spill] sm:$0xff] %v4091_v43  ;;  %5427 = vst [vmem:[#allocation64_spill] sm:$0xff] %v4100_v61  ;;  %v1283_v49 = vmul.f32 %v3892_v11, %v1250_v52  ;;  %v1322_v63 = vmul.f32 %v3816_v59, %v1250_v52  ;;  %v1382_v37 = vmul.f32 %v3831_v3, %v1250_v52 }
 0x5ef   :  { %v1449_v39 = vmul.f32 %v3862_v62, %v1250_v52  ;;  %v1514_v24 = vmul.f32 %v3896_v7, %v1250_v52  ;;  %v1546_v43 = vmul.f32 %v3903_v45, %v1250_v52  ;;  %v1612_v21 = vmul.f32 %v3919_v19, %v1250_v52  ;;  %5428 = vst [vmem:[#allocation65_spill] sm:$0xff] %v4110_v35 }
 0x5f0   :  { %v1678_v30 = vmul.f32 %v3922_v41, %v1250_v52  ;;  %v4113_v61 = vadd.f32 %v1283_v49, %v3948_v14  ;;  %v4116_v40 = vadd.f32 %v1322_v63, %v3951_v5  ;;  %v4119_v33 = vadd.f32 %v1382_v37, %v3955_v26 }
 0x5f1   :  { %v4122_v32 = vadd.f32 %v1449_v39, %v3958_v47  ;;  %v4125_v6 = vadd.f32 %v1514_v24, %v3961_v17  ;;  %v4128_v46 = vadd.f32 %v1546_v43, %v3964_v38  ;;  %v4131_v52 = vadd.f32 %v1612_v21, %v3969_v25  ;;  %v1256_v63 = vpop.xlane.xlu1 %1255 }
 0x5f2   :  { %5429 = vst [vmem:[#allocation66_spill] sm:$0xff] %v4113_v61  ;;  %5430 = vst [vmem:[#allocation67_spill] sm:$0xff] %v4116_v40  ;;  %v4134_v14 = vadd.f32 %v1678_v30, %v3972_v0  ;;  %v4137_v5 = vmul.f32 %v3851_v55, %v1244_v42  ;;  %v4140_v26 = vmul.f32 %v3876_v60, %v1244_v42  ;;  %v4148_v43 = vmul.f32 0.125, %v1893_v18 }
 0x5f3   :  { %5431 = vst [vmem:[#allocation68_spill] sm:$0xff] %v4119_v33  ;;  %5432 = vst [vmem:[#allocation69_spill] sm:$0xff] %v4122_v32  ;;  %v4143_v47 = vmul.f32 %v3881_v53, %v1244_v42  ;;  %v4146_v24 = vmul.f32 %v3884_v9, %v1244_v42  ;;  %v1285_v17 = vmul.f32 %v3892_v11, %v1256_v63 }
 0x5f4   :  { %5433 = vst [vmem:[#allocation70_spill] sm:$0xff] %v4125_v6  ;;  %5434 = vst [vmem:[#allocation71_spill] sm:$0xff] %v4148_v43  ;;  %v4152_v0 = vmul.f32 %v3887_v10, %v1244_v42  ;;  %v4156_v30 = vmul.f32 %v4067_v56, %v3842_v36  ;;  %v1324_v38 = vmul.f32 %v3816_v59, %v1256_v63  ;;  %v4177_v6 = vpop.xlane.xlu0 %1895 }
 0x5f5   :  { %v4161_v21 = vmul.f32 %v4067_v56, %v3822_v12  ;;  %v4165_v25 = vmul.f32 %v4067_v56, %v3845_v54  ;;  %v4169_v18 = vmul.f32 %v4067_v56, %v3848_v13  ;;  %v4172_v42 = vadd.f32 %v1285_v17, %v3992_v8  ;;  %5437 = vst [vmem:[#allocation74_spill] sm:$0xff] %v4177_v6  ;;  %v4195_v35 = vpop.xlane.xlu1 %1261 }
 0x5f6   :  { %v1384_v49 = vmul.f32 %v3831_v3, %v1256_v63  ;;  %v1451_v39 = vmul.f32 %v3862_v62, %v1256_v63  ;;  %v1516_v37 = vmul.f32 %v3896_v7, %v1256_v63  ;;  %v4180_v61 = vadd.f32 %v1324_v38, %v3995_v48  ;;  %5439 = vst [vmem:[#allocation76_spill] sm:$0xff] %v4195_v35 }
 0x5f7   :  { %5435 = vst [vmem:[#allocation72_spill] sm:$0xff] %v4169_v18  ;;  %5436 = vst [vmem:[#allocation73_spill] sm:$0xff] %v4172_v42  ;;  %v1548_v54 = vmul.f32 %v3903_v45, %v1256_v63  ;;  %v1614_v12 = vmul.f32 %v3919_v19, %v1256_v63  ;;  %v1680_v13 = vmul.f32 %v3922_v41, %v1256_v63 }
 0x5f8   :  { %v4186_v8 = vadd.f32 %v1384_v49, %v3998_v51  ;;  %v4189_v17 = vadd.f32 %v1451_v39, %v4004_v29  ;;  %v4192_v42 = vadd.f32 %v1516_v37, %v4007_v31  ;;  %v1738_v6 = vmul.f32 %v3908_v58, %v1256_v63 }
 0x5f9   :  { %v4198_v48 = vadd.f32 %v1548_v54, %v4010_v23  ;;  %v4201_v38 = vadd.f32 %v1614_v12, %v4013_v34  ;;  %v4204_v43 = vadd.f32 %v1680_v13, %v4016_v27  ;;  %v4208_v29 = vmul.f32 %v4067_v56, %v3851_v55 }
 0x5fa   :  { %5438 = vst [vmem:[#allocation75_spill] sm:$0xff] %v4192_v42  ;;  %v4214_v49 = vadd.f32 %v1738_v6, %v4019_v28  ;;  %v1567_v23 = vrot.slane %v4128_v46, 1  ;;  %v1633_v34 = vrot.slane %v4131_v52, 6  ;;  %v1287_v12 = vmul.f32 %v3892_v11, %v4195_v35  ;;  %v1253_v6 = vpop.xlane.xlu0 %1252 }
 0x5fb   :  { %5440 = vst [vmem:[#allocation77_spill] sm:$0xff] %v4208_v29  ;;  %v1326_v13 = vmul.f32 %v3816_v59, %v4195_v35  ;;  %v1386_v39 = vmul.f32 %v3831_v3, %v4195_v35  ;;  %v1518_v28 = vmul.f32 %v3896_v7, %v4195_v35  ;;  %v1550_v52 = vmul.f32 %v3903_v45, %v4195_v35  ;;  %v5458_v29 = vld [vmem:[#allocation52_spill] sm:$0xff] }
 0x5fc   :  { %5441 = vst [vmem:[#allocation78_spill] sm:$0xff] %v4214_v49  ;;  %v4229_v46 = vadd.f32 %v1287_v12, %v4023_v20  ;;  %v1616_v37 = vmul.f32 %v3919_v19, %v4195_v35  ;;  %v1682_v27 = vmul.f32 %v3922_v41, %v4195_v35  ;;  %v1740_v20 = vmul.f32 %v3908_v58, %v4195_v35  ;;  %v5455_v49 = vld [vmem:[#allocation48_spill] sm:$0xff]  ;;  %v5457_v35 = vld [vmem:[#allocation51_spill] sm:$0xff] }
 0x5fd   :  { %v4238_v63 = vadd.f32 %v1326_v13, %v4027_v22  ;;  %v4241_v51 = vadd.f32 %v1386_v39, %v4031_v15  ;;  %v4244_v54 = vadd.f32 %v1518_v28, %v4035_v16  ;;  %v4249_v12 = vadd.f32 %v1550_v52, %v4041_v4  ;;  %v5451_v15 = vld [vmem:[#allocation44_spill] sm:$0xff] }
 0x5fe   :  { %5442 = vst [vmem:[#allocation79_spill] sm:$0xff] %v4229_v46  ;;  %v4252_v31 = vadd.f32 %v1616_v37, %v4045_v2  ;;  %v4255_v42 = vadd.f32 %v1682_v27, %v4049_v57  ;;  %v1284_v22 = vmul.f32 %v3892_v11, %v1253_v6  ;;  %v4261_v13 = vadd.f32 %v1740_v20, %v4053_v50  ;;  %v5456_v46 = vld [vmem:[#allocation50_spill] sm:$0xff] }
 0x5ff   :  { %5443 = vst [vmem:[#allocation80_spill] sm:$0xff] %v4238_v63  ;;  %5444 = vst [vmem:[#allocation81_spill] sm:$0xff] %v4241_v51  ;;  %v1323_v39 = vmul.f32 %v3816_v59, %v1253_v6  ;;  %v1383_v52 = vmul.f32 %v3831_v3, %v1253_v6  ;;  %v1450_v37 = vmul.f32 %v3862_v62, %v1253_v6 }
 0x600   :  { %5445 = vst [vmem:[#allocation82_spill] sm:$0xff] %v4244_v54  ;;  %5446 = vst [vmem:[#allocation83_spill] sm:$0xff] %v4249_v12  ;;  %v4268_v57 = vadd.f32 %v1284_v22, %v3975_v44  ;;  %v1515_v50 = vmul.f32 %v3896_v7, %v1253_v6  ;;  %v1547_v20 = vmul.f32 %v3903_v45, %v1253_v6  ;;  %v5452_v22 = vld [vmem:[#allocation45_spill] sm:$0xff] }
 0x601   :  { %5447 = vst [vmem:[#allocation84_spill] sm:$0xff] %v4252_v31  ;;  %5448 = vst [vmem:[#allocation85_spill] sm:$0xff] %v4255_v42  ;;  %v1330_v27 = vadd.f32 %v1323_v39, %v3978_v1  ;;  %v1613_v16 = vmul.f32 %v3919_v19, %v1253_v6  ;;  %v1679_v4 = vmul.f32 %v3922_v41, %v1253_v6  ;;  %v5453_v1 = vld [vmem:[#allocation46_spill] sm:$0xff] }
 0x602   :  { %5449 = vst [vmem:[#allocation86_spill] sm:$0xff] %v4261_v13  ;;  %5450 = vst [vmem:[#allocation87_spill] sm:$0xff] %v4268_v57  ;;  %v1737_v28 = vmul.f32 %v3908_v58, %v1253_v6  ;;  %v1390_v44 = vadd.f32 %v1383_v52, %v5451_v15  ;;  %v1457_v13 = vadd.f32 %v1450_v37, %v5452_v22  ;;  %v1909_v57 = vpop.xlane.xlu1 %1908  ;;  %v5460_v6 = vrot.slane %v4116_v40, 1  ;;  %v5552_v40 = vld [vmem:[#allocation28_spill] sm:$0xff] }
 0x603   :  { %v1346_v2 = vrot.slane %v1330_v27, 1  ;;  %v4281_v39 = vadd.f32 %v1515_v50, %v5453_v1  ;;  %v1554_v54 = vadd.f32 %v1547_v20, %v5455_v49  ;;  %v1620_v55 = vadd.f32 %v1613_v16, %v5456_v46 }
 0x604   :  { %v1686_v36 = vadd.f32 %v1679_v4, %v5457_v35  ;;  %v4287_v18 = vadd.f32 %v1737_v28, %v5458_v29  ;;  %v5462_v15 = vrot.slane %v4180_v61, 1  ;;  %v1406_v37 = vrot.slane %v1390_v44, 2 }
 0x605   :  { %5454 = vst [vmem:[#allocation44_spill] sm:$0xff] %v4281_v39  ;;  %v4292_v27 = vsel %vm1342_vm8, %v5460_v6, %v1346_v2  ;;  %v1472_v50 = vrot.slane %v1457_v13, 7  ;;  %v1568_v49 = vrot.slane %v1554_v54, 1  ;;  %v1634_v20 = vrot.slane %v1620_v55, 6 }
 0x606   :  { %5459 = vst [vmem:[#allocation45_spill] sm:$0xff] %v4287_v18  ;;  %5461 = vst [vmem:[#allocation46_spill] sm:$0xff] %v4292_v27  ;;  %v4297_v52 = vsel %vm1342_vm8, %v1346_v2, %v5462_v15  ;;  %v1700_v46 = vrot.slane %v1686_v36, 7  ;;  %v1936_v35 = vmul.f32 %v1909_v57, %v3892_v11  ;;  %v5464_v29 = vrot.slane %v4119_v33, 2 }
 0x607   :  { %5463 = vst [vmem:[#allocation48_spill] sm:$0xff] %v4297_v52  ;;  %v5466_v4 = vrot.slane %v4186_v8, 2  ;;  %v5468_v2 = vrot.slane %v4122_v32, 7  ;;  %v5470_v55 = vrot.slane %v4189_v17, 7  ;;  %v4321_v54 = vsel %vm1342_vm8, %v1567_v23, %v1568_v49  ;;  %v5488_v52 = vld [vmem:[#allocation56_spill] sm:$0xff] }
 0x608   :  { %v4303_v16 = vsel %vm1402_vm9, %v5464_v29, %v1406_v37  ;;  %5472 = vst [vmem:[#allocation89_spill] sm:$0xff] %v4321_v54  ;;  %v5473_v13 = vrot.slane %v4198_v48, 1  ;;  %v4329_v1 = vsel %vm857_vm6, %v1633_v34, %v1634_v20  ;;  %v5476_v6 = vrot.slane %v4201_v38, 6 }
 0x609   :  { %5465 = vst [vmem:[#allocation50_spill] sm:$0xff] %v4303_v16  ;;  %v4308_v28 = vsel %vm1402_vm9, %v1406_v37, %v5466_v4  ;;  %v4313_v44 = vsel %vm855_vm5, %v5468_v2, %v1472_v50  ;;  %v4318_v36 = vsel %vm855_vm5, %v1472_v50, %v5470_v55  ;;  %5475 = vst [vmem:[#allocation91_spill] sm:$0xff] %v4329_v1  ;;  %v1259_v37 = vpop.xlane.xlu0 %1258  ;;  %v5478_v50 = vrot.slane %v4134_v14, 7  ;;  %v5492_v1 = vld [vmem:[#allocation58_spill] sm:$0xff] }
 0x60a   :  { %5467 = vst [vmem:[#allocation51_spill] sm:$0xff] %v4308_v28  ;;  %5469 = vst [vmem:[#allocation52_spill] sm:$0xff] %v4313_v44  ;;  %v4326_v22 = vsel %vm1342_vm8, %v1568_v49, %v5473_v13  ;;  %v4334_v15 = vsel %vm857_vm6, %v1634_v20, %v5476_v6  ;;  %v5480_v23 = vrot.slane %v4204_v43, 7  ;;  %v5482_v49 = vld [vmem:[#allocation53_spill] sm:$0xff]  ;;  %v1966_v34 = vmul.f32 %v1909_v57, %v3816_v59  ;;  %v5484_v6 = vld [vmem:[#allocation54_spill] sm:$0xff] }
 0x60b   :  { %5471 = vst [vmem:[#allocation88_spill] sm:$0xff] %v4318_v36  ;;  %5474 = vst [vmem:[#allocation90_spill] sm:$0xff] %v4326_v22  ;;  %v4339_v29 = vsel %vm855_vm5, %v5478_v50, %v1700_v46  ;;  %v4347_v2 = vadd.f32 %v1936_v35, %v5482_v49  ;;  %v2016_v55 = vmul.f32 %v1909_v57, %v3831_v3  ;;  %v5490_v28 = vld [vmem:[#allocation57_spill] sm:$0xff]  ;;  %v5502_v32 = vrot.slane %v4180_v61, 1 }
 0x60c   :  { %5477 = vst [vmem:[#allocation92_spill] sm:$0xff] %v4334_v15  ;;  %5479 = vst [vmem:[#allocation93_spill] sm:$0xff] %v4339_v29  ;;  %v4344_v4 = vsel %vm855_vm5, %v1700_v46, %v5480_v23  ;;  %v2073_v20 = vmul.f32 %v1909_v57, %v3862_v62  ;;  %v2131_v13 = vmul.f32 %v1909_v57, %v3896_v7  ;;  %v5486_v23 = vld [vmem:[#allocation55_spill] sm:$0xff] }
 0x60d   :  { %5481 = vst [vmem:[#allocation94_spill] sm:$0xff] %v4344_v4  ;;  %5483 = vst [vmem:[#allocation53_spill] sm:$0xff] %v4347_v2  ;;  %v2159_v14 = vmul.f32 %v1909_v57, %v3903_v45  ;;  %v4355_v50 = vadd.f32 %v1966_v34, %v5484_v6  ;;  %v2221_v36 = vmul.f32 %v1909_v57, %v3919_v19  ;;  %v5493_v34 = vld [vmem:[#allocation59_spill] sm:$0xff]  ;;  %v5494_v4 = vld [vmem:[#allocation60_spill] sm:$0xff] }
 0x60e   :  { %v2283_v46 = vmul.f32 %v1909_v57, %v3922_v41  ;;  %v1286_v35 = vmul.f32 %v3892_v11, %v1259_v37  ;;  %v4361_v49 = vadd.f32 %v2016_v55, %v5486_v23  ;;  %v4364_v29 = vadd.f32 %v2073_v20, %v5488_v52  ;;  %v5495_v57 = vld [vmem:[#allocation61_spill] sm:$0xff]  ;;  %v5497_v23 = vld [vmem:[#allocation62_spill] sm:$0xff] }
 0x60f   :  { %5485 = vst [vmem:[#allocation54_spill] sm:$0xff] %v4355_v50  ;;  %v4367_v18 = vadd.f32 %v2131_v13, %v5490_v28  ;;  %v4370_v54 = vadd.f32 %v2159_v14, %v5492_v1  ;;  %v4373_v6 = vadd.f32 %v2221_v36, %v5493_v34  ;;  %v2154_v55 = vmul.f32 %v4067_v56, %v3876_v60  ;;  %v5499_v13 = vld [vmem:[#allocation64_spill] sm:$0xff] }
 0x610   :  { %5487 = vst [vmem:[#allocation55_spill] sm:$0xff] %v4361_v49  ;;  %5489 = vst [vmem:[#allocation56_spill] sm:$0xff] %v4364_v29  ;;  %v4376_v15 = vadd.f32 %v2283_v46, %v5494_v4  ;;  %v4379_v39 = vadd.f32 %v1286_v35, %v5495_v57  ;;  %v1325_v52 = vmul.f32 %v3816_v59, %v1259_v37 }
 0x611   :  { %5491 = vst [vmem:[#allocation57_spill] sm:$0xff] %v4367_v18  ;;  %v2216_v28 = vmul.f32 %v4067_v56, %v3881_v53  ;;  %v2278_v1 = vmul.f32 %v4067_v56, %v3884_v9  ;;  %v2332_v36 = vmul.f32 %v4067_v56, %v3887_v10  ;;  %v1385_v14 = vmul.f32 %v3831_v3, %v1259_v37  ;;  %v5498_v18 = vld [vmem:[#allocation63_spill] sm:$0xff] }
 0x612   :  { %5496 = vst [vmem:[#allocation58_spill] sm:$0xff] %v4379_v39  ;;  %v1332_v34 = vadd.f32 %v1325_v52, %v5497_v23  ;;  %v1452_v57 = vmul.f32 %v3862_v62, %v1259_v37  ;;  %v1517_v56 = vmul.f32 %v3896_v7, %v1259_v37  ;;  %v1549_v4 = vmul.f32 %v3903_v45, %v1259_v37  ;;  %v1915_v23 = vpop.xlane.xlu1 %1914 }
 0x613   :  { %v1392_v22 = vadd.f32 %v1385_v14, %v5498_v18  ;;  %v1615_v20 = vmul.f32 %v3919_v19, %v1259_v37  ;;  %v1681_v46 = vmul.f32 %v3922_v41, %v1259_v37  ;;  %v1739_v35 = vmul.f32 %v3908_v58, %v1259_v37 }
 0x614   :  { %v1350_v2 = vrot.slane %v1332_v34, 1  ;;  %v4403_v44 = vadd.f32 %v1452_v57, %v5499_v13  ;;  %v4408_v52 = vadd.f32 %v1517_v56, %v4137_v5  ;;  %v1556_v18 = vadd.f32 %v1549_v4, %v4140_v26 }
 0x615   :  { %v1410_v27 = vrot.slane %v1392_v22, 2  ;;  %v1622_v14 = vadd.f32 %v1615_v20, %v4143_v47  ;;  %v5504_v13 = vrot.slane %v4238_v63, 1  ;;  %v1688_v5 = vadd.f32 %v1681_v46, %v4146_v24 }
 0x616   :  { %5500 = vst [vmem:[#allocation59_spill] sm:$0xff] %v4403_v44  ;;  %5501 = vst [vmem:[#allocation60_spill] sm:$0xff] %v4408_v52  ;;  %v4415_v34 = vsel %vm1342_vm8, %v5502_v32, %v1350_v2  ;;  %v5339_v22 = vrot.slane %v4403_v44, 7  ;;  %v5506_v37 = vrot.slane %v4186_v8, 2  ;;  %v5508_v47 = vrot.slane %v4241_v51, 2  ;;  %v5550_v52 = vld [vmem:[#allocation76_spill] sm:$0xff] }
 0x617   :  { %5503 = vst [vmem:[#allocation61_spill] sm:$0xff] %v4415_v34  ;;  %v4420_v57 = vsel %vm1342_vm8, %v1350_v2, %v5504_v13  ;;  %v1572_v32 = vrot.slane %v1556_v18, 1  ;;  %v1638_v4 = vrot.slane %v1622_v14, 6  ;;  %v5510_v2 = vrot.slane %v4189_v17, 7 }
 0x618   :  { %5505 = vst [vmem:[#allocation62_spill] sm:$0xff] %v4420_v57  ;;  %v4427_v26 = vsel %vm1402_vm9, %v5506_v37, %v1410_v27  ;;  %v4432_v61 = vsel %vm1402_vm9, %v1410_v27, %v5508_v47  ;;  %v1704_v24 = vrot.slane %v1688_v5, 7  ;;  %v4442_v8 = vadd.f32 %v1739_v35, %v4152_v0 }
 0x619   :  { %5507 = vst [vmem:[#allocation63_spill] sm:$0xff] %v4427_v26  ;;  %5509 = vst [vmem:[#allocation64_spill] sm:$0xff] %v4432_v61  ;;  %v4439_v20 = vsel %vm855_vm5, %v5510_v2, %v5339_v22  ;;  %v1938_v46 = vmul.f32 %v1915_v23, %v3892_v11  ;;  %v5513_v56 = vrot.slane %v4198_v48, 1  ;;  %v5515_v18 = vrot.slane %v4249_v12, 1 }
 0x61a   :  { %5511 = vst [vmem:[#allocation95_spill] sm:$0xff] %v4439_v20  ;;  %5512 = vst [vmem:[#allocation96_spill] sm:$0xff] %v4442_v8  ;;  %v5517_v17 = vrot.slane %v4201_v38, 6  ;;  %v5519_v0 = vrot.slane %v4252_v31, 6  ;;  %v5521_v48 = vrot.slane %v4204_v43, 7  ;;  %v5523_v37 = vrot.slane %v4255_v42, 7 }
 0x61b   :  { %v4448_v27 = vsel %vm1342_vm8, %v5513_v56, %v1572_v32  ;;  %v4453_v14 = vsel %vm1342_vm8, %v1572_v32, %v5515_v18  ;;  %v4476_v38 = vadd.f32 %v1938_v46, %v4156_v30  ;;  %v1968_v32 = vmul.f32 %v1915_v23, %v3816_v59 }
 0x61c   :  { %5514 = vst [vmem:[#allocation97_spill] sm:$0xff] %v4448_v27  ;;  %5516 = vst [vmem:[#allocation98_spill] sm:$0xff] %v4453_v14  ;;  %v4458_v13 = vsel %vm857_vm6, %v5517_v17, %v1638_v4  ;;  %v4463_v35 = vsel %vm857_vm6, %v1638_v4, %v5519_v0  ;;  %v4468_v5 = vsel %vm855_vm5, %v5521_v48, %v1704_v24  ;;  %v5526_v0 = vld [vmem:[#allocation72_spill] sm:$0xff]  ;;  %v5536_v27 = vld [vmem:[#allocation25_spill] sm:$0xff] }
 0x61d   :  { %5518 = vst [vmem:[#allocation99_spill] sm:$0xff] %v4458_v13  ;;  %5520 = vst [vmem:[#allocation100_spill] sm:$0xff] %v4463_v35  ;;  %v4473_v47 = vsel %vm855_vm5, %v1704_v24, %v5523_v37  ;;  %v2018_v2 = vmul.f32 %v1915_v23, %v3831_v3  ;;  %v2075_v4 = vmul.f32 %v1915_v23, %v3862_v62  ;;  %v5527_v37 = vld [vmem:[#allocation77_spill] sm:$0xff] }
 0x61e   :  { %5522 = vst [vmem:[#allocation101_spill] sm:$0xff] %v4468_v5  ;;  %5524 = vst [vmem:[#allocation102_spill] sm:$0xff] %v4473_v47  ;;  %v2133_v56 = vmul.f32 %v1915_v23, %v3896_v7  ;;  %v2161_v43 = vmul.f32 %v1915_v23, %v3903_v45  ;;  %v4484_v18 = vadd.f32 %v1968_v32, %v4161_v21  ;;  %v5531_v13 = vld [vmem:[#allocation41_spill] sm:$0xff] }
 0x61f   :  { %5525 = vst [vmem:[#allocation103_spill] sm:$0xff] %v4476_v38  ;;  %v2223_v17 = vmul.f32 %v1915_v23, %v3919_v19  ;;  %v2285_v24 = vmul.f32 %v1915_v23, %v3922_v41  ;;  %v2338_v30 = vmul.f32 %v1915_v23, %v3908_v58  ;;  %v4490_v46 = vadd.f32 %v2018_v2, %v4165_v25  ;;  %v5530_v38 = vld [vmem:[#allocation42_spill] sm:$0xff]  ;;  %v5533_v25 = vld [vmem:[#allocation47_spill] sm:$0xff] }
 0x620   :  { %v4493_v48 = vadd.f32 %v2075_v4, %v5526_v0  ;;  %v4496_v22 = vadd.f32 %v2133_v56, %v5527_v37  ;;  %v4498_v8 = vadd.f32 %v2161_v43, %v2154_v55  ;;  %v4508_v23 = vmul.f32 %v5531_v13, %v5530_v38  ;;  %v5535_v4 = vld [vmem:[#allocation49_spill] sm:$0xff]  ;;  %v5537_v56 = vld [vmem:[#allocation71_spill] sm:$0xff]  ;;  %v4518_v55 = vpop.xlane.xlu1 %1920  ;;  %v5544_v38 = vld [vmem:[#allocation74_spill] sm:$0xff] }
 0x621   :  { %v4500_v5 = vadd.f32 %v2223_v17, %v2216_v28  ;;  %v4502_v21 = vadd.f32 %v2285_v24, %v2278_v1  ;;  %v4504_v32 = vadd.f32 %v2338_v30, %v2332_v36  ;;  %v4511_v2 = vmul.f32 0.125, %v5533_v25  ;;  %5539 = vst [vmem:[#allocation25_spill] sm:$0xff] %v4518_v55  ;;  %v5540_v28 = vld [vmem:[#allocation33_spill] sm:$0xff]  ;;  %v4530_v30 = vpop.xlane.xlu0 %1264  ;;  %v5547_v25 = vld [vmem:[#allocation23_spill] sm:$0xff] }
 0x622   :  { %5528 = vst [vmem:[#allocation72_spill] sm:$0xff] %v4496_v22  ;;  %5532 = vst [vmem:[#allocation42_spill] sm:$0xff] %v4508_v23  ;;  %v1901_v0 = vmul.f32 0.125, %v5535_v4  ;;  %v4516_v37 = vmul.f32 %v5537_v56, %v5536_v27  ;;  %v5541_v1 = vshrl.u32 %v5540_v28, 2  ;;  %v5543_v36 = vld [vmem:[#allocation65_spill] sm:$0xff]  ;;  %v4528_v24 = vmul.f32 0.125, %v5544_v38 }
 0x623   :  { %5529 = vst [vmem:[#allocation77_spill] sm:$0xff] %v4504_v32  ;;  %5534 = vst [vmem:[#allocation47_spill] sm:$0xff] %v4511_v2  ;;  %v4525_v17 = vmul.f32 0.125, %v5543_v36  ;;  %v1964_v4 = vmul.f32 %v5537_v56, %v5547_v25  ;;  %v5548_v22 = vld [vmem:[#allocation26_spill] sm:$0xff]  ;;  %v4540_v28 = vmul.f32 %v3862_v62, %v5550_v52  ;;  %v1970_v34 = vmul.f32 %v4518_v55, %v3816_v59 }
 0x624   :  { %5538 = vst [vmem:[#allocation49_spill] sm:$0xff] %v4516_v37  ;;  %v4522_v43 = vmul.u32 7, %v5541_v1  ;;  %5545 = vst [vmem:[#allocation65_spill] sm:$0xff] %v4528_v24  ;;  %v4536_v47 = vmul.f32 %v5537_v56, %v5548_v22  ;;  %v2163_v52 = vmul.f32 %v4518_v55, %v3903_v45  ;;  %v2225_v1 = vmul.f32 %v4518_v55, %v3919_v19  ;;  %v1239_v13 = vpop.xlane.xlu1 %1238 }
 0x625   :  { %5546 = vst [vmem:[#allocation74_spill] sm:$0xff] %v4530_v30  ;;  %5551 = vst [vmem:[#allocation26_spill] sm:$0xff] %v4540_v28  ;;  %v2287_v38 = vmul.f32 %v4518_v55, %v3922_v41  ;;  %v2156_v36 = vmul.f32 %v5537_v56, %v3876_v60  ;;  %v2218_v16 = vmul.f32 %v5537_v56, %v3881_v53  ;;  %v1912_v32 = vpop.xlane.xlu0 %1911 }
 0x626   :  { %5542 = vst [vmem:[#allocation33_spill] sm:$0xff] %v4522_v43  ;;  %5549 = vst [vmem:[#allocation23_spill] sm:$0xff] %v4536_v47  ;;  %v2280_v33 = vmul.f32 %v5537_v56, %v3884_v9  ;;  %v4570_v35 = vmul.f32 %v5537_v56, %v5552_v40  ;;  %v4572_v14 = vadd.f32 %v1970_v34, %v1964_v4 }
 0x627   :  { %v4576_v20 = vmul.f32 %v4518_v55, %v3831_v3  ;;  %v4578_v43 = vadd.f32 %v2163_v52, %v2156_v36  ;;  %v4580_v26 = vadd.f32 %v2225_v1, %v2218_v16  ;;  %v1931_v37 = vmul.f32 %v1901_v0, %v5536_v27 }
 0x628   :  { %5553 = vst [vmem:[#allocation76_spill] sm:$0xff] %v4570_v35  ;;  %5554 = vst [vmem:[#allocation28_spill] sm:$0xff] %v4572_v14  ;;  %v4582_v24 = vadd.f32 %v2287_v38, %v2280_v33  ;;  %v1961_v23 = vmul.f32 %v1901_v0, %v5547_v25  ;;  %v2011_v56 = vmul.f32 %v1901_v0, %v5548_v22  ;;  %v5556_v35 = vld [vmem:[#allocation27_spill] sm:$0xff] }
 0x629   :  { %5555 = vst [vmem:[#allocation104_spill] sm:$0xff] %v4576_v20  ;;  %v2068_v34 = vmul.f32 %v1901_v0, %v5556_v35  ;;  %v2125_v4 = vmul.f32 %v1901_v0, %v5552_v40  ;;  %v2153_v14 = vmul.f32 %v1901_v0, %v3876_v60  ;;  %v2215_v36 = vmul.f32 %v1901_v0, %v3881_v53 }
 0x62a   :  { %v2277_v52 = vmul.f32 %v1901_v0, %v3884_v9  ;;  %v2331_v16 = vmul.f32 %v1901_v0, %v3887_v10  ;;  %v1937_v33 = vmul.f32 %v1912_v32, %v3892_v11  ;;  %v1967_v1 = vmul.f32 %v1912_v32, %v3816_v59 }
 0x62b   :  { %v2017_v38 = vmul.f32 %v1912_v32, %v3831_v3  ;;  %v2074_v42 = vmul.f32 %v1912_v32, %v3862_v62  ;;  %v2132_v20 = vmul.f32 %v1912_v32, %v3896_v7  ;;  %v2160_v55 = vmul.f32 %v1912_v32, %v3903_v45 }
 0x62c   :  { %v4598_v47 = vadd.f32 %v1937_v33, %v1931_v37  ;;  %v2222_v31 = vmul.f32 %v1912_v32, %v3919_v19  ;;  %v2284_v12 = vmul.f32 %v1912_v32, %v3922_v41  ;;  %v1973_v0 = vadd.f32 %v1967_v1, %v1961_v23  ;;  %v5585_v1 = vld [vmem:[#allocation32_spill] sm:$0xff] }
 0x62d   :  { %v2023_v51 = vadd.f32 %v2017_v38, %v2011_v56  ;;  %v2080_v63 = vadd.f32 %v2074_v42, %v2068_v34  ;;  %v4603_v44 = vadd.f32 %v2132_v20, %v2125_v4  ;;  %v2167_v61 = vadd.f32 %v2160_v55, %v2153_v14 }
 0x62e   :  { %5557 = vst [vmem:[#allocation27_spill] sm:$0xff] %v4598_v47  ;;  %v2229_v57 = vadd.f32 %v2222_v31, %v2215_v36  ;;  %v2291_v28 = vadd.f32 %v2284_v12, %v2277_v52  ;;  %v2337_v39 = vmul.f32 %v1912_v32, %v3908_v58  ;;  %v1986_v30 = vrot.slane %v1973_v0, 1 }
 0x62f   :  { %5558 = vst [vmem:[#allocation105_spill] sm:$0xff] %v4603_v44  ;;  %v2036_v37 = vrot.slane %v2023_v51, 2  ;;  %v2093_v33 = vrot.slane %v2080_v63, 7  ;;  %v1247_v47 = vmul.f32 0.125, %v1239_v13  ;;  %v2181_v2 = vrot.slane %v2167_v61, 1 }
 0x630   :  { %v2243_v45 = vrot.slane %v2229_v57, 6  ;;  %v2305_v19 = vrot.slane %v2291_v28, 7  ;;  %v4606_v7 = vadd.f32 %v2337_v39, %v2331_v16  ;;  %v5560_v23 = vrot.slane %v4355_v50, 1 }
 0x631   :  { %v5562_v20 = vrot.slane %v4484_v18, 1  ;;  %v5564_v12 = vrot.slane %v4361_v49, 2  ;;  %v5566_v63 = vrot.slane %v4490_v46, 2  ;;  %v5568_v57 = vrot.slane %v4364_v29, 7 }
 0x632   :  { %5559 = vst [vmem:[#allocation106_spill] sm:$0xff] %v4606_v7  ;;  %v4611_v42 = vsel %vm1342_vm8, %v5560_v23, %v1986_v30  ;;  %v5570_v14 = vrot.slane %v4493_v48, 7  ;;  %v5572_v32 = vrot.slane %v4370_v54, 1  ;;  %v5574_v55 = vrot.slane %v4498_v8, 1 }
 0x633   :  { %5561 = vst [vmem:[#allocation107_spill] sm:$0xff] %v4611_v42  ;;  %v4616_v31 = vsel %vm1342_vm8, %v1986_v30, %v5562_v20  ;;  %v4621_v51 = vsel %vm1402_vm9, %v5564_v12, %v2036_v37  ;;  %v4626_v39 = vsel %vm1402_vm9, %v2036_v37, %v5566_v63  ;;  %v4631_v61 = vsel %vm855_vm5, %v5568_v57, %v2093_v33 }
 0x634   :  { %5563 = vst [vmem:[#allocation108_spill] sm:$0xff] %v4616_v31  ;;  %5565 = vst [vmem:[#allocation109_spill] sm:$0xff] %v4621_v51  ;;  %v4636_v13 = vsel %vm855_vm5, %v2093_v33, %v5570_v14  ;;  %v4641_v56 = vsel %vm1342_vm8, %v5572_v32, %v2181_v2  ;;  %v4646_v30 = vsel %vm1342_vm8, %v2181_v2, %v5574_v55  ;;  %v5576_v28 = vrot.slane %v4373_v6, 6 }
 0x635   :  { %5567 = vst [vmem:[#allocation110_spill] sm:$0xff] %v4626_v39  ;;  %5569 = vst [vmem:[#allocation111_spill] sm:$0xff] %v4631_v61  ;;  %v5578_v4 = vrot.slane %v4500_v5, 6  ;;  %v5580_v54 = vrot.slane %v4376_v15, 7  ;;  %v5582_v16 = vrot.slane %v4502_v21, 7  ;;  %v1269_v0 = vsel %vm855_vm5, %v1247_v47, 0.0 }
 0x636   :  { %5571 = vst [vmem:[#allocation112_spill] sm:$0xff] %v4636_v13  ;;  %5573 = vst [vmem:[#allocation113_spill] sm:$0xff] %v4641_v56  ;;  %v4651_v34 = vsel %vm857_vm6, %v5576_v28, %v2243_v45  ;;  %v4673_v37 = vmul.f32 %v5552_v40, %v1269_v0  ;;  %v1933_v15 = vmul.f32 %v4525_v17, %v5536_v27  ;;  %v5626_v61 = vld [vmem:[#allocation38_spill] sm:$0xff] }
 0x637   :  { %5575 = vst [vmem:[#allocation114_spill] sm:$0xff] %v4646_v30  ;;  %5577 = vst [vmem:[#allocation115_spill] sm:$0xff] %v4651_v34  ;;  %v4656_v36 = vsel %vm857_vm6, %v2243_v45, %v5578_v4  ;;  %v4661_v52 = vsel %vm855_vm5, %v5580_v54, %v2305_v19  ;;  %v4666_v2 = vsel %vm855_vm5, %v2305_v19, %v5582_v16  ;;  %v1918_v45 = vpop.xlane.xlu0 %1917  ;;  %v5584_v54 = vld [vmem:[#allocation30_spill] sm:$0xff] }
 0x638   :  { %5579 = vst [vmem:[#allocation116_spill] sm:$0xff] %v4656_v36  ;;  %5581 = vst [vmem:[#allocation117_spill] sm:$0xff] %v4661_v52  ;;  %v1963_v33 = vmul.f32 %v4525_v17, %v5547_v25  ;;  %v2013_v19 = vmul.f32 %v4525_v17, %v5548_v22  ;;  %v4682_v23 = vmul.f32 %v3876_v60, %v1269_v0  ;;  %v5586_v52 = vld [vmem:[#allocation35_spill] sm:$0xff] }
 0x639   :  { %5583 = vst [vmem:[#allocation118_spill] sm:$0xff] %v4666_v2  ;;  %v2070_v20 = vmul.f32 %v4525_v17, %v5556_v35  ;;  %v2127_v47 = vmul.f32 %v4525_v17, %v5552_v40  ;;  %v2155_v12 = vmul.f32 %v4525_v17, %v3876_v60  ;;  %v2217_v63 = vmul.f32 %v4525_v17, %v3881_v53 }
 0x63a   :  { %v2279_v57 = vmul.f32 %v4525_v17, %v3884_v9  ;;  %v2333_v14 = vmul.f32 %v4525_v17, %v3887_v10  ;;  %v1939_v32 = vmul.f32 %v1918_v45, %v3892_v11  ;;  %v1969_v55 = vmul.f32 %v1918_v45, %v3816_v59 }
 0x63b   :  { %v2019_v28 = vmul.f32 %v1918_v45, %v3831_v3  ;;  %v2076_v4 = vmul.f32 %v1918_v45, %v3862_v62  ;;  %v2134_v16 = vmul.f32 %v1918_v45, %v5584_v54  ;;  %v2162_v6 = vmul.f32 %v1918_v45, %v5585_v1 }
 0x63c   :  { %v4701_v38 = vadd.f32 %v1939_v32, %v1933_v15  ;;  %v2224_v13 = vmul.f32 %v1918_v45, %v5586_v52  ;;  %v2286_v7 = vmul.f32 %v1918_v45, %v3922_v41  ;;  %v4706_v31 = vadd.f32 %v1969_v55, %v1963_v33 }
 0x63d   :  { %v4708_v17 = vadd.f32 %v2019_v28, %v2013_v19  ;;  %v4710_v2 = vadd.f32 %v2076_v4, %v2070_v20  ;;  %v4712_v39 = vadd.f32 %v2134_v16, %v2127_v47  ;;  %v2169_v34 = vadd.f32 %v2162_v6, %v2155_v12 }
 0x63e   :  { %v2231_v56 = vadd.f32 %v2224_v13, %v2217_v63  ;;  %v2293_v36 = vadd.f32 %v2286_v7, %v2279_v57  ;;  %v2339_v15 = vmul.f32 %v1918_v45, %v3908_v58  ;;  %v4716_v32 = vmul.f32 %v3881_v53, %v1269_v0 }
 0x63f   :  { %5587 = vst [vmem:[#allocation30_spill] sm:$0xff] %v4712_v39  ;;  %v5364_v30 = vrot.slane %v4706_v31, 1  ;;  %v5363_v29 = vrot.slane %v4708_v17, 2  ;;  %v5362_v33 = vrot.slane %v4710_v2, 7  ;;  %v2185_v19 = vrot.slane %v2169_v34, 1 }
 0x640   :  { %v2247_v55 = vrot.slane %v2231_v56, 6  ;;  %v2309_v20 = vrot.slane %v2293_v36, 7  ;;  %v4721_v28 = vadd.f32 %v2339_v15, %v2333_v14  ;;  %v4724_v6 = vmul.f32 %v3884_v9, %v1269_v0  ;;  %v1268_v36 = vpop.xlane.xlu1 %1267 }
 0x641   :  { %v4727_v7 = vmul.f32 %v3887_v10, %v1269_v0  ;;  %v5589_v13 = vrot.slane %v4484_v18, 1  ;;  %v5591_v56 = vrot.slane %v4490_v46, 2  ;;  %v5593_v0 = vrot.slane %v4493_v48, 7 }
 0x642   :  { %5588 = vst [vmem:[#allocation32_spill] sm:$0xff] %v4721_v28  ;;  %v5595_v18 = vrot.slane %v4498_v8, 1  ;;  %v5597_v63 = vrot.slane %v4578_v43, 1  ;;  %v5599_v57 = vrot.slane %v4500_v5, 6  ;;  %v5601_v48 = vrot.slane %v4580_v26, 6 }
 0x643   :  { %v4734_v45 = vsel %vm1342_vm8, %v5589_v13, %v5364_v30  ;;  %v4741_v34 = vsel %vm1402_vm9, %v5591_v56, %v5363_v29  ;;  %v4748_v47 = vsel %vm855_vm5, %v5593_v0, %v5362_v33  ;;  %v5603_v8 = vrot.slane %v4502_v21, 7  ;;  %v5607_v13 = vld [vmem:[#allocation43_spill] sm:$0xff]  ;;  %v5613_v29 = vld [vmem:[#allocation62_spill] sm:$0xff] }
 0x644   :  { %5590 = vst [vmem:[#allocation35_spill] sm:$0xff] %v4734_v45  ;;  %5592 = vst [vmem:[#allocation119_spill] sm:$0xff] %v4741_v34  ;;  %v4753_v12 = vsel %vm1342_vm8, %v5595_v18, %v2185_v19  ;;  %v4758_v46 = vsel %vm1342_vm8, %v2185_v19, %v5597_v63  ;;  %v4763_v14 = vsel %vm857_vm6, %v5599_v57, %v2247_v55  ;;  %v5605_v15 = vrot.slane %v4582_v24, 7  ;;  %v5608_v0 = vld [vmem:[#allocation47_spill] sm:$0xff]  ;;  %v5609_v18 = vld [vmem:[#allocation74_spill] sm:$0xff] }
 0x645   :  { %5594 = vst [vmem:[#allocation120_spill] sm:$0xff] %v4748_v47  ;;  %5596 = vst [vmem:[#allocation121_spill] sm:$0xff] %v4753_v12  ;;  %v4768_v4 = vsel %vm857_vm6, %v2247_v55, %v5601_v48  ;;  %v4773_v16 = vsel %vm855_vm5, %v5603_v8, %v2309_v20  ;;  %v1445_v5 = vmul.f32 %v5556_v35, %v5607_v13  ;;  %v4783_v56 = vsel %vm855_vm5, %v1268_v36, 0.0  ;;  %v5610_v63 = vld [vmem:[#allocation58_spill] sm:$0xff]  ;;  %v5611_v57 = vld [vmem:[#allocation36_spill] sm:$0xff] }
 0x646   :  { %5598 = vst [vmem:[#allocation122_spill] sm:$0xff] %v4758_v46  ;;  %5600 = vst [vmem:[#allocation123_spill] sm:$0xff] %v4763_v14  ;;  %v4778_v19 = vsel %vm855_vm5, %v2309_v20, %v5605_v15  ;;  %v1280_v55 = vmul.f32 %v5536_v27, %v5608_v0  ;;  %v1288_v21 = vmul.f32 %v3892_v11, %v5609_v18  ;;  %v5612_v8 = vld [vmem:[#allocation26_spill] sm:$0xff]  ;;  %v5615_v46 = vld [vmem:[#allocation40_spill] sm:$0xff] }
 0x647   :  { %5602 = vst [vmem:[#allocation124_spill] sm:$0xff] %v4768_v4  ;;  %5604 = vst [vmem:[#allocation125_spill] sm:$0xff] %v4773_v16  ;;  %v1300_v48 = vmul.f32 %v5611_v57, %v5610_v63  ;;  %v1460_v33 = vadd.f32 %v5612_v8, %v1445_v5  ;;  %v1319_v20 = vmul.f32 %v5547_v25, %v5608_v0  ;;  %v5614_v4 = vld [vmem:[#allocation64_spill] sm:$0xff]  ;;  %v5616_v16 = vld [vmem:[#allocation79_spill] sm:$0xff] }
 0x648   :  { %5606 = vst [vmem:[#allocation126_spill] sm:$0xff] %v4778_v19  ;;  %v1327_v15 = vmul.f32 %v3816_v59, %v5609_v18  ;;  %v1379_v36 = vmul.f32 %v5548_v22, %v5608_v0  ;;  %v1295_v13 = vadd.f32 %v1288_v21, %v1280_v55  ;;  %v1387_v19 = vmul.f32 %v3831_v3, %v5609_v18  ;;  %v5617_v47 = vld [vmem:[#allocation37_spill] sm:$0xff]  ;;  %v5618_v55 = vld [vmem:[#allocation39_spill] sm:$0xff] }
 0x649   :  { %v1367_v30 = vadd.f32 %v5613_v29, %v1300_v48  ;;  %v1427_v63 = vmul.f32 %v5615_v46, %v5614_v4  ;;  %v1478_v39 = vrot.slane %v1460_v33, 7  ;;  %v1446_v8 = vmul.f32 %v5556_v35, %v5608_v0  ;;  %v5619_v34 = vld [vmem:[#allocation59_spill] sm:$0xff] }
 0x64a   :  { %v1334_v5 = vadd.f32 %v1327_v15, %v1319_v20  ;;  %v1454_v28 = vmul.f32 %v3862_v62, %v5609_v18  ;;  %v1301_v14 = vmul.f32 %v5617_v47, %v5616_v16  ;;  %v1302_v21 = vmul.f32 %v5618_v55, %v1295_v13 }
 0x64b   :  { %v1394_v29 = vadd.f32 %v1387_v19, %v1379_v36  ;;  %v1434_v48 = vadd.f32 %v1427_v63, %v1367_v30  ;;  %v5620_v49 = vrot.slane %v5619_v34, 7  ;;  %v1511_v4 = vmul.f32 %v5552_v40, %v5608_v0  ;;  %v5621_v19 = vld [vmem:[#allocation80_spill] sm:$0xff]  ;;  %v5623_v63 = vld [vmem:[#allocation81_spill] sm:$0xff] }
 0x64c   :  { %v1354_v45 = vrot.slane %v1334_v5, 1  ;;  %v1461_v12 = vadd.f32 %v1454_v28, %v1446_v8  ;;  %v1519_v44 = vmul.f32 %v5584_v54, %v5609_v18  ;;  %v1520_v16 = vmul.f32 %v5584_v54, %v4783_v56 }
 0x64d   :  { %v1479_v33 = vsel %vm855_vm5, %v5620_v49, %v1478_v39  ;;  %v1414_v20 = vrot.slane %v1394_v29, 2  ;;  %v5622_v30 = vrot.slane %v5621_v19, 1  ;;  %v1543_v49 = vmul.f32 %v3876_v60, %v5608_v0  ;;  %v5625_v29 = vld [vmem:[#allocation41_spill] sm:$0xff] }
 0x64e   :  { %v1493_v15 = vmul.f32 %v5611_v57, %v1479_v33  ;;  %v1369_v36 = vadd.f32 %v1354_v45, %v1302_v21  ;;  %v1480_v34 = vrot.slane %v1461_v12, 7  ;;  %v5624_v5 = vrot.slane %v5623_v63, 2 }
 0x64f   :  { %v1355_v28 = vsel %vm1342_vm8, %v5622_v30, %v1354_v45  ;;  %v1429_v33 = vmul.f32 %v5625_v29, %v1414_v20  ;;  %v1527_v45 = vadd.f32 %v1520_v16, %v4673_v37  ;;  %v5627_v30 = vld [vmem:[#allocation82_spill] sm:$0xff] }
 0x650   :  { %v1368_v13 = vadd.f32 %v1355_v28, %v1301_v14  ;;  %v1415_v8 = vsel %vm1402_vm9, %v5624_v5, %v1414_v20  ;;  %v1500_v50 = vadd.f32 %v1493_v15, %v1434_v48  ;;  %v1481_v42 = vsel %vm855_vm5, %v1478_v39, %v1480_v34 }
 0x651   :  { %v1428_v51 = vmul.f32 %v5626_v61, %v1415_v8  ;;  %v1495_v19 = vmul.f32 %v5618_v55, %v1480_v34  ;;  %v1436_v12 = vadd.f32 %v1429_v33, %v1369_v36  ;;  %v1494_v21 = vmul.f32 %v5617_v47, %v1481_v42  ;;  %v4853_v33 = vpop.xlane.xlu0 %1923 }
 0x652   :  { %v1532_v14 = vadd.f32 %v5627_v30, %v1500_v50  ;;  %v1551_v28 = vmul.f32 %v5585_v1, %v5609_v18  ;;  %v1552_v48 = vmul.f32 %v5585_v1, %v4783_v56  ;;  %v1609_v20 = vmul.f32 %v3881_v53, %v5608_v0 }
 0x653   :  { %v1435_v63 = vadd.f32 %v1428_v51, %v1368_v13  ;;  %v1617_v39 = vmul.f32 %v5586_v52, %v5609_v18  ;;  %v1502_v15 = vadd.f32 %v1495_v19, %v1436_v12  ;;  %v1618_v42 = vmul.f32 %v5586_v52, %v4783_v56 }
 0x654   :  { %v1558_v37 = vadd.f32 %v1551_v28, %v1543_v49  ;;  %v1675_v50 = vmul.f32 %v3884_v9, %v5608_v0  ;;  %v1559_v51 = vadd.f32 %v1552_v48, %v4682_v23  ;;  %v1683_v34 = vmul.f32 %v3922_v41, %v5609_v18 }
 0x655   :  { %v1501_v16 = vadd.f32 %v1494_v21, %v1435_v63  ;;  %v1624_v36 = vadd.f32 %v1617_v39, %v1609_v20  ;;  %v1526_v13 = vadd.f32 %v1519_v44, %v1511_v4  ;;  %v1625_v8 = vadd.f32 %v1618_v42, %v4716_v32  ;;  %v5628_v21 = vld [vmem:[#allocation83_spill] sm:$0xff] }
 0x656   :  { %v1576_v5 = vrot.slane %v1558_v37, 1  ;;  %v1684_v49 = vmul.f32 %v3922_v41, %v4783_v56  ;;  %v1534_v19 = vadd.f32 %v1527_v45, %v1502_v15  ;;  %v1578_v12 = vrot.slane %v1559_v51, 1  ;;  %v5630_v45 = vld [vmem:[#allocation84_spill] sm:$0xff] }
 0x657   :  { %v1642_v30 = vrot.slane %v1624_v36, 6  ;;  %v1690_v28 = vadd.f32 %v1683_v34, %v1675_v50  ;;  %v5629_v63 = vrot.slane %v5628_v21, 1  ;;  %v1644_v48 = vrot.slane %v1625_v8, 6 }
 0x658   :  { %v1691_v20 = vadd.f32 %v1684_v49, %v4724_v6  ;;  %v1742_v44 = vmul.f32 %v3908_v58, %v4783_v56  ;;  %v1579_v32 = vsel %vm1342_vm8, %v1576_v5, %v1578_v12  ;;  %v1593_v39 = vmul.f32 %v5625_v29, %v1578_v12 }
 0x659   :  { %v1577_v23 = vsel %vm1342_vm8, %v5629_v63, %v1576_v5  ;;  %v5631_v15 = vrot.slane %v5630_v45, 6  ;;  %v1533_v42 = vadd.f32 %v1526_v13, %v1501_v16  ;;  %v1592_v50 = vmul.f32 %v5626_v61, %v1579_v32  ;;  %v1899_v63 = vpop.xlane.xlu0 %1898  ;;  %v5632_v16 = vld [vmem:[#allocation25_spill] sm:$0xff]  ;;  %v5634_v32 = vld [vmem:[#allocation104_spill] sm:$0xff] }
 0x65a   :  { %v1591_v4 = vmul.f32 %v5615_v46, %v1577_v23  ;;  %v1645_v51 = vsel %vm857_vm6, %v1642_v30, %v1644_v48  ;;  %v1600_v34 = vadd.f32 %v1593_v39, %v1534_v19  ;;  %v1659_v56 = vmul.f32 %v5618_v55, %v1644_v48  ;;  %v5633_v23 = vld [vmem:[#allocation23_spill] sm:$0xff]  ;;  %v5635_v48 = vld [vmem:[#allocation85_spill] sm:$0xff] }
 0x65b   :  { %v1643_v37 = vsel %vm857_vm6, %v5631_v15, %v1642_v30  ;;  %v1708_v5 = vrot.slane %v1690_v28, 7  ;;  %v1599_v8 = vadd.f32 %v1592_v50, %v1533_v42  ;;  %v1658_v49 = vmul.f32 %v5617_v47, %v1645_v51  ;;  %v5637_v42 = vld [vmem:[#allocation28_spill] sm:$0xff] }
 0x65c   :  { %v1657_v6 = vmul.f32 %v5611_v57, %v1643_v37  ;;  %v1598_v36 = vadd.f32 %v1591_v4, %v1532_v14  ;;  %v1710_v12 = vrot.slane %v1691_v20, 7  ;;  %v1749_v21 = vadd.f32 %v1742_v44, %v4727_v7 }
 0x65d   :  { %v1940_v13 = vmul.f32 %v5632_v16, %v3892_v11  ;;  %v2026_v30 = vadd.f32 %v5634_v32, %v5633_v23  ;;  %v1666_v15 = vadd.f32 %v1659_v56, %v1600_v34  ;;  %v2077_v14 = vmul.f32 %v5632_v16, %v3862_v62  ;;  %v5638_v56 = vld [vmem:[#allocation42_spill] sm:$0xff]  ;;  %v5639_v23 = vld [vmem:[#allocation49_spill] sm:$0xff] }
 0x65e   :  { %v1664_v45 = vadd.f32 %v1657_v6, %v1598_v36  ;;  %v2135_v19 = vmul.f32 %v5632_v16, %v5584_v54  ;;  %v1665_v28 = vadd.f32 %v1658_v49, %v1599_v8  ;;  %v5636_v20 = vrot.slane %v5635_v48, 7 }
 0x65f   :  { %v1711_v44 = vsel %vm855_vm5, %v1708_v5, %v1710_v12  ;;  %v1725_v39 = vadd.f32 %v1710_v12, %v1666_v15  ;;  %v1906_v37 = vmul.f32 0.125, %v1899_v63  ;;  %v1992_v50 = vrot.slane %v5637_v42, 1 }
 0x660   :  { %v1709_v7 = vsel %vm855_vm5, %v5636_v20, %v1708_v5  ;;  %v1724_v51 = vadd.f32 %v1711_v44, %v1665_v28  ;;  %v1756_v6 = vmul.f32 %v5626_v61, %v1749_v21  ;;  %v1941_v36 = vmul.f32 %v4853_v33, %v3892_v11  ;;  %v5641_v21 = vld [vmem:[#allocation65_spill] sm:$0xff] }
 0x661   :  { %v4885_v4 = vadd.f32 %v1709_v7, %v1664_v45  ;;  %v2042_v34 = vrot.slane %v2026_v30, 2  ;;  %v1764_v8 = vadd.f32 %v5638_v56, %v1725_v39  ;;  %v2341_v49 = vmul.f32 %v4853_v33, %v3908_v58 }
 0x662   :  { %v1951_v5 = vmul.f32 %v5611_v57, %v4701_v38  ;;  %v1946_v12 = vadd.f32 %v1940_v13, %v5639_v23  ;;  %v5640_v63 = vrot.slane %v4706_v31, 1  ;;  %v4900_v45 = vadd.f32 %v1756_v6, %v1724_v51  ;;  %v5643_v13 = vld [vmem:[#allocation76_spill] sm:$0xff] }
 0x663   :  { %v1935_v15 = vmul.f32 %v5641_v21, %v5536_v27  ;;  %v5642_v30 = vrot.slane %v4708_v17, 2  ;;  %v2819_v48 = vmul.f32 -1.442695, %v1764_v8  ;;  %v2335_v20 = vmul.f32 %v5641_v21, %v3887_v10 }
 0x664   :  { %v1993_v32 = vsel %vm1342_vm8, %v5640_v63, %v1992_v50  ;;  %v1928_v38 = vsel %vm855_vm5, %v1906_v37, 0.0  ;;  %v2142_v7 = vadd.f32 %v2135_v19, %v5643_v13  ;;  %v1965_v44 = vmul.f32 %v5641_v21, %v5547_v25 }
 0x665   :  { %v2043_v28 = vsel %vm1402_vm9, %v5642_v30, %v2042_v34  ;;  %v1947_v31 = vadd.f32 %v1941_v36, %v1935_v15  ;;  %v1971_v39 = vmul.f32 %v4853_v33, %v3816_v59  ;;  %v4915_v42 = vadd.f32 %v2341_v49, %v2335_v20  ;;  %v5644_v49 = vld [vmem:[#allocation71_spill] sm:$0xff] }
 0x666   :  { %v2007_v17 = vadd.f32 %v1993_v32, %v1951_v5  ;;  %v2015_v51 = vmul.f32 %v5641_v21, %v5548_v22  ;;  %v2021_v6 = vmul.f32 %v4853_v33, %v3831_v3  ;;  %v4922_v37 = vmul.f32 %v1928_v38, %v5552_v40 }
 0x667   :  { %v1952_v19 = vmul.f32 %v5617_v47, %v1946_v12  ;;  %v1977_v36 = vadd.f32 %v1971_v39, %v1965_v44  ;;  %v2057_v25 = vmul.f32 %v5615_v46, %v2043_v28  ;;  %3058 = vpow2.f32 %v2819_v48 }
 0x668   :  { %v1953_v59 = vmul.f32 %v5618_v55, %v1947_v31  ;;  %v2027_v8 = vadd.f32 %v2021_v6, %v2015_v51  ;;  %v2071_v5 = vmul.f32 %v5644_v49, %v5556_v35  ;;  %v2072_v3 = vmul.f32 %v5641_v21, %v5556_v35 }
 0x669   :  { %v1994_v23 = vrot.slane %v1977_v36, 1  ;;  %v2064_v22 = vadd.f32 %v2057_v25, %v2007_v17  ;;  %v2078_v63 = vmul.f32 %v4853_v33, %v3862_v62  ;;  %v2158_v12 = vmul.f32 %v1928_v38, %v3876_v60 }
 0x66a   :  { %v2220_v32 = vmul.f32 %v1928_v38, %v3881_v53  ;;  %v2044_v15 = vrot.slane %v2027_v8, 2  ;;  %v2083_v30 = vadd.f32 %v2077_v14, %v2071_v5  ;;  %v2157_v20 = vmul.f32 %v5641_v21, %v3876_v60  ;;  %v1927_v5 = vpop.xlane.xlu0 %1926 }
 0x66b   :  { %v1995_v28 = vsel %vm1342_vm8, %v1992_v50, %v1994_v23  ;;  %v2084_v48 = vadd.f32 %v2078_v63, %v2072_v3  ;;  %v2164_v13 = vmul.f32 %v4853_v33, %v5585_v1  ;;  %v2009_v35 = vadd.f32 %v1994_v23, %v1953_v59 }
 0x66c   :  { %v2008_v31 = vadd.f32 %v1995_v28, %v1952_v19  ;;  %v2045_v44 = vsel %vm1402_vm9, %v2042_v34, %v2044_v15  ;;  %v2099_v62 = vrot.slane %v2083_v30, 7  ;;  %v2059_v17 = vmul.f32 %v5625_v29, %v2044_v15 }
 0x66d   :  { %v2058_v39 = vmul.f32 %v5626_v61, %v2045_v44  ;;  %v2101_v51 = vrot.slane %v2084_v48, 7  ;;  %v2171_v14 = vadd.f32 %v2164_v13, %v2157_v20  ;;  %v2282_v50 = vmul.f32 %v1928_v38, %v3884_v9 }
 0x66e   :  { %v5645_v6 = vrot.slane %v4710_v2, 7  ;;  %v2219_v36 = vmul.f32 %v5641_v21, %v3881_v53  ;;  %v2226_v19 = vmul.f32 %v4853_v33, %v5586_v52  ;;  %v2129_v8 = vmul.f32 %v5641_v21, %v5552_v40 }
 0x66f   :  { %v2065_v34 = vadd.f32 %v2058_v39, %v2008_v31  ;;  %v2102_v25 = vsel %vm855_vm5, %v2099_v62, %v2101_v51  ;;  %v2136_v2 = vmul.f32 %v4853_v33, %v5584_v54  ;;  %v2189_v3 = vrot.slane %v2171_v14, 1 }
 0x670   :  { %v2100_v60 = vsel %vm855_vm5, %v5645_v6, %v2099_v62  ;;  %v2115_v23 = vmul.f32 %v5617_v47, %v2102_v25  ;;  %v2233_v63 = vadd.f32 %v2226_v19, %v2219_v36  ;;  %v2066_v53 = vadd.f32 %v2059_v17, %v2009_v35 }
 0x671   :  { %v2114_v59 = vmul.f32 %v5611_v57, %v2100_v60  ;;  %v2281_v30 = vmul.f32 %v5641_v21, %v3884_v9  ;;  %v2288_v28 = vmul.f32 %v4853_v33, %v3922_v41  ;;  %v5646_v20 = vrot.slane %v4578_v43, 1 }
 0x672   :  { %v2122_v48 = vadd.f32 %v2115_v23, %v2065_v34  ;;  %v2251_v13 = vrot.slane %v2233_v63, 6  ;;  %v1929_v31 = vsel %vm855_vm5, %v1927_v5, 0.0  ;;  %v2336_v35 = vmul.f32 %v1928_v38, %v3887_v10 }
 0x673   :  { %v2121_v15 = vadd.f32 %v2114_v59, %v2064_v22  ;;  %v2190_v40 = vsel %vm1342_vm8, %v5646_v20, %v2189_v3  ;;  %v2295_v39 = vadd.f32 %v2288_v28, %v2281_v30  ;;  %v2137_v22 = vmul.f32 %v1929_v31, %v5584_v54 }
 0x674   :  { %v2204_v62 = vmul.f32 %v5615_v46, %v2190_v40  ;;  %v2116_v9 = vmul.f32 %v5618_v55, %v2101_v51  ;;  %v5647_v33 = vrot.slane %v4580_v26, 6  ;;  %v2165_v43 = vmul.f32 %v1929_v31, %v5585_v1  ;;  %v3059_v17 = vpop.eup %3058 }
 0x675   :  { %v2149_v44 = vadd.f32 %v2142_v7, %v2121_v15  ;;  %v2143_v14 = vadd.f32 %v2136_v2, %v2129_v8  ;;  %v2313_v60 = vrot.slane %v2295_v39, 7  ;;  %v1792_v36 = vadd.f32 1.0, %v3059_v17  ;;  %v5650_v2 = vld [vmem:[#allocation24_spill] sm:$0xff] }
 0x676   :  { %v2252_v21 = vsel %vm857_vm6, %v5647_v33, %v2251_v13  ;;  %v2123_v19 = vadd.f32 %v2116_v9, %v2066_v53  ;;  %v2144_v54 = vadd.f32 %v2137_v22, %v4922_v37  ;;  %v2172_v34 = vadd.f32 %v2165_v43, %v2158_v12  ;;  %v5649_v12 = vld [vmem:[#allocation33_spill] sm:$0xff]  ;;  %v5656_v43 = vld [vmem:[#allocation8_spill] sm:$0xff] }
 0x677   :  { %v2211_v6 = vadd.f32 %v2204_v62, %v2149_v44  ;;  %v2266_v7 = vmul.f32 %v5611_v57, %v2252_v21  ;;  %v2150_v38 = vadd.f32 %v2143_v14, %v2122_v48  ;;  %v2353_v26 = vmul.f32 %v5615_v46, %v4915_v42  ;;  %v5654_v62 = vld [vmem:[#allocation29_spill] sm:$0xff] }
 0x678   :  { %v2227_v51 = vmul.f32 %v1929_v31, %v5586_v52  ;;  %3060 = vrcp.f32 %v1792_v36  ;;  %v5648_v1 = vrot.slane %v4582_v24, 7  ;;  %v2191_v8 = vrot.slane %v2172_v34, 1 }
 0x679   :  { %v2273_v25 = vadd.f32 %v2266_v7, %v2211_v6  ;;  %v2289_v57 = vmul.f32 %v1929_v31, %v3922_v41  ;;  %v2342_v37 = vmul.f32 %v1929_v31, %v3908_v58  ;;  %v1048_v63 = vsub.s32 %v5650_v2, %v5649_v12 }
 0x67a   :  { %v2314_v59 = vsel %vm855_vm5, %v5648_v1, %v2313_v60  ;;  %v2234_v23 = vadd.f32 %v2227_v51, %v2220_v32  ;;  %v2151_v53 = vadd.f32 %v2144_v54, %v2123_v19  ;;  %v2192_v42 = vsel %vm1342_vm8, %v2189_v3, %v2191_v8  ;;  %v5651_v32 = vld [vmem:[#allocation34_spill] sm:$0xff] }
 0x67b   :  { %v2328_v5 = vadd.f32 %v2314_v59, %v2273_v25  ;;  %v2206_v52 = vmul.f32 %v5625_v29, %v2191_v8  ;;  %v2296_v15 = vadd.f32 %v2289_v57, %v2282_v50  ;;  %v2205_v24 = vmul.f32 %v5626_v61, %v2192_v42  ;;  %v5652_v29 = vld [vmem:[#allocation67_spill] sm:$0xff]  ;;  %v5659_v25 = vld [vmem:[#allocation68_spill] sm:$0xff]  ;;  %v5663_v8 = vld [vmem:[#allocation66_spill] sm:$0xff] }
 0x67c   :  { %v2253_v28 = vrot.slane %v2234_v23, 6  ;;  %v2348_v48 = vadd.f32 %v2342_v37, %v2336_v35  ;;  %vm1122_vm10 = vcmp.ne.s32.totalorder %v1048_v63, 0  ;;  %vm1129_vm11 = vcmp.lt.s32.totalorder %v1048_v63, 0  ;;  %v5665_v37 = vld [vmem:[#allocation69_spill] sm:$0xff] }
 0x67d   :  { %v4988_v30 = vadd.f32 %v2353_v26, %v2328_v5  ;;  %v2213_v41 = vadd.f32 %v2206_v52, %v2151_v53  ;;  %v2315_v20 = vrot.slane %v2296_v15, 7  ;;  %v1469_v40 = vrot.slane %v5651_v32, 7  ;;  %vm1136_vm12 = vmand %vm1129_vm11, %vm1122_vm10  ;;  %v5664_v5 = vld [vmem:[#allocation50_spill] sm:$0xff] }
 0x67e   :  { %v2212_v31 = vadd.f32 %v2205_v24, %v2150_v38  ;;  %v2254_v44 = vsel %vm857_vm6, %v2251_v13, %v2253_v28  ;;  %v2268_v3 = vmul.f32 %v5618_v55, %v2253_v28  ;;  %v5653_v50 = vrot.slane %v5652_v29, 1  ;;  %v5667_v15 = vld [vmem:[#allocation46_spill] sm:$0xff]  ;;  %v5668_v28 = vld [vmem:[#allocation52_spill] sm:$0xff]  ;;  %v5669_v29 = vld [vmem:[#allocation53_spill] sm:$0xff] }
 0x67f   :  { %v5655_v39 = vrot.slane %v5654_v62, 1  ;;  %v5003_v35 = vmul.f32 %v3887_v10, %v5608_v0  ;;  %v2267_v9 = vmul.f32 %v5617_v47, %v2254_v44  ;;  %v1143_v33 = vadd.s32 7, %v1048_v63 }
 0x680   :  { %v2275_v21 = vadd.f32 %v2268_v3, %v2213_v41  ;;  %v2316_v13 = vsel %vm855_vm5, %v2313_v60, %v2315_v20  ;;  %v5008_v55 = vmul.u32.u64.low 2454267026, %v5656_v43  ;;  %v5009_v17 = vmul.u32.u64.high 2454267026, %v5656_v43, %v5008_v55 }
 0x681   :  { %v4999_v22 = vsel %vm1342_vm8, %v5655_v39, %v5653_v50  ;;  %v2274_v14 = vadd.f32 %v2267_v9, %v2212_v31  ;;  %v2354_v6 = vmul.f32 %v5626_v61, %v2348_v48  ;;  %v1150_v7 = vsel %vm1136_vm12, %v1143_v33, %v1048_v63  ;;  %v5661_v61 = vld [vmem:[#allocation31_spill] sm:$0xff] }
 0x682   :  { %v5013_v36 = vadd.s32 24, %v5656_v43  ;;  %v2330_v19 = vadd.f32 %v2315_v20, %v2275_v21  ;;  %vm1157_vm6 = vcmp.ge.s32.totalorder %v1150_v7, 1  ;;  %vm1178_vm13 = vcmp.le.s32.totalorder %v1150_v7, 5 }
 0x683   :  { %vm1029_vm14 = vc.u32 %v5008_v55, 2454267026  ;;  %v2329_v47 = vadd.f32 %v2316_v13, %v2274_v14  ;;  %v5657_v0 = vmov 0.0   ;;  %v5658_v34 = vmov 0  }
 0x684   :  { %v5016_v54 = vsel %vm1157_vm6, 1.0, %v5657_v0  ;;  %v5019_v60 = vsel %vm1178_vm13, 1.0, %v5657_v0  ;;  %v1030_v38 = vsel %vm1029_vm14, 1, %v5658_v34  ;;  %v5660_v26 = vrot.slane %v5659_v25, 2 }
 0x685   :  { %v5662_v51 = vrot.slane %v5661_v61, 2  ;;  %v2361_v59 = vadd.f32 %v2330_v19, %v5638_v56  ;;  %v1297_v57 = vmul.f32 %v5016_v54, %v5663_v8  ;;  %v1424_v23 = vmul.f32 %v5019_v60, %v5664_v5  ;;  %v3061_v56 = vpop.eup %3060  ;;  %v5674_v5 = vld [vmem:[#allocation111_spill] sm:$0xff] }
 0x686   :  { %v5666_v12 = vrot.slane %v5665_v37, 7  ;;  %v1741_v63 = vmul.f32 %v3908_v58, %v5609_v18  ;;  %v2360_v53 = vadd.f32 %v2354_v6, %v2329_v47  ;;  %v1274_v42 = vmul.f32 0.0, %v5536_v27  ;;  %1839 = vperm.xlu1 %3024, %v3061_v56   ;;  %v5671_v6 = vld [vmem:[#allocation90_spill] sm:$0xff]  ;;  %v5672_v47 = vld [vmem:[#allocation109_spill] sm:$0xff] }
 0x687   :  { %v5027_v1 = vsel %vm1402_vm9, %v5662_v51, %v5660_v26  ;;  %v2826_v52 = vmul.f32 -1.442695, %v2361_v59  ;;  %v1364_v24 = vadd.f32 %v5667_v15, %v1297_v57  ;;  %v1490_v48 = vmul.f32 %v5016_v54, %v5668_v28 }
 0x688   :  { %v5039_v2 = vsel %vm855_vm5, %v1469_v40, %v5666_v12  ;;  %v1031_v41 = vadd.s32 %v5009_v17, %v1030_v38  ;;  %v2825_v20 = vmul.f32 -1.442695, %v2360_v53  ;;  %v5053_v18 = vadd.s32 16, %v5656_v43  ;;  %v5670_v17 = vld [vmem:[#allocation107_spill] sm:$0xff]  ;;  %v5673_v38 = vld [vmem:[#allocation44_spill] sm:$0xff] }
 0x689   :  { %v5049_v31 = vmul.u32.u64.low 2454267026, %v5013_v36  ;;  %v5050_v44 = vmul.u32.u64.high 2454267026, %v5013_v36, %v5049_v31  ;;  %3062 = vpow2.f32 %v2826_v52  ;;  %v1431_v27 = vadd.f32 %v1424_v23, %v1364_v24  ;;  %v5675_v12 = vld [vmem:[#allocation92_spill] sm:$0xff]  ;;  %v5676_v24 = vld [vmem:[#allocation54_spill] sm:$0xff] }
 0x68a   :  { %v1032_v3 = vshrl.u32 %v1031_v41, 2  ;;  %v1948_v50 = vmul.f32 %v5016_v54, %v5669_v29  ;;  %v1282_v39 = vmul.f32 0.0, %v3892_v11  ;;  %v1588_v7 = vmul.f32 %v5019_v60, %v5671_v6 }
 0x68b   :  { %vm1071_vm15 = vc.u32 %v5049_v31, 2454267026  ;;  %v5059_v9 = vmul.u32.u64.low 2454267026, %v5053_v18  ;;  %v5060_v33 = vmul.u32.u64.high 2454267026, %v5053_v18, %v5059_v9  ;;  %v1497_v21 = vadd.f32 %v1490_v48, %v1431_v27 }
 0x68c   :  { %v1033_v13 = vmul.u32 7, %v1032_v3  ;;  %v1072_v55 = vsel %vm1071_vm15, 1, %v5658_v34  ;;  %v2004_v14 = vadd.f32 %v5670_v17, %v1948_v50  ;;  %v2054_v11 = vmul.f32 %v5019_v60, %v5672_v47  ;;  %v5680_v50 = vld [vmem:[#allocation105_spill] sm:$0xff] }
 0x68d   :  { %v1073_v19 = vadd.s32 %v5050_v44, %v1072_v55  ;;  %vm1057_vm3 = vc.u32 %v5059_v9, 2454267026  ;;  %3064 = vpow2.f32 %v2825_v20  ;;  %v1529_v25 = vadd.f32 %v5673_v38, %v1497_v21  ;;  %v5679_v44 = vld [vmem:[#allocation78_spill] sm:$0xff] }
 0x68e   :  { %v1034_v26 = vsub.s32 %v5656_v43, %v1033_v13  ;;  %v1058_v51 = vsel %vm1057_vm3, 1, %v5658_v34  ;;  %v2061_v57 = vadd.f32 %v2054_v11, %v2004_v14  ;;  %v2111_v23 = vmul.f32 %v5016_v54, %v5674_v5  ;;  %v5687_v38 = vld [vmem:[#allocation114_spill] sm:$0xff] }
 0x68f   :  { %v1074_v59 = vshrl.u32 %v1073_v19, 2  ;;  %v1059_v8 = vadd.s32 %v5060_v33, %v1058_v51  ;;  %v1595_v37 = vadd.f32 %v1588_v7, %v1529_v25  ;;  %v1654_v53 = vmul.f32 %v5016_v54, %v5675_v12  ;;  %v5681_v33 = vld [vmem:[#allocation94_spill] sm:$0xff]  ;;  %v5685_v7 = vld [vmem:[#allocation56_spill] sm:$0xff]  ;;  %v5689_v12 = vld [vmem:[#allocation73_spill] sm:$0xff] }
 0x690   :  { %vm1121_vm7 = vcmp.ne.s32.totalorder %v1034_v26, 0  ;;  %vm1128_vm10 = vcmp.lt.s32.totalorder %v1034_v26, 0  ;;  %v1142_v56 = vadd.s32 7, %v1034_v26  ;;  %v2118_v43 = vadd.f32 %v2111_v23, %v2061_v57  ;;  %v5688_v57 = vld [vmem:[#allocation89_spill] sm:$0xff] }
 0x691   :  { %vm1135_vm11 = vmand %vm1128_vm10, %vm1121_vm7  ;;  %v1075_v52 = vmul.u32 7, %v1074_v59  ;;  %v1060_v15 = vshrl.u32 %v1059_v8, 2  ;;  %v5677_v34 = vrot.slane %v5676_v24, 1  ;;  %v5678_v28 = vrot.slane %v5654_v62, 1  ;;  %v5692_v24 = vld [vmem:[#allocation45_spill] sm:$0xff] }
 0x692   :  { %v1748_v41 = vadd.f32 %v1741_v63, %v5003_v35  ;;  %v1661_v20 = vadd.f32 %v1654_v53, %v1595_v37  ;;  %v1289_v31 = vadd.f32 %v1282_v39, %v1274_v42  ;;  %v1752_v27 = vmul.f32 %v5019_v60, %v5679_v44  ;;  %v5682_v63 = vld [vmem:[#allocation55_spill] sm:$0xff] }
 0x693   :  { %v1985_v48 = vsel %vm1342_vm8, %v5678_v28, %v5677_v34  ;;  %v1149_v3 = vsel %vm1135_vm11, %v1142_v56, %v1034_v26  ;;  %v1076_v29 = vsub.s32 %v5013_v36, %v1075_v52  ;;  %v2146_v9 = vadd.f32 %v5680_v50, %v2118_v43  ;;  %v5690_v56 = vld [vmem:[#allocation63_spill] sm:$0xff]  ;;  %v5693_v28 = vld [vmem:[#allocation116_spill] sm:$0xff] }
 0x694   :  { %v1720_v21 = vadd.f32 %v5681_v33, %v1661_v20  ;;  %vm1156_vm12 = vcmp.ge.s32.totalorder %v1149_v3, 1  ;;  %vm1177_vm6 = vcmp.le.s32.totalorder %v1149_v3, 5  ;;  %v1061_v13 = vmul.u32 7, %v1060_v15  ;;  %v5691_v15 = vld [vmem:[#allocation91_spill] sm:$0xff] }
 0x695   :  { %v5089_v62 = vsel %vm1156_vm12, 1.0, %v5657_v0  ;;  %v5092_v35 = vsel %vm1177_vm6, 1.0, %v5657_v0  ;;  %vm1124_vm8 = vcmp.ne.s32.totalorder %v1076_v29, 0  ;;  %vm1131_vm13 = vcmp.lt.s32.totalorder %v1076_v29, 0  ;;  %v5697_v33 = vld [vmem:[#allocation95_spill] sm:$0xff] }
 0x696   :  { %v5683_v42 = vrot.slane %v5682_v63, 2  ;;  %v5684_v39 = vrot.slane %v5661_v61, 2  ;;  %v1759_v55 = vadd.f32 %v1752_v27, %v1720_v21  ;;  %v1296_v17 = vmul.f32 %v5089_v62, %v1289_v31  ;;  %vm1138_vm14 = vmand %vm1131_vm13, %vm1124_vm8  ;;  %v3063_v6 = vpop.eup %3062  ;;  %v5695_v31 = vld [vmem:[#allocation70_spill] sm:$0xff]  ;;  %v5696_v27 = vld [vmem:[#allocation61_spill] sm:$0xff] }
 0x697   :  { %v1423_v14 = vmul.f32 %v5092_v35, %v5027_v1  ;;  %v5686_v19 = vrot.slane %v5685_v7, 7  ;;  %v5108_v11 = vmul.f32 %v5615_v46, %v1748_v41  ;;  %v1145_v61 = vadd.s32 7, %v1076_v29  ;;  %v5694_v41 = vld [vmem:[#allocation77_spill] sm:$0xff] }
 0x698   :  { %v2035_v36 = vsel %vm1402_vm9, %v5684_v39, %v5683_v42  ;;  %v2201_v25 = vmul.f32 %v5019_v60, %v5687_v38  ;;  %v2389_v26 = vadd.f32 1.0, %v3063_v6  ;;  %v2814_v51 = vmul.f32 -1.442695, %v1759_v55  ;;  %v5698_v39 = vld [vmem:[#allocation98_spill] sm:$0xff]  ;;  %v5700_v38 = vld [vmem:[#allocation87_spill] sm:$0xff] }
 0x699   :  { %v2092_v47 = vsel %vm855_vm5, %v1469_v40, %v5686_v19  ;;  %v1363_v59 = vadd.f32 %v4999_v22, %v1296_v17  ;;  %v1062_v1 = vsub.s32 %v5053_v18, %v1061_v13  ;;  %v1489_v8 = vmul.f32 %v5089_v62, %v5039_v2 }
 0x69a   :  { %v1587_v32 = vmul.f32 %v5092_v35, %v5688_v57  ;;  %v1152_v40 = vsel %vm1138_vm14, %v1145_v61, %v1076_v29  ;;  %v2003_v5 = vadd.f32 %v1985_v48, %v1296_v17  ;;  %3066 = vrcp.f32 %v2389_v26  ;;  %v3065_v23 = vpop.eup %3064  ;;  %v5699_v61 = vld [vmem:[#allocation100_spill] sm:$0xff]  ;;  %v5703_v57 = vld [vmem:[#allocation93_spill] sm:$0xff] }
 0x69b   :  { %v1430_v46 = vadd.f32 %v1423_v14, %v1363_v59  ;;  %vm1159_vm9 = vcmp.ge.s32.totalorder %v1152_v40, 1  ;;  %vm1180_vm15 = vcmp.le.s32.totalorder %v1152_v40, 5  ;;  %vm1123_vm3 = vcmp.ne.s32.totalorder %v1062_v1, 0  ;;  %v5705_v40 = vld [vmem:[#allocation86_spill] sm:$0xff] }
 0x69c   :  { %v5119_v37 = vsel %vm1159_vm9, 1.0, %v5657_v0  ;;  %v5122_v22 = vsel %vm1180_vm15, 1.0, %v5657_v0  ;;  %v2053_v18 = vmul.f32 %v5092_v35, %v2035_v36  ;;  %3068 = vpow2.f32 %v2814_v51  ;;  %v5701_v51 = vld [vmem:[#allocation51_spill] sm:$0xff] }
 0x69d   :  { %v1496_v2 = vadd.f32 %v1489_v8, %v1430_v46  ;;  %v1299_v53 = vmul.f32 %v5119_v37, %v5689_v12  ;;  %v1426_v52 = vmul.f32 %v5122_v22, %v5690_v56  ;;  %v1653_v43 = vmul.f32 %v5089_v62, %v5691_v15  ;;  %v5706_v46 = vld [vmem:[#allocation115_spill] sm:$0xff]  ;;  %v5708_v12 = vld [vmem:[#allocation57_spill] sm:$0xff] }
 0x69e   :  { %v1751_v34 = vmul.f32 %v5092_v35, %v5692_v24  ;;  %v2263_v48 = vmul.f32 %v5016_v54, %v5693_v28  ;;  %v2350_v20 = vmul.f32 %v5019_v60, %v5694_v41  ;;  %vm1130_vm7 = vcmp.lt.s32.totalorder %v1062_v1, 0  ;;  %v5710_v28 = vld [vmem:[#allocation88_spill] sm:$0xff] }
 0x69f   :  { %v1528_v44 = vadd.f32 %v5695_v31, %v1496_v2  ;;  %v1366_v3 = vadd.f32 %v5696_v27, %v1299_v53  ;;  %v1144_v29 = vadd.s32 7, %v1062_v1  ;;  %v5139_v50 = vadd.f32 1.0, %v3065_v23  ;;  %vm1137_vm10 = vmand %vm1130_vm7, %vm1123_vm3  ;;  %v5711_v31 = vld [vmem:[#allocation110_spill] sm:$0xff] }
 0x6a0   :  { %v1492_v21 = vmul.f32 %v5119_v37, %v5697_v33  ;;  %v2060_v13 = vadd.f32 %v2053_v18, %v2003_v5  ;;  %v2110_v63 = vmul.f32 %v5089_v62, %v2092_v47  ;;  %v1590_v60 = vmul.f32 %v5122_v22, %v5698_v39  ;;  %v5707_v18 = vld [vmem:[#allocation48_spill] sm:$0xff]  ;;  %v5712_v33 = vld [vmem:[#allocation118_spill] sm:$0xff] }
 0x6a1   :  { %v1594_v54 = vadd.f32 %v1587_v32, %v1528_v44  ;;  %v1433_v42 = vadd.f32 %v1426_v52, %v1366_v3  ;;  %v1151_v36 = vsel %vm1137_vm10, %v1144_v29, %v1062_v1  ;;  %v2208_v17 = vadd.f32 %v2201_v25, %v2146_v9  ;;  %v5702_v1 = vld [vmem:[#allocation113_spill] sm:$0xff]  ;;  %v5704_v25 = vld [vmem:[#allocation60_spill] sm:$0xff]  ;;  %v5709_v52 = vld [vmem:[#allocation27_spill] sm:$0xff] }
 0x6a2   :  { %vm1158_vm11 = vcmp.ge.s32.totalorder %v1151_v36, 1  ;;  %vm1179_vm12 = vcmp.le.s32.totalorder %v1151_v36, 5  ;;  %v2117_v55 = vadd.f32 %v2110_v63, %v2060_v13  ;;  %v1656_v47 = vmul.f32 %v5119_v37, %v5699_v61  ;;  %v5716_v61 = vld [vmem:[#allocation102_spill] sm:$0xff] }
 0x6a3   :  { %v1660_v14 = vadd.f32 %v1653_v43, %v1594_v54  ;;  %v1499_v6 = vadd.f32 %v1492_v21, %v1433_v42  ;;  %v2783_v7 = vsel %vm1158_vm11, 1.0, %v5657_v0  ;;  %v5149_v19 = vsel %vm1179_vm12, 1.0, %v5657_v0 }
 0x6a4   :  { %v1298_v26 = vmul.f32 %v2783_v7, %v5700_v38  ;;  %v1425_v59 = vmul.f32 %v5149_v19, %v5701_v51  ;;  %v2200_v8 = vmul.f32 %v5092_v35, %v5702_v1  ;;  %v1754_v5 = vmul.f32 %v5122_v22, %v5705_v40  ;;  %v5719_v1 = vld [vmem:[#allocation99_spill] sm:$0xff] }
 0x6a5   :  { %v1719_v9 = vadd.f32 %v5703_v57, %v1660_v14  ;;  %v1531_v32 = vadd.f32 %v5704_v25, %v1499_v6  ;;  %v2262_v23 = vmul.f32 %v5089_v62, %v5706_v46  ;;  %v2145_v53 = vadd.f32 %v5708_v12, %v2117_v55  ;;  %v5713_v62 = vld [vmem:[#allocation108_spill] sm:$0xff]  ;;  %v5722_v40 = vld [vmem:[#allocation119_spill] sm:$0xff] }
 0x6a6   :  { %v1365_v2 = vadd.f32 %v5707_v18, %v1298_v26  ;;  %v2270_v56 = vadd.f32 %v2263_v48, %v2208_v17  ;;  %v1949_v15 = vmul.f32 %v2783_v7, %v5709_v52  ;;  %v1491_v41 = vmul.f32 %v2783_v7, %v5710_v28  ;;  %v5714_v48 = vld [vmem:[#allocation106_spill] sm:$0xff]  ;;  %v5717_v26 = vld [vmem:[#allocation97_spill] sm:$0xff] }
 0x6a7   :  { %v1758_v43 = vadd.f32 %v1751_v34, %v1719_v9  ;;  %v1597_v24 = vadd.f32 %v1590_v60, %v1531_v32  ;;  %v2055_v44 = vmul.f32 %v5149_v19, %v5711_v31  ;;  %v3067_v27 = vpop.eup %3066  ;;  %v2207_v29 = vadd.f32 %v2200_v8, %v2145_v53  ;;  %v5715_v34 = vld [vmem:[#allocation112_spill] sm:$0xff]  ;;  %v5721_v32 = vld [vmem:[#allocation103_spill] sm:$0xff]  ;;  %v5724_v53 = vld [vmem:[#allocation121_spill] sm:$0xff] }
 0x6a8   :  { %v1432_v3 = vadd.f32 %v1425_v59, %v1365_v2  ;;  %v2325_v21 = vadd.f32 %v5712_v33, %v2270_v56  ;;  %v2005_v13 = vadd.f32 %v5713_v62, %v1949_v15  ;;  %2436 = vperm.xlu1 %3024, %v3067_v27   ;;  %v2349_v42 = vmul.f32 %v5092_v35, %v5714_v48  ;;  %v5718_v59 = vld [vmem:[#allocation75_spill] sm:$0xff]  ;;  %v5720_v35 = vld [vmem:[#allocation117_spill] sm:$0xff]  ;;  %v5723_v2 = vld [vmem:[#allocation72_spill] sm:$0xff] }
 0x6a9   :  { %v2813_v63 = vmul.f32 -1.442695, %v1758_v43  ;;  %v1663_v54 = vadd.f32 %v1656_v47, %v1597_v24  ;;  %v2112_v39 = vmul.f32 %v2783_v7, %v5715_v34  ;;  %v3069_v60 = vpop.eup %3068  ;;  %v2269_v55 = vadd.f32 %v2262_v23, %v2207_v29  ;;  %v5727_v27 = vld [vmem:[#allocation120_spill] sm:$0xff]  ;;  %v5728_v29 = vld [vmem:[#allocation101_spill] sm:$0xff] }
 0x6aa   :  { %v1498_v36 = vadd.f32 %v1491_v41, %v1432_v3  ;;  %v5175_v17 = vadd.f32 %v2350_v20, %v2325_v21  ;;  %v2062_v14 = vadd.f32 %v2055_v44, %v2005_v13  ;;  %v1787_v6 = vadd.f32 1.0, %v3069_v60  ;;  %v5726_v41 = vld [vmem:[#allocation123_spill] sm:$0xff]  ;;  %v5729_v21 = vld [vmem:[#allocation96_spill] sm:$0xff] }
 0x6ab   :  { %3070 = vpow2.f32 %v2813_v63  ;;  %v1722_v38 = vadd.f32 %v5716_v61, %v1663_v54  ;;  %v1589_v51 = vmul.f32 %v5149_v19, %v5717_v26  ;;  %v1655_v8 = vmul.f32 %v2783_v7, %v5719_v1  ;;  %v5730_v54 = vld [vmem:[#allocation125_spill] sm:$0xff] }
 0x6ac   :  { %v1530_v47 = vadd.f32 %v5718_v59, %v1498_v36  ;;  %v2324_v57 = vadd.f32 %v5720_v35, %v2269_v55  ;;  %v2119_v9 = vadd.f32 %v2112_v39, %v2062_v14  ;;  %3072 = vrcp.f32 %v1787_v6  ;;  %v5732_v39 = vld [vmem:[#allocation30_spill] sm:$0xff] }
 0x6ad   :  { %v1761_v25 = vadd.f32 %v1754_v5, %v1722_v38  ;;  %v1950_v20 = vmul.f32 %v5119_v37, %v5721_v32  ;;  %v2056_v46 = vmul.f32 %v5122_v22, %v5722_v40  ;;  %v2202_v56 = vmul.f32 %v5149_v19, %v5724_v53  ;;  %v5725_v5 = vld [vmem:[#allocation35_spill] sm:$0xff]  ;;  %v5733_v36 = vld [vmem:[#allocation122_spill] sm:$0xff]  ;;  %v5734_v38 = vld [vmem:[#allocation124_spill] sm:$0xff] }
 0x6ae   :  { %v1596_v23 = vadd.f32 %v1589_v51, %v1530_v47  ;;  %v2355_v18 = vadd.f32 %v2349_v42, %v2324_v57  ;;  %v2147_v12 = vadd.f32 %v5723_v2, %v2119_v9  ;;  %v1762_v52 = vadd.f32 %v5108_v11, %v4885_v4 }
 0x6af   :  { %3074 = vrcp.f32 %v5139_v50  ;;  %v2816_v15 = vmul.f32 -1.442695, %v1761_v25  ;;  %v2006_v43 = vadd.f32 %v5725_v5, %v1950_v20  ;;  %v2264_v31 = vmul.f32 %v2783_v7, %v5726_v41  ;;  %v5731_v7 = vld [vmem:[#allocation32_spill] sm:$0xff] }
 0x6b0   :  { %v1662_v24 = vadd.f32 %v1655_v8, %v1596_v23  ;;  %v2209_v28 = vadd.f32 %v2202_v56, %v2147_v12  ;;  %v2113_v3 = vmul.f32 %v5119_v37, %v5727_v27  ;;  %v1753_v62 = vmul.f32 %v5149_v19, %v5729_v21 }
 0x6b1   :  { %3076 = vpow2.f32 %v2816_v15  ;;  %v2063_v44 = vadd.f32 %v2056_v46, %v2006_v43  ;;  %v2340_v11 = vmul.f32 %v5632_v16, %v3908_v58  ;;  %v2817_v50 = vmul.f32 -1.442695, %v1762_v52 }
 0x6b2   :  { %v1721_v33 = vadd.f32 %v5728_v29, %v1662_v24  ;;  %v2271_v4 = vadd.f32 %v2264_v31, %v2209_v28  ;;  %v2351_v42 = vmul.f32 %v5149_v19, %v5731_v7  ;;  %v2334_v34 = vmul.f32 %v5644_v49, %v3887_v10  ;;  %v5735_v49 = vld [vmem:[#allocation126_spill] sm:$0xff] }
 0x6b3   :  { %v2120_v13 = vadd.f32 %v2113_v3, %v2063_v44  ;;  %v2203_v55 = vmul.f32 %v5122_v22, %v5733_v36  ;;  %v2818_v14 = vmul.f32 -1.442695, %v4900_v45  ;;  %3078 = vpow2.f32 %v2817_v50 }
 0x6b4   :  { %v1760_v63 = vadd.f32 %v1753_v62, %v1721_v33  ;;  %v2326_v48 = vadd.f32 %v5730_v54, %v2271_v4  ;;  %v2346_v16 = vadd.f32 %v2340_v11, %v2334_v34  ;;  %v2265_v26 = vmul.f32 %v5119_v37, %v5734_v38  ;;  %v2466_v4 = vld [vmem:[%s5285_s8] sm:$0xff]  ;;  %v5736_v34 = vld [vmem:[#allocation9_spill] sm:$0xff]  ;;  %v5741_v38 = vld [vmem:[#allocation10_spill] sm:$0xff] }
 0x6b5   :  { %v2148_v60 = vadd.f32 %v5732_v39, %v2120_v13  ;;  %v2820_v8 = vmul.f32 -1.442695, %v2355_v18  ;;  %v2821_v37 = vmul.f32 -1.442695, %v5175_v17  ;;  %2986 = vmatpush3.msra.mxu1 %v2466_v4 }
 0x6b6   :  { %v2815_v6 = vmul.f32 -1.442695, %v1760_v63  ;;  %v2357_v58 = vadd.f32 %v2351_v42, %v2326_v48  ;;  %v2352_v45 = vmul.f32 %v5122_v22, %v2346_v16  ;;  %v2824_v22 = vmul.f32 -1.442695, %v4988_v30  ;;  %2997 = vmatprep.subr.mxu1 %v5657_v0  ;;  %v5740_v16 = vld [vmem:[#allocation21_spill] sm:$0xff] }
 0x6b7   :  { %v2210_v61 = vadd.f32 %v2203_v55, %v2148_v60  ;;  %v5737_v60 = vld [vmem:[#allocation12_spill] sm:$0xff]  ;;  %v5738_v55 = vld [vmem:[#allocation11_spill] sm:$0xff] }
 0x6b8   :  { %v3071_v51 = vpop.eup %3070  ;;  %3080 = vpow2.f32 %v2815_v6  ;;  %v2822_v25 = vmul.f32 -1.442695, %v2357_v58  ;;  %v5739_v6 = vld [vmem:[#allocation16_spill] sm:$0xff] }
 0x6b9   :  { %v1786_v19 = vadd.f32 1.0, %v3071_v51  ;;  %v2272_v59 = vadd.f32 %v2265_v26, %v2210_v61  ;;  %v3073_v10 = vpop.eup %3072  ;;  %3082 = vpow2.f32 %v2818_v14 }
 0x6ba   :  { %1814 = vperm.xlu0 %3025, %v3073_v10  }
 0x6bb   :  { %3084 = vrcp.f32 %v1786_v19  ;;  %v2327_v47 = vadd.f32 %v5735_v49, %v2272_v59 }
 0x6bc   :  { %v3075_v1 = vpop.eup %3074  ;;  %3086 = vpow2.f32 %v2820_v8 }
 0x6bd   :  { %v2358_v35 = vadd.f32 %v2352_v45, %v2327_v47 }
 0x6be   :  { %v3077_v57 = vpop.eup %3076  ;;  %2431 = vperm.xlu0 %3025, %v3075_v1  }
 0x6bf   :  { %v1789_v9 = vadd.f32 1.0, %v3077_v57  ;;  %v2823_v12 = vmul.f32 -1.442695, %v2358_v35  ;;  %v5742_v35 = vld [vmem:[#allocation14_spill] sm:$0xff] }
 0x6c0   :  { %v3079_v32 = vpop.eup %3078 }
 0x6c1   :  { %3088 = vrcp.f32 %v1789_v9  ;;  %v1790_v23 = vadd.f32 1.0, %v3079_v32 }
 0x6c2   :  { %3090 = vpow2.f32 %v2821_v37 }
 0x6c3   :  { %3092 = vpow2.f32 %v2822_v25 }
 0x6c5   :  { %v3081_v20 = vpop.eup %3080 }
 0x6c6   :  { %v1788_v40 = vadd.f32 1.0, %v3081_v20  ;;  %v3083_v46 = vpop.eup %3082 }
 0x6c7   :  { %v1791_v18 = vadd.f32 1.0, %v3083_v46 }
 0x6c8   :  { %v3085_v2 = vpop.eup %3084  ;;  %3094 = vrcp.f32 %v1788_v40 }
 0x6c9   :  { %1809 = vperm.xlu1 %3024, %v3085_v2   ;;  %3096 = vrcp.f32 %v1790_v23  ;;  %v3087_v53 = vpop.eup %3086  ;;  %v5743_v2 = vld [vmem:[#allocation13_spill] sm:$0xff] }
 0x6ca   :  { %3098 = vpow2.f32 %v2824_v22  ;;  %v2383_v56 = vadd.f32 1.0, %v3087_v53  ;;  %v5745_v53 = vld [vmem:[#allocation15_spill] sm:$0xff] }
 0x6cb   :  { %3100 = vrcp.f32 %v1791_v18  ;;  %v5744_v18 = vld [vmem:[#allocation18_spill] sm:$0xff] }
 0x6cc   :  { %3102 = vpow2.f32 %v2823_v12 }
 0x6cd   :  { %3104 = vrcp.f32 %v2383_v56 }
 0x6ce   :  { %v3089_v17 = vpop.eup %3088 }
 0x6cf   :  { %1824 = vperm.xlu0 %3025, %v3089_v17   ;;  %v3091_v52 = vpop.eup %3090 }
 0x6d0   :  { %v3093_v15 = vpop.eup %3092  ;;  %v2384_v5 = vadd.f32 1.0, %v3091_v52  ;;  %v5746_v52 = vld [vmem:[#allocation22_spill] sm:$0xff] }
 0x6d1   :  { %v2385_v30 = vadd.f32 1.0, %v3093_v15 }
 0x6d2   :  { %3106 = vrcp.f32 %v2384_v5  ;;  %v5747_v5 = vld [vmem:[#allocation20_spill] sm:$0xff] }
 0x6d3   :  { %3108 = vrcp.f32 %v2385_v30 }
 0x6d5   :  { %v3095_v43 = vpop.eup %3094 }
 0x6d6   :  { %1819 = vperm.xlu1 %3024, %v3095_v43   ;;  %v3097_v24 = vpop.eup %3096 }
 0x6d7   :  { %v3099_v28 = vpop.eup %3098 }
 0x6d8   :  { %v3101_v41 = vpop.eup %3100  ;;  %v2387_v31 = vadd.f32 1.0, %v3099_v28 }
 0x6d9   :  { %v3103_v44 = vpop.eup %3102 }
 0x6da   :  { %1829 = vperm.xlu1 %3024, %v3097_v24   ;;  %3110 = vrcp.f32 %v2387_v31  ;;  %v2386_v27 = vadd.f32 1.0, %v3103_v44  ;;  %v3105_v3 = vpop.eup %3104  ;;  %v5748_v24 = vld [vmem:[#allocation17_spill] sm:$0xff] }
 0x6dc   :  { %3112 = vrcp.f32 %v2386_v27 }
 0x6de   :  { %1834 = vperm.xlu1 %3024, %v3101_v41  }
 0x6df   :  { %v3107_v29 = vpop.eup %3106 }
 0x6e0   :  { %v3109_v33 = vpop.eup %3108 }
 0x6e2   :  { %2406 = vperm.xlu1 %3024, %v3105_v3  }
 0x6e6   :  { %2411 = vperm.xlu1 %3024, %v3107_v29  }
 0x6e7   :  { %v3111_v21 = vpop.eup %3110 }
 0x6e9   :  { %v3113_v62 = vpop.eup %3112 }
 0x6ea   :  { %2416 = vperm.xlu1 %3024, %v3109_v33  }
 0x6ee   :  { %2426 = vperm.xlu1 %3024, %v3111_v21  }
 0x6f2   :  { %2421 = vperm.xlu1 %3024, %v3113_v62   ;;  %v5749_v62 = vld [vmem:[#allocation19_spill] sm:$0xff] }
 0x701   :  { %v1840_v11 = vpop.permute.xlu1 %1839 }
 0x702   :  { %v1848_v61 = vmul.f32 %v1840_v11, %v5740_v16 }
 0x704   :  { %v1857_v1 = vsel %vm438_vm4, %v1848_v61, -inf }
 0x723   :  { %v2437_v50 = vpop.permute.xlu1 %2436 }
 0x724   :  { %v2445_v15 = vmul.f32 %v2437_v50, %v5746_v52 }
 0x726   :  { %v2454_v33 = vsel %vm438_vm4, %v2445_v15, -inf }
 0x735   :  { %v1815_v54 = vpop.permute.xlu0 %1814 }
 0x736   :  { %v1843_v39 = vmul.f32 %v1815_v54, %v5736_v34 }
 0x738   :  { %v1850_v10 = vsel %vm214_vm2, %v1843_v39, -inf }
 0x739   :  { %v2432_v7 = vpop.permute.xlu0 %2431 }
 0x73a   :  { %v2444_v43 = vmul.f32 %v2432_v7, %v5747_v5 }
 0x73c   :  { %v2452_v21 = vsel %vm214_vm2, %v2444_v43, -inf }
 0x744   :  { %v1810_v13 = vpop.permute.xlu1 %1809 }
 0x745   :  { %v1842_v26 = vmul.f32 %v1810_v13, %v5741_v38  ;;  %v2560_v38 = vld [vmem:[%s5287_s10 + $0x8] sm:$0xff] }
 0x746   :  { %2991 = vmatpush3.msra.mxu0 %v2560_v38 }
 0x747   :  { %v1849_v8 = vsel %vm214_vm2, %v1842_v26, -inf  ;;  %2992 = vmatprep.subr.mxu0 %v5657_v0  ;;  %v2559_v26 = vld [vmem:[%s5287_s10] sm:$0xff] }
 0x748   :  { %2993 = vmatpush3.msra.mxu0 %v2559_v26 }
 0x74a   :  { %v1825_v19 = vpop.permute.xlu0 %1824 }
 0x74b   :  { %v1845_v57 = vmul.f32 %v1825_v19, %v5742_v35 }
 0x74d   :  { %v1852_v20 = vsel %vm214_vm2, %v1845_v57, -inf  ;;  %v2643_v57 = vld [vmem:[%s5289_s12] sm:$0xff] }
 0x751   :  { %v1820_v63 = vpop.permute.xlu1 %1819 }
 0x752   :  { %v1844_v36 = vmul.f32 %v1820_v63, %v5737_v60 }
 0x754   :  { %v1851_v49 = vsel %vm214_vm2, %v1844_v36, -inf }
 0x755   :  { %v1830_v48 = vpop.permute.xlu1 %1829  ;;  %v1858_v9 = vmax.f32 %v1851_v49, %v1857_v1 }
 0x756   :  { %v1846_v14 = vmul.f32 %v1830_v48, %v5738_v55 }
 0x757   :  { %v1860_v40 = vmax.f32 %v1858_v9, %v1852_v20  ;;  %v2830_v9 = vld [vmem:[%s5288_s11] ss:$0 sm:$0xff]  ;;  %s3130_s11 = scalar_lea.vmem %s2733_s23, 32 }
 0x758   :  { %v1853_v47 = vsel %vm214_vm2, %v1846_v14, -inf  ;;  %p3131_p5 = scmp.ne.s32.totalorder %s2733_s23, %s3130_s11  ;;  %p3136_p7 = scmp.lt.s32.totalorder %s3130_s11, %s3130_s11 }
 0x759   :  { %v1835_v42 = vpop.permute.xlu1 %1834  ;;  %v1854_v37 = vmax.f32 %v1849_v8, %v1853_v47 }
 0x75a   :  { %v1847_v58 = vmul.f32 %v1835_v42, %v5739_v6  ;;  %p3137_p8 = por %p3136_p7, %p3135_p6 }
 0x75c   :  { %v1855_v51 = vsel %vm214_vm2, %v1847_v58, -inf  ;;  %p3138_p9 = pnand %p3137_p8, %p3131_p5 }
 0x75d   :  { %v2407_v59 = vpop.permute.xlu1 %2406  ;;  %v1856_v45 = vmax.f32 %v1850_v10, %v1855_v51  ;;  %v2827_v51 = vld [vmem:[%s5286_s9] ss:$0 sm:$0xff] }
 0x75e   :  { %v2439_v22 = vmul.f32 %v2407_v59, %v5743_v2 }
 0x75f   :  { %v1859_v32 = vmax.f32 %v1854_v37, %v1856_v45 }
 0x760   :  { %v2446_v41 = vsel %vm214_vm2, %v2439_v22, -inf }
 0x761   :  { %v2412_v25 = vpop.permute.xlu1 %2411  ;;  %v1861_v23 = vmax.f32 %v1859_v32, %v1860_v40 }
 0x762   :  { %v2440_v12 = vmul.f32 %v2412_v25, %v5744_v18 }
 0x763   :  { %v1862_v28 = vrot.slane %v1861_v23, 4 }
 0x764   :  { %v2447_v31 = vsel %vm214_vm2, %v2440_v12, -inf }
 0x765   :  { %v2417_v46 = vpop.permute.xlu1 %2416  ;;  %v1863_v11 = vmax.f32 %v1861_v23, %v1862_v28  ;;  %v2453_v50 = vmax.f32 %v2447_v31, %v2452_v21 }
 0x766   :  { %v2441_v17 = vmul.f32 %v2417_v46, %v5745_v53  ;;  %v2832_v46 = vld [vmem:[%s5290_s13] ss:$0 sm:$0xff] }
 0x767   :  { %v1864_v7 = vrot.slane %v1863_v11, 2 }
 0x768   :  { %v2448_v44 = vsel %vm214_vm2, %v2441_v17, -inf }
 0x769   :  { %v2427_v56 = vpop.permute.xlu1 %2426  ;;  %v2455_v13 = vmax.f32 %v2448_v44, %v2454_v33  ;;  %v1865_v39 = vmax.f32 %v1863_v11, %v1864_v7 }
 0x76a   :  { %v2443_v30 = vmul.f32 %v2427_v56, %v5748_v24 }
 0x76b   :  { %v1866_v14 = vrot.slane %v1865_v39, 1 }
 0x76c   :  { %v2450_v27 = vsel %vm214_vm2, %v2443_v30, -inf }
 0x76d   :  { %v2451_v3 = vmax.f32 %v2446_v41, %v2450_v27  ;;  %v2422_v29 = vpop.permute.xlu1 %2421  ;;  %v1867_v58 = vmax.f32 %v1865_v39, %v1866_v14 }
 0x76e   :  { %v2442_v4 = vmul.f32 %v2422_v29, %v5749_v62 }
 0x76f   :  { %v2456_v54 = vmax.f32 %v2451_v3, %v2453_v50 }
 0x770   :  { %v2449_v63 = vsel %vm214_vm2, %v2442_v4, -inf }
 0x771   :  { %v2457_v48 = vmax.f32 %v2455_v13, %v2449_v63 }
 0x773   :  { %v2458_v42 = vmax.f32 %v2456_v54, %v2457_v48 }
 0x775   :  { %v2459_v34 = vrot.slane %v2458_v42, 4 }
 0x777   :  { %v2460_v60 = vmax.f32 %v2458_v42, %v2459_v34 }
 0x779   :  { %v2461_v36 = vrot.slane %v2460_v60, 2 }
 0x77b   :  { %v2462_v55 = vmax.f32 %v2460_v60, %v2461_v36 }
 0x77d   :  { %v2463_v6 = vrot.slane %v2462_v55, 1 }
 0x77f   :  { %v2464_v16 = vmax.f32 %v2462_v55, %v2463_v6 }
 0x781   :  { %v2465_v61 = vsel %vm855_vm5, %v1867_v58, %v2464_v16 }
 0x782   :  { %2988 = vmatmul.mubr.msk.f32.vlgmr.msra.gmra.mxu1 %vm214_vm2, %v2465_v61 }
 0x783   :  { %2999 = vmatprep.mubr.msk.f32.mxu1 %vm3156_vm0, %v5657_v0  ;;  %2998 = vmatpush3.msra.mxu1 %v2643_v57  ;;  %vm2724_vm0 = vcmask 25600  }
 0x842   :  { %v2543_v19 = vpop.f32.mrf.mxu1 }
 0x843   :  { %v2544_v59 = vadd.f32 %v2827_v51, %v2543_v19 }
 0x844   :  { %v2989_v10 = vpop.f32.mrf.mxu1 }
 0x845   :  { %2555 = vrot.lane.b32.xlu0 %v2544_v59, %s3160_s20  ;;  %v2829_v49 = vmul.f32 -1.442695, %v2544_v59 }
 0x847   :  { %3114 = vpow2.f32 %v2829_v49 }
 0x854   :  { %v3115_v47 = vpop.eup %3114 }
 0x855   :  { %v2550_v45 = vadd.f32 1.0, %v3115_v47 }
 0x857   :  { %3116 = vrcp.f32 %v2550_v45 }
 0x864   :  { %v3117_v0 = vpop.eup %3116 }
 0x865   :  { %v2553_v1 = vmul.f32 %v3117_v0, %v2544_v59 }
 0x8b7   :  { %v2556_v8 = vpop.permute.xlu0 %2555 }
 0x8b8   :  { %v2558_v35 = vmul.f32 %v2556_v8, %v2553_v1 }
 0x8ba   :  { %2995 = vmatmul.mubr.msk.f32.vlgmr.msra.gmra.mxu0 %vm79_vm1, %v2558_v35 }
 0x97a   :  { %v2637_v37 = vpop.f32.mrf.mxu0 }
 0x97b   :  { %v2638_v25 = vadd.f32 %v2830_v9, %v2637_v37 }
 0x97c   :  { %v2996_v32 = vpop.f32.mrf.mxu0 }
 0x97d   :  { %v2641_v20 = vadd.f32 %v2638_v25, %v2465_v61 }
 0x97f   :  { %v2642_v40 = vmax.f32 %v2641_v20, 0.0 }
 0x981   :  { %3000 = vmatmul.mubr.msk.f32.vlgmr.msra.gmra.mxu1 %vm214_vm2, %v2642_v40 }
 0xa41   :  { %v2720_v23 = vpop.f32.mrf.mxu1 }
 0xa42   :  { %v2721_v2 = vadd.f32 %v2832_v46, %v2720_v23 }
 0xa43   :  { %v3001_v22 = vpop.f32.mrf.mxu1 }
 0xa44   :  { %2725 = vst.msk [vmem:[#allocation5] sm:$0x3] %vm2724_vm0, %v2721_v2 }
 0xa45   :  { %3141 = shalt.err (!%p3138_p9)
}
 0xa46   :  { %2735 = dma.vmem_to_hbm [thread:$0]  %s2733_s23, 32, %s5291_s14, [#allocation3]  }
 0xa47   :  { %3152 = dma.done.wait [#allocation3], 32  }
 0xa48   :  { %3153 = vsyncadd [#allocation3], 4294967264 }
 0xa49   :  { %2739 = vsyncpa [#allocation3], 1 }
 0xa4a   :  { %2740 = vsyncpa [#allocation4], 1 }

</bundles_post_ra>
